<compile_context>
chip_gen: v7x
topology: tpu7x:2x2x1
jax: 0.10.0
libtpu: 0.0.40
codegen_flags: <defaults>
</compile_context>

<pallas_src>
import functools

import jax
import jax.numpy as jnp
from jax import lax
from jax.experimental import pallas as pl
from jax.experimental.pallas import tpu as pltpu


N_FEATURES = 784
N_FEATURES_PAD = 896  # 7 * 128, lane-aligned
HIDDEN = (1024, 512, 256)


def _leaky_relu(x, slope=0.2):
    # max(x, slope*x) == LeakyReLU(slope) for 0 < slope < 1 (single vmax on VPU).
    return jnp.maximum(x, slope * x)


def _round_up(x, m):
    return ((x + m - 1) // m) * m


def discriminator_kernel(x_ref,
                         w0_ref, b0_ref,
                         w1_ref, b1_ref,
                         w2_ref, b2_ref,
                         w3_ref, b3_ref,
                         o_ref):
    """One batch tile: 3x (Linear + LeakyReLU) on the MXU + lane-dense out row.

    x and w0/w1/w2 are bf16 (weights VMEM-resident across grid steps);
    accumulation and all elementwise math are f32.
    """
    # hidden0: Linear(784->1024) + LeakyReLU(0.2) (+ Dropout(0.3) == identity in eval)
    h = jnp.dot(x_ref[...], w0_ref[...],
                preferred_element_type=jnp.float32) + b0_ref[...]
    h = _leaky_relu(h)

    # hidden1: Linear(1024->512) + LeakyReLU(0.2)
    h = jnp.dot(h.astype(jnp.bfloat16), w1_ref[...],
                preferred_element_type=jnp.float32) + b1_ref[...]
    h = _leaky_relu(h)

    # hidden2: Linear(512->256) + LeakyReLU(0.2)
    h = jnp.dot(h.astype(jnp.bfloat16), w2_ref[...],
                preferred_element_type=jnp.float32) + b2_ref[...]
    h = _leaky_relu(h)

    # out: Linear(256->1) + Sigmoid, computed as (1,256) . (TB,256)^T -> (1,TB)
    # so the stored block is lane-dense (no 1-lane masked column stores).
    logits = lax.dot_general(
        w3_ref[...], h, (((1,), (1,)), ((), ())),
        preferred_element_type=jnp.float32) + b3_ref[...]        # (1, TB) f32
    o_ref[0] = jax.nn.sigmoid(logits)


def prepare_params(params):
    """Cast the large weights to bf16, pad w0's contraction dim to 896, and
    reshape w3 to a (1, 256) f32 row for the in-kernel transposed dot."""
    w0 = jnp.zeros((N_FEATURES_PAD, HIDDEN[0]), jnp.bfloat16)
    w0 = w0.at[:N_FEATURES, :].set(params["w0"].astype(jnp.bfloat16))
    return {
        "w0": w0,
        "b0": params["b0"],
        "w1": params["w1"].astype(jnp.bfloat16),
        "b1": params["b1"],
        "w2": params["w2"].astype(jnp.bfloat16),
        "b2": params["b2"],
        "w3": params["w3"].reshape(1, HIDDEN[2]),  # (1, 256) f32
        "b3": params["b3"],                        # (1, 1)   f32
    }


@functools.partial(jax.jit, static_argnames=("tb",))
def discriminator_forward(x, prep, *, tb=512):
    """x: (B, 784) float32.  prep: output of prepare_params.  Returns (B, 1) f32."""
    B = x.shape[0]

    # Batch tile: 512 by default (fills the MXU M dim several times over and
    # amortizes per-step overhead); small batches round up to 16 (bf16 sublane
    # packing).  For moderately large batches, cap TB so the grid has >= 2
    # steps and v7x's second TensorCore gets work.
    b16 = _round_up(max(B, 1), 16)
    TB = min(tb, b16)
    if b16 >= 256:
        TB = min(TB, _round_up(pl.cdiv(b16, 2), 16))
    num_tiles = pl.cdiv(B, TB)
    B_pad = num_tiles * TB

    # Fused host-side pad (batch -> B_pad, features 784 -> 896) + f32->bf16 cast.
    x_pad = jnp.zeros((B_pad, N_FEATURES_PAD), jnp.bfloat16)
    x_pad = x_pad.at[:B, :N_FEATURES].set(x.astype(jnp.bfloat16))

    resident = lambda i: (0, 0)

    def resident_spec(shape):
        # Constant index_map -> block never re-DMAed; single-buffer it to save VMEM.
        return pl.BlockSpec(shape, resident, pipeline_mode=pl.Buffered(1))

    out = pl.pallas_call(
        discriminator_kernel,
        out_shape=jax.ShapeDtypeStruct((num_tiles, 1, TB), jnp.float32),
        grid=(num_tiles,),
        in_specs=[
            pl.BlockSpec((TB, N_FEATURES_PAD), lambda i: (i, 0)),   # x tile (bf16)
            resident_spec((N_FEATURES_PAD, HIDDEN[0])),             # w0 (bf16)
            resident_spec((1, HIDDEN[0])),                          # b0 (f32)
            resident_spec((HIDDEN[0], HIDDEN[1])),                  # w1 (bf16)
            resident_spec((1, HIDDEN[1])),                          # b1
            resident_spec((HIDDEN[1], HIDDEN[2])),                  # w2 (bf16)
            resident_spec((1, HIDDEN[2])),                          # b2
            resident_spec((1, HIDDEN[2])),                          # w3 row (f32)
            resident_spec((1, 1)),                                  # b3
        ],
        out_specs=pl.BlockSpec((1, 1, TB), lambda i: (i, 0, 0)),
        compiler_params=pltpu.CompilerParams(
            dimension_semantics=("parallel",),
            vmem_limit_bytes=32 << 20,
        ),
    )(
        x_pad,
        prep["w0"], prep["b0"],
        prep["w1"], prep["b1"],
        prep["w2"], prep["b2"],
        prep["w3"], prep["b3"],
    )
    # (num_tiles, 1, TB) -> (B_pad, 1); row-major flatten preserves batch order.
    return out.reshape(B_pad, 1)[:B]


def init_params(key):
    """Deterministic synthetic init matching the PyTorch layer shapes
    (Linear weight W of shape (out, in) is stored transposed as (in, out))."""
    sizes = [(N_FEATURES, 1024), (1024, 512), (512, 256), (256, 1)]
    params = {}
    for i, (fan_in, fan_out) in enumerate(sizes):
        key, kw, kb = jax.random.split(key, 3)
        bound = 1.0 / jnp.sqrt(fan_in)
        params[f"w{i}"] = jax.random.uniform(
            kw, (fan_in, fan_out), jnp.float32, -bound, bound)
        params[f"b{i}"] = jax.random.uniform(
            kb, (1, fan_out), jnp.float32, -bound, bound)
    return params


def reference_forward(x, params):
    """Pure-JAX reference matching the kernel's numerics (bf16 MXU inputs,
    f32 accumulation and elementwise math, f32 final layer)."""
    h = jnp.dot(x.astype(jnp.bfloat16), params["w0"].astype(jnp.bfloat16),
                preferred_element_type=jnp.float32) + params["b0"]
    h = _leaky_relu(h)
    h = jnp.dot(h.astype(jnp.bfloat16), params["w1"].astype(jnp.bfloat16),
                preferred_element_type=jnp.float32) + params["b1"]
    h = _leaky_relu(h)
    h = jnp.dot(h.astype(jnp.bfloat16), params["w2"].astype(jnp.bfloat16),
                preferred_element_type=jnp.float32) + params["b2"]
    h = _leaky_relu(h)
    logits = h @ params["w3"] + params["b3"]
    return jax.nn.sigmoid(logits)


if __name__ == "__main__":
    key = jax.random.PRNGKey(0)
    key, kx = jax.random.split(key)
    B = 4
    x = jax.random.normal(kx, (B, N_FEATURES), dtype=jnp.float32)

    params = init_params(key)
    prep = prepare_params(params)

    out = discriminator_forward(x, prep)
    out = jax.block_until_ready(out)

    ref = reference_forward(x, params)
    assert out.shape == (B, 1), out.shape
    assert bool(jnp.all(jnp.isfinite(out))), out
    assert jnp.allclose(out, ref, atol=2e-3, rtol=2e-3), (out, ref)

    print("KERNEL_OK")
</pallas_src>

<mosaic_0001>
module attributes {stable_mosaic.version = 11 : i64} {
  func.func @discriminator_kernel(%arg0: i32, %arg1: memref<16x896xbf16, #tpu.memory_space<vmem>>, %arg2: memref<896x1024xbf16, #tpu.memory_space<vmem>>, %arg3: memref<1x1024xf32, #tpu.memory_space<vmem>>, %arg4: memref<1024x512xbf16, #tpu.memory_space<vmem>>, %arg5: memref<1x512xf32, #tpu.memory_space<vmem>>, %arg6: memref<512x256xbf16, #tpu.memory_space<vmem>>, %arg7: memref<1x256xf32, #tpu.memory_space<vmem>>, %arg8: memref<1x256xf32, #tpu.memory_space<vmem>>, %arg9: memref<1x1xf32, #tpu.memory_space<vmem>>, %arg10: memref<1x1x16xf32, #tpu.memory_space<vmem>>) attributes {dimension_semantics = [#tpu.dimension_semantics<parallel>], iteration_bounds = array<i64: 1>, scalar_prefetch = 0 : i64, scratch_operands = 0 : i64, tpu.core_type = #tpu.core_type<tc>, window_params = [{transform_indices = @transform_0, window_bounds = array<i64: 16, 896>}, {pipeline_mode = #tpu.pipeline_mode<synchronous>, transform_indices = @transform_1, window_bounds = array<i64: 896, 1024>}, {pipeline_mode = #tpu.pipeline_mode<synchronous>, transform_indices = @transform_2, window_bounds = array<i64: 1, 1024>}, {pipeline_mode = #tpu.pipeline_mode<synchronous>, transform_indices = @transform_3, window_bounds = array<i64: 1024, 512>}, {pipeline_mode = #tpu.pipeline_mode<synchronous>, transform_indices = @transform_4, window_bounds = array<i64: 1, 512>}, {pipeline_mode = #tpu.pipeline_mode<synchronous>, transform_indices = @transform_5, window_bounds = array<i64: 512, 256>}, {pipeline_mode = #tpu.pipeline_mode<synchronous>, transform_indices = @transform_6, window_bounds = array<i64: 1, 256>}, {pipeline_mode = #tpu.pipeline_mode<synchronous>, transform_indices = @transform_7, window_bounds = array<i64: 1, 256>}, {pipeline_mode = #tpu.pipeline_mode<synchronous>, transform_indices = @transform_8, window_bounds = array<i64: 1, 1>}, {transform_indices = @transform_9, window_bounds = array<i64: 1, 1, 16>}]} {
    %c0 = arith.constant 0 : index
    %c0_0 = arith.constant 0 : index
    %0 = vector.load %arg1[%c0, %c0_0] : memref<16x896xbf16, #tpu.memory_space<vmem>>, vector<16x896xbf16>
    %c0_1 = arith.constant 0 : index
    %c0_2 = arith.constant 0 : index
    %1 = vector.load %arg2[%c0_1, %c0_2] : memref<896x1024xbf16, #tpu.memory_space<vmem>>, vector<896x1024xbf16>
    %cst = arith.constant dense<0.000000e+00> : vector<16x1024xf32>
    %2 = tpu.matmul %0, %1, %cst {dimension_numbers = #tpu.dot_dimension_numbers<[1], [0], [0], [1], [0, 0, 1, 1], [], []>} : vector<16x896xbf16>, vector<896x1024xbf16>, vector<16x1024xf32> -> vector<16x1024xf32>
    %c0_3 = arith.constant 0 : index
    %c0_4 = arith.constant 0 : index
    %3 = vector.load %arg3[%c0_3, %c0_4] : memref<1x1024xf32, #tpu.memory_space<vmem>>, vector<1x1024xf32>
    %4 = vector.broadcast %3 : vector<1x1024xf32> to vector<16x1024xf32>
    %5 = arith.addf %2, %4 : vector<16x1024xf32>
    %cst_5 = arith.constant 2.000000e-01 : f32
    %6 = vector.broadcast %cst_5 : f32 to vector<16x1024xf32>
    %7 = arith.mulf %6, %5 : vector<16x1024xf32>
    %8 = arith.maximumf %5, %7 : vector<16x1024xf32>
    %9 = arith.truncf %8 : vector<16x1024xf32> to vector<16x1024xbf16>
    %c0_6 = arith.constant 0 : index
    %c0_7 = arith.constant 0 : index
    %10 = vector.load %arg4[%c0_6, %c0_7] : memref<1024x512xbf16, #tpu.memory_space<vmem>>, vector<1024x512xbf16>
    %cst_8 = arith.constant dense<0.000000e+00> : vector<16x512xf32>
    %11 = tpu.matmul %9, %10, %cst_8 {dimension_numbers = #tpu.dot_dimension_numbers<[1], [0], [0], [1], [0, 0, 1, 1], [], []>} : vector<16x1024xbf16>, vector<1024x512xbf16>, vector<16x512xf32> -> vector<16x512xf32>
    %c0_9 = arith.constant 0 : index
    %c0_10 = arith.constant 0 : index
    %12 = vector.load %arg5[%c0_9, %c0_10] : memref<1x512xf32, #tpu.memory_space<vmem>>, vector<1x512xf32>
    %13 = vector.broadcast %12 : vector<1x512xf32> to vector<16x512xf32>
    %14 = arith.addf %11, %13 : vector<16x512xf32>
    %cst_11 = arith.constant 2.000000e-01 : f32
    %15 = vector.broadcast %cst_11 : f32 to vector<16x512xf32>
    %16 = arith.mulf %15, %14 : vector<16x512xf32>
    %17 = arith.maximumf %14, %16 : vector<16x512xf32>
    %18 = arith.truncf %17 : vector<16x512xf32> to vector<16x512xbf16>
    %c0_12 = arith.constant 0 : index
    %c0_13 = arith.constant 0 : index
    %19 = vector.load %arg6[%c0_12, %c0_13] : memref<512x256xbf16, #tpu.memory_space<vmem>>, vector<512x256xbf16>
    %cst_14 = arith.constant dense<0.000000e+00> : vector<16x256xf32>
    %20 = tpu.matmul %18, %19, %cst_14 {dimension_numbers = #tpu.dot_dimension_numbers<[1], [0], [0], [1], [0, 0, 1, 1], [], []>} : vector<16x512xbf16>, vector<512x256xbf16>, vector<16x256xf32> -> vector<16x256xf32>
    %c0_15 = arith.constant 0 : index
    %c0_16 = arith.constant 0 : index
    %21 = vector.load %arg7[%c0_15, %c0_16] : memref<1x256xf32, #tpu.memory_space<vmem>>, vector<1x256xf32>
    %22 = vector.broadcast %21 : vector<1x256xf32> to vector<16x256xf32>
    %23 = arith.addf %20, %22 : vector<16x256xf32>
    %cst_17 = arith.constant 2.000000e-01 : f32
    %24 = vector.broadcast %cst_17 : f32 to vector<16x256xf32>
    %25 = arith.mulf %24, %23 : vector<16x256xf32>
    %26 = arith.maximumf %23, %25 : vector<16x256xf32>
    %c0_18 = arith.constant 0 : index
    %c0_19 = arith.constant 0 : index
    %27 = vector.load %arg8[%c0_18, %c0_19] : memref<1x256xf32, #tpu.memory_space<vmem>>, vector<1x256xf32>
    %cst_20 = arith.constant dense<0.000000e+00> : vector<1x16xf32>
    %28 = tpu.matmul %27, %26, %cst_20 {dimension_numbers = #tpu.dot_dimension_numbers<[1], [1], [0], [0], [0, 0, 1, 0], [], []>} : vector<1x256xf32>, vector<16x256xf32>, vector<1x16xf32> -> vector<1x16xf32>
    %c0_21 = arith.constant 0 : index
    %c0_22 = arith.constant 0 : index
    %29 = vector.load %arg9[%c0_21, %c0_22] : memref<1x1xf32, #tpu.memory_space<vmem>>, vector<1x1xf32>
    %30 = vector.broadcast %29 : vector<1x1xf32> to vector<1x16xf32>
    %31 = arith.addf %28, %30 : vector<1x16xf32>
    %32 = arith.negf %31 : vector<1x16xf32>
    %33 = math.exp %32 : vector<1x16xf32>
    %cst_23 = arith.constant 1.000000e+00 : f32
    %34 = vector.broadcast %cst_23 : f32 to vector<1x16xf32>
    %35 = arith.addf %34, %33 : vector<1x16xf32>
    %36 = arith.divf %34, %35 : vector<1x16xf32>
    %c0_24 = arith.constant 0 : index
    %c0_25 = arith.constant 0 : index
    %c0_26 = arith.constant 0 : index
    %37 = vector.load %arg10[%c0_24, %c0_25, %c0_26] : memref<1x1x16xf32, #tpu.memory_space<vmem>>, vector<1x1x16xf32>
    %38 = vector.shape_cast %37 : vector<1x1x16xf32> to vector<1x16xf32>
    %39 = vector.shape_cast %36 : vector<1x16xf32> to vector<1x1x16xf32>
    tpu.vector_store %arg10[%c0_24, %c0_25, %c0_26], %39 {strides = array<i32>} : memref<1x1x16xf32, #tpu.memory_space<vmem>>, vector<1x1x16xf32>,
    return
  }
  func.func @transform_0(%arg0: i32) -> (i32, i32) {
    %c0_i32 = arith.constant 0 : i32
    %c0_i32_0 = arith.constant 0 : i32
    return %arg0, %c0_i32 : i32, i32
  }
  func.func @transform_1(%arg0: i32) -> (i32, i32) {
    %c0_i32 = arith.constant 0 : i32
    %c0_i32_0 = arith.constant 0 : i32
    %c0_i32_1 = arith.constant 0 : i32
    return %c0_i32, %c0_i32_0 : i32, i32
  }
  func.func @transform_2(%arg0: i32) -> (i32, i32) {
    %c0_i32 = arith.constant 0 : i32
    %c0_i32_0 = arith.constant 0 : i32
    %c0_i32_1 = arith.constant 0 : i32
    return %c0_i32, %c0_i32_0 : i32, i32
  }
  func.func @transform_3(%arg0: i32) -> (i32, i32) {
    %c0_i32 = arith.constant 0 : i32
    %c0_i32_0 = arith.constant 0 : i32
    %c0_i32_1 = arith.constant 0 : i32
    return %c0_i32, %c0_i32_0 : i32, i32
  }
  func.func @transform_4(%arg0: i32) -> (i32, i32) {
    %c0_i32 = arith.constant 0 : i32
    %c0_i32_0 = arith.constant 0 : i32
    %c0_i32_1 = arith.constant 0 : i32
    return %c0_i32, %c0_i32_0 : i32, i32
  }
  func.func @transform_5(%arg0: i32) -> (i32, i32) {
    %c0_i32 = arith.constant 0 : i32
    %c0_i32_0 = arith.constant 0 : i32
    %c0_i32_1 = arith.constant 0 : i32
    return %c0_i32, %c0_i32_0 : i32, i32
  }
  func.func @transform_6(%arg0: i32) -> (i32, i32) {
    %c0_i32 = arith.constant 0 : i32
    %c0_i32_0 = arith.constant 0 : i32
    %c0_i32_1 = arith.constant 0 : i32
    return %c0_i32, %c0_i32_0 : i32, i32
  }
  func.func @transform_7(%arg0: i32) -> (i32, i32) {
    %c0_i32 = arith.constant 0 : i32
    %c0_i32_0 = arith.constant 0 : i32
    %c0_i32_1 = arith.constant 0 : i32
    return %c0_i32, %c0_i32_0 : i32, i32
  }
  func.func @transform_8(%arg0: i32) -> (i32, i32) {
    %c0_i32 = arith.constant 0 : i32
    %c0_i32_0 = arith.constant 0 : i32
    %c0_i32_1 = arith.constant 0 : i32
    return %c0_i32, %c0_i32_0 : i32, i32
  }
  func.func @transform_9(%arg0: i32) -> (i32, i32, i32) {
    %c0_i32 = arith.constant 0 : i32
    %c0_i32_0 = arith.constant 0 : i32
    %c0_i32_1 = arith.constant 0 : i32
    return %arg0, %c0_i32, %c0_i32_0 : i32, i32, i32
  }
}

</mosaic_0001>

<bundles_post_ra>
// kernel: discriminator_forward.1
= control target key start
LH: loop header
LB: loop body
LE: loop exit
PB: predicated region body
PF: predicated region fallthrough
CT: control target
= control target key end

     0   :  { %s8054_s0 = inlined_call_operand.vmem [shape: bf16[16,896], index: 0, kind: input, shape index: {}]   ;;  %s8055_s1 = inlined_call_operand.hbm [shape: bf16[896,1024], index: 1, kind: input, shape index: {}]   ;;  %s8056_s2 = inlined_call_operand.hbm [shape: f32[1,1024], index: 2, kind: input, shape index: {}]   ;;  %s8057_s3 = inlined_call_operand.hbm [shape: bf16[1024,512], index: 3, kind: input, shape index: {}]   ;;  %s8058_s4 = inlined_call_operand.hbm [shape: f32[1,512], index: 4, kind: input, shape index: {}]   ;;  %s8059_s5 = inlined_call_operand.hbm [shape: bf16[512,256], index: 5, kind: input, shape index: {}]   ;;  %s8060_s6 = inlined_call_operand.hbm [shape: f32[1,256], index: 6, kind: input, shape index: {}]   ;;  %s8061_s7 = inlined_call_operand.hbm [shape: f32[1,256], index: 7, kind: input, shape index: {}]   ;;  %s8062_s8 = inlined_call_operand.<no memory space> [shape: f32[1,1], index: 8, kind: input, shape index: {}]   ;;  %s8063_s9 = inlined_call_operand.vmem [shape: f32[1,1,16], index: 9, kind: output, shape index: {}]  }
   0x1   :  { %v14_v0 = vstv %s8062_s8 }
   0x2   :  { %15 = vst [vmem:[#allocation2] sm:$0x1] %v14_v0 }
   0x3   :  { %16 = vsyncpa [#allocation4], 0 }
   0x4   :  { %17 = vsyncpa [#allocation6], 0 }
   0x5   :  { %18 = vsyncpa [#allocation9], 0 }
   0x6   :  { %19 = vsyncpa [#allocation12], 0  ;;  %s7712_s11 = smov [#allocation5]   ;;  %s7713_s13 = smov [#allocation8]  }
   0x7   :  { %s40_s12 = sshll.u32 %s7712_s11, 4  ;;  %s62_s14 = sshll.u32 %s7713_s13, 4  ;;  %s41_s12 = int_to_ptr.vmem [resolvable:$true] %s40_s12  ;;  %s63_s14 = int_to_ptr.vmem [resolvable:$true] %s62_s14 }
   0x8   :  { %s7550_s17 = scalar_lea.hbm %s8056_s2, 128 }
   0x9   :  { %p7551_p0 = scmp.ne.s32.totalorder %s8056_s2, %s7550_s17  ;;  %p7554_p1 = scmp.lt.u32.totalorder %s7550_s17, %s8056_s2 }
   0xb   :  { %p7556_p2 = pnand %p7554_p1, %p7551_p0 }
   0xd   :  { %7559 = shalt.err (!%p7556_p2)
}
   0xe   :  { %s7560_s21 = scalar_lea.vmem %s41_s12, 128  ;;  %p7565_p4 = scmp.lt.s32.totalorder %s41_s12, %s41_s12 }
   0xf   :  { %p7561_p3 = scmp.ne.s32.totalorder %s41_s12, %s7560_s21  ;;  %p7566_p5 = scmp.lt.s32.totalorder %s7560_s21, %s7560_s21 }
  0x11   :  { %p7567_p6 = por %p7566_p5, %p7565_p4 }
  0x13   :  { %p7568_p7 = pnand %p7567_p6, %p7561_p3 }
  0x15   :  { %7571 = shalt.err (!%p7568_p7)
}
  0x16   :  { %43 = dma.hbm_to_vmem [thread:$0]  %s8056_s2, 128, %s41_s12, [#allocation6]  }
  0x17   :  { %s7572_s26 = scalar_lea.hbm %s8058_s4, 64 }
  0x18   :  { %p7573_p8 = scmp.ne.s32.totalorder %s8058_s4, %s7572_s26  ;;  %p7576_p9 = scmp.lt.u32.totalorder %s7572_s26, %s8058_s4 }
  0x1a   :  { %p7578_p10 = pnand %p7576_p9, %p7573_p8 }
  0x1c   :  { %7581 = shalt.err (!%p7578_p10)
}
  0x1d   :  { %s7582_s10 = scalar_lea.vmem %s63_s14, 64  ;;  %p7587_p12 = scmp.lt.s32.totalorder %s63_s14, %s63_s14 }
  0x1e   :  { %p7583_p11 = scmp.ne.s32.totalorder %s63_s14, %s7582_s10  ;;  %p7588_p13 = scmp.lt.s32.totalorder %s7582_s10, %s7582_s10 }
  0x20   :  { %p7589_p0 = por %p7588_p13, %p7587_p12 }
  0x22   :  { %p7590_p1 = pnand %p7589_p0, %p7583_p11 }
  0x24   :  { %7593 = shalt.err (!%p7590_p1)
}
  0x25   :  { %65 = dma.hbm_to_vmem [thread:$0]  %s8058_s4, 64, %s63_s14, [#allocation9]  }
  0x26   :  { %s7714_s12 = smov [#allocation11]   ;;  %s7715_s15 = smov [#allocation3]  }
  0x27   :  { %s84_s13 = sshll.u32 %s7714_s12, 4  ;;  %s27_s16 = sshll.u32 %s7715_s15, 4  ;;  %s85_s13 = int_to_ptr.vmem [resolvable:$true] %s84_s13  ;;  %s7803_s16 = int_to_ptr.vmem [resolvable:$true] %s27_s16 }
  0x28   :  { %s7594_s19 = scalar_lea.hbm %s8060_s6, 32 }
  0x29   :  { %p7595_p2 = scmp.ne.s32.totalorder %s8060_s6, %s7594_s19  ;;  %p7598_p3 = scmp.lt.u32.totalorder %s7594_s19, %s8060_s6 }
  0x2b   :  { %p7600_p4 = pnand %p7598_p3, %p7595_p2 }
  0x2d   :  { %7603 = shalt.err (!%p7600_p4)
}
  0x2e   :  { %s7604_s4 = scalar_lea.vmem %s85_s13, 32  ;;  %p7609_p6 = scmp.lt.s32.totalorder %s85_s13, %s85_s13 }
  0x2f   :  { %p7605_p5 = scmp.ne.s32.totalorder %s85_s13, %s7604_s4  ;;  %p7610_p7 = scmp.lt.s32.totalorder %s7604_s4, %s7604_s4 }
  0x31   :  { %p7611_p8 = por %p7610_p7, %p7609_p6 }
  0x33   :  { %p7612_p9 = pnand %p7611_p8, %p7605_p5 }
  0x35   :  { %7615 = shalt.err (!%p7612_p9)
}
  0x36   :  { %87 = dma.hbm_to_vmem [thread:$0]  %s8060_s6, 32, %s85_s13, [#allocation12]  }
  0x37   :  { %s7616_s26 = scalar_lea.hbm %s8055_s1, 57344 }
  0x38   :  { %p7617_p10 = scmp.ne.s32.totalorder %s8055_s1, %s7616_s26  ;;  %p7620_p11 = scmp.lt.u32.totalorder %s7616_s26, %s8055_s1 }
  0x3a   :  { %p7622_p12 = pnand %p7620_p11, %p7617_p10 }
  0x3c   :  { %7625 = shalt.err (!%p7622_p12)
}
  0x3d   :  { %s7626_s10 = scalar_lea.vmem %s7803_s16, 57344  ;;  %p7631_p0 = scmp.lt.s32.totalorder %s7803_s16, %s7803_s16 }
  0x3e   :  { %p7627_p13 = scmp.ne.s32.totalorder %s7803_s16, %s7626_s10  ;;  %p7632_p1 = scmp.lt.s32.totalorder %s7626_s10, %s7626_s10 }
  0x40   :  { %p7633_p2 = por %p7632_p1, %p7631_p0 }
  0x42   :  { %p7634_p3 = pnand %p7633_p2, %p7627_p13 }
  0x44   :  { %7637 = shalt.err (!%p7634_p3)
}
  0x45   :  { %s7716_s6 = smov 512   ;;  %s7717_s2 = smov 32  }
  0x46   :  { %33 = dma.hbm_to_vmem [thread:$0]  %s8055_s1, 57344, %s7803_s16, [#allocation4], %s7716_s6, %s7716_s6, %s7717_s2  }
  0x47   :  { %s7718_s13 = smov [#allocation7]   ;;  %s7638_s19 = scalar_lea.hbm %s8057_s3, 32768 }
  0x48   :  { %s49_s15 = sshll.u32 %s7718_s13, 4  ;;  %p7639_p4 = scmp.ne.s32.totalorder %s8057_s3, %s7638_s19  ;;  %s50_s15 = int_to_ptr.vmem [resolvable:$true] %s49_s15 }
  0x49   :  { %p7642_p5 = scmp.lt.u32.totalorder %s7638_s19, %s8057_s3 }
  0x4b   :  { %p7644_p6 = pnand %p7642_p5, %p7639_p4 }
  0x4d   :  { %7647 = shalt.err (!%p7644_p6)
}
  0x4e   :  { %s7648_s4 = scalar_lea.vmem %s50_s15, 32768  ;;  %p7653_p8 = scmp.lt.s32.totalorder %s50_s15, %s50_s15 }
  0x4f   :  { %p7649_p7 = scmp.ne.s32.totalorder %s50_s15, %s7648_s4  ;;  %p7654_p9 = scmp.lt.s32.totalorder %s7648_s4, %s7648_s4 }
  0x51   :  { %p7655_p10 = por %p7654_p9, %p7653_p8 }
  0x53   :  { %p7656_p11 = pnand %p7655_p10, %p7649_p7 }
  0x55   :  { %7659 = shalt.err (!%p7656_p11)
}
  0x56   :  { %s7719_s1 = smov 256   ;;  %s7720_s16 = smov 16  }
  0x57   :  { %55 = dma.hbm_to_vmem [thread:$0]  %s8057_s3, 32768, %s50_s15, [#allocation6], %s7719_s1, %s7719_s1, %s7720_s16  }
  0x58   :  { %s7721_s24 = smov [#allocation10]   ;;  %s7660_s28 = scalar_lea.hbm %s8059_s5, 8192 }
  0x59   :  { %s71_s25 = sshll.u32 %s7721_s24, 4  ;;  %p7661_p12 = scmp.ne.s32.totalorder %s8059_s5, %s7660_s28  ;;  %s72_s25 = int_to_ptr.vmem [resolvable:$true] %s71_s25 }
  0x5a   :  { %p7664_p13 = scmp.lt.u32.totalorder %s7660_s28, %s8059_s5 }
  0x5c   :  { %p7666_p0 = pnand %p7664_p13, %p7661_p12 }
  0x5e   :  { %7669 = shalt.err (!%p7666_p0)
}
  0x5f   :  { %s7670_s2 = scalar_lea.vmem %s72_s25, 8192  ;;  %p7675_p2 = scmp.lt.s32.totalorder %s72_s25, %s72_s25 }
  0x60   :  { %p7671_p1 = scmp.ne.s32.totalorder %s72_s25, %s7670_s2  ;;  %p7676_p3 = scmp.lt.s32.totalorder %s7670_s2, %s7670_s2 }
  0x62   :  { %p7677_p4 = por %p7676_p3, %p7675_p2 }
  0x64   :  { %p7678_p5 = pnand %p7677_p4, %p7671_p1 }
  0x66   :  { %7681 = shalt.err (!%p7678_p5)
}
  0x67   :  { %s7722_s3 = smov 128   ;;  %s7723_s11 = smov 8  }
  0x68   :  { %77 = dma.hbm_to_vmem [thread:$0]  %s8059_s5, 8192, %s72_s25, [#allocation9], %s7722_s3, %s7722_s3, %s7723_s11  }
  0x69   :  { %s7724_s15 = smov [#allocation13]   ;;  %s7682_s8 = scalar_lea.hbm %s8061_s7, 32 }
  0x6a   :  { %s94_s17 = sshll.u32 %s7724_s15, 4  ;;  %p7683_p6 = scmp.ne.s32.totalorder %s8061_s7, %s7682_s8  ;;  %s95_s17 = int_to_ptr.vmem [resolvable:$true] %s94_s17 }
  0x6b   :  { %p7686_p7 = scmp.lt.u32.totalorder %s7682_s8, %s8061_s7 }
  0x6d   :  { %p7688_p8 = pnand %p7686_p7, %p7683_p6 }
  0x6f   :  { %7691 = shalt.err (!%p7688_p8)
}
  0x70   :  { %s7692_s1 = scalar_lea.vmem %s95_s17, 32  ;;  %p7697_p10 = scmp.lt.s32.totalorder %s95_s17, %s95_s17 }
  0x71   :  { %p7693_p9 = scmp.ne.s32.totalorder %s95_s17, %s7692_s1  ;;  %p7698_p11 = scmp.lt.s32.totalorder %s7692_s1, %s7692_s1 }
  0x73   :  { %p7699_p12 = por %p7698_p11, %p7697_p10 }
  0x75   :  { %p7700_p13 = pnand %p7699_p12, %p7693_p9 }
  0x77   :  { %7703 = shalt.err (!%p7700_p13)
}
  0x78   :  { %97 = dma.hbm_to_vmem [thread:$0]  %s8061_s7, 32, %s95_s17, [#allocation12]  }
  0x79   :  { %7704 = dma.done.wait [#allocation4], 57344  }
  0x7a   :  { %7705 = vsyncadd [#allocation4], 4294909952 }
  0x7b   :  { %7706 = dma.done.wait [#allocation6], 32896  }
  0x7c   :  { %7707 = vsyncadd [#allocation6], 4294934400 }
  0x7d   :  { %7708 = dma.done.wait [#allocation9], 8256  }
  0x7e   :  { %7709 = vsyncadd [#allocation9], 4294959040 }
  0x7f   :  { %7710 = dma.done.wait [#allocation12], 64  }
  0x80   :  { %7711 = vsyncadd [#allocation12], 4294967232  ;;  %v130_v1 = vld [vmem:[#allocation3] sm:$0xff]  ;;  %vm6134_vm0 = vcmask 122880  }
  0x81   :  { %v134_v2 = vld [vmem:[#allocation3 + $0x20] sm:$0xff] }
  0x82   :  { %v258_v3 = vld [vmem:[#allocation3 + $0x400] sm:$0xff]  ;;  %v6152_v4 = vcombine.high %v130_v1, %v134_v2  ;;  %v6151_v6 = vcombine.low %v130_v1, %v134_v2 }
  0x83   :  { %v262_v5 = vld [vmem:[#allocation3 + $0x420] sm:$0xff] }
  0x84   :  { %v138_v7 = vld [vmem:[#allocation3 + $0x40] sm:$0xff]  ;;  %v6280_v9 = vcombine.high %v258_v3, %v262_v5  ;;  %v6279_v10 = vcombine.low %v258_v3, %v262_v5  ;;  %2896 = vmatprep.subr.bf16.mxu1 %v6152_v4 }
  0x85   :  { %v142_v8 = vld [vmem:[#allocation3 + $0x60] sm:$0xff]  ;;  %2897 = vmatpush1.bf16.msra.mxu1 %v6151_v6 }
  0x86   :  { %v6160_v11 = vcombine.high %v138_v7, %v142_v8  ;;  %v266_v12 = vld [vmem:[#allocation3 + $0x440] sm:$0xff]  ;;  %2939 = vmatprep.subr.bf16.mxu0 %v6280_v9  ;;  %v6159_v19 = vcombine.low %v138_v7, %v142_v8 }
  0x87   :  { %v270_v13 = vld [vmem:[#allocation3 + $0x460] sm:$0xff]  ;;  %2940 = vmatpush1.bf16.msra.mxu0 %v6279_v10 }
  0x88   :  { %v146_v14 = vld [vmem:[#allocation3 + $0x80] sm:$0xff]  ;;  %v6288_v15 = vcombine.high %v266_v12, %v270_v13  ;;  %2898 = vmatprep.subr.bf16.mxu1 %v6160_v11  ;;  %v6287_v20 = vcombine.low %v266_v12, %v270_v13 }
  0x89   :  { %v150_v16 = vld [vmem:[#allocation3 + $0xa0] sm:$0xff]  ;;  %2899 = vmatpush1.bf16.msra.mxu1 %v6159_v19 }
  0x8a   :  { %v274_v17 = vld [vmem:[#allocation3 + $0x480] sm:$0xff]  ;;  %v6168_v21 = vcombine.high %v146_v14, %v150_v16  ;;  %2941 = vmatprep.subr.bf16.mxu0 %v6288_v15  ;;  %v6167_v27 = vcombine.low %v146_v14, %v150_v16 }
  0x8b   :  { %v278_v18 = vld [vmem:[#allocation3 + $0x4a0] sm:$0xff]  ;;  %2942 = vmatpush1.bf16.msra.mxu0 %v6287_v20 }
  0x8c   :  { %v6296_v22 = vcombine.high %v274_v17, %v278_v18  ;;  %v154_v23 = vld [vmem:[#allocation3 + $0xc0] sm:$0xff]  ;;  %2900 = vmatprep.subr.bf16.mxu1 %v6168_v21  ;;  %v6295_v28 = vcombine.low %v274_v17, %v278_v18  ;;  %v7725_v21 = vmov 0  }
  0x8d   :  { %v158_v24 = vld [vmem:[#allocation3 + $0xe0] sm:$0xff]  ;;  %2901 = vmatpush1.bf16.msra.mxu1 %v6167_v27  ;;  %7042 = vset.pattern.permute.xlu0 %v7725_v21 }
  0x8e   :  { %v282_v25 = vld [vmem:[#allocation3 + $0x4c0] sm:$0xff]  ;;  %v6176_v29 = vcombine.high %v154_v23, %v158_v24  ;;  %2943 = vmatprep.subr.bf16.mxu0 %v6296_v22  ;;  %v6175_v35 = vcombine.low %v154_v23, %v158_v24 }
  0x8f   :  { %v286_v26 = vld [vmem:[#allocation3 + $0x4e0] sm:$0xff]  ;;  %2944 = vmatpush1.bf16.msra.mxu0 %v6295_v28 }
  0x90   :  { %v6304_v30 = vcombine.high %v282_v25, %v286_v26  ;;  %v162_v31 = vld [vmem:[#allocation3 + $0x100] sm:$0xff]  ;;  %2902 = vmatprep.subr.bf16.mxu1 %v6176_v29  ;;  %v6303_v36 = vcombine.low %v282_v25, %v286_v26 }
  0x91   :  { %v166_v32 = vld [vmem:[#allocation3 + $0x120] sm:$0xff]  ;;  %2903 = vmatpush1.bf16.msra.mxu1 %v6175_v35 }
  0x92   :  { %v290_v33 = vld [vmem:[#allocation3 + $0x500] sm:$0xff]  ;;  %v6184_v37 = vcombine.high %v162_v31, %v166_v32  ;;  %2945 = vmatprep.subr.bf16.mxu0 %v6304_v30  ;;  %v6183_v43 = vcombine.low %v162_v31, %v166_v32 }
  0x93   :  { %v294_v34 = vld [vmem:[#allocation3 + $0x520] sm:$0xff]  ;;  %2946 = vmatpush1.bf16.msra.mxu0 %v6303_v36 }
  0x94   :  { %v6312_v38 = vcombine.high %v290_v33, %v294_v34  ;;  %v170_v39 = vld [vmem:[#allocation3 + $0x140] sm:$0xff]  ;;  %2904 = vmatprep.subr.bf16.mxu1 %v6184_v37  ;;  %v6311_v44 = vcombine.low %v290_v33, %v294_v34 }
  0x95   :  { %v174_v40 = vld [vmem:[#allocation3 + $0x160] sm:$0xff]  ;;  %2905 = vmatpush1.bf16.msra.mxu1 %v6183_v43 }
  0x96   :  { %v298_v41 = vld [vmem:[#allocation3 + $0x540] sm:$0xff]  ;;  %v6192_v45 = vcombine.high %v170_v39, %v174_v40  ;;  %2947 = vmatprep.subr.bf16.mxu0 %v6312_v38  ;;  %v6191_v51 = vcombine.low %v170_v39, %v174_v40 }
  0x97   :  { %v302_v42 = vld [vmem:[#allocation3 + $0x560] sm:$0xff]  ;;  %2948 = vmatpush1.bf16.msra.mxu0 %v6311_v44 }
  0x98   :  { %v6320_v46 = vcombine.high %v298_v41, %v302_v42  ;;  %v178_v47 = vld [vmem:[#allocation3 + $0x180] sm:$0xff]  ;;  %2906 = vmatprep.subr.bf16.mxu1 %v6192_v45  ;;  %v6319_v53 = vcombine.low %v298_v41, %v302_v42 }
  0x99   :  { %v182_v48 = vld [vmem:[#allocation3 + $0x1a0] sm:$0xff]  ;;  %2907 = vmatpush1.bf16.msra.mxu1 %v6191_v51 }
  0x9a   :  { %v306_v49 = vld [vmem:[#allocation3 + $0x580] sm:$0xff]  ;;  %v6200_v54 = vcombine.high %v178_v47, %v182_v48  ;;  %2949 = vmatprep.subr.bf16.mxu0 %v6320_v46  ;;  %v6199_v61 = vcombine.low %v178_v47, %v182_v48 }
  0x9b   :  { %v310_v50 = vld [vmem:[#allocation3 + $0x5a0] sm:$0xff]  ;;  %2950 = vmatpush1.bf16.msra.mxu0 %v6319_v53 }
  0x9c   :  { %v186_v52 = vld [vmem:[#allocation3 + $0x1c0] sm:$0xff]  ;;  %v6328_v56 = vcombine.high %v306_v49, %v310_v50  ;;  %2908 = vmatprep.subr.bf16.mxu1 %v6200_v54  ;;  %v6327_v62 = vcombine.low %v306_v49, %v310_v50 }
  0x9d   :  { %v190_v55 = vld [vmem:[#allocation3 + $0x1e0] sm:$0xff]  ;;  %2909 = vmatpush1.bf16.msra.mxu1 %v6199_v61 }
  0x9e   :  { %v314_v57 = vld [vmem:[#allocation3 + $0x5c0] sm:$0xff]  ;;  %v6208_v63 = vcombine.high %v186_v52, %v190_v55  ;;  %2951 = vmatprep.subr.bf16.mxu0 %v6328_v56  ;;  %v6207_v5 = vcombine.low %v186_v52, %v190_v55 }
  0x9f   :  { %v7873_v58 = vld [vmem:[%s8054_s0 + $0x4] ss:$28 sps:$4 sm:$0xff]   ;;  %v7878_v60 = vld [vmem:[%s8054_s0 + $0xc] ss:$28 sps:$4 sm:$0xff]   ;;  %2952 = vmatpush1.bf16.msra.mxu0 %v6327_v62 }
  0xa0   :  { %v318_v59 = vld [vmem:[#allocation3 + $0x5e0] sm:$0xff]  ;;  %2928 = vmatprep.mubr.bf16.mxu1 %v7873_v58  ;;  %2971 = vmatprep.mubr.bf16.mxu0 %v7878_v60 }
  0xa1   :  { %v6336_v0 = vcombine.high %v314_v57, %v318_v59  ;;  %v194_v1 = vld [vmem:[#allocation3 + $0x200] sm:$0xff]  ;;  %2910 = vmatprep.subr.bf16.mxu1 %v6208_v63  ;;  %v6335_v6 = vcombine.low %v314_v57, %v318_v59 }
  0xa2   :  { %v198_v2 = vld [vmem:[#allocation3 + $0x220] sm:$0xff]  ;;  %2911 = vmatpush1.bf16.msra.mxu1 %v6207_v5  ;;  %v135_v5 = vld [vmem:[#allocation3 + $0x28] sm:$0xff] }
  0xa3   :  { %v322_v3 = vld [vmem:[#allocation3 + $0x600] sm:$0xff]  ;;  %v6216_v7 = vcombine.high %v194_v1, %v198_v2  ;;  %2953 = vmatprep.subr.bf16.mxu0 %v6336_v0  ;;  %v6215_v13 = vcombine.low %v194_v1, %v198_v2 }
  0xa4   :  { %v326_v4 = vld [vmem:[#allocation3 + $0x620] sm:$0xff]  ;;  %2954 = vmatpush1.bf16.msra.mxu0 %v6335_v6 }
  0xa5   :  { %v6344_v8 = vcombine.high %v322_v3, %v326_v4  ;;  %v202_v9 = vld [vmem:[#allocation3 + $0x240] sm:$0xff]  ;;  %2912 = vmatprep.subr.bf16.mxu1 %v6216_v7  ;;  %v6343_v14 = vcombine.low %v322_v3, %v326_v4  ;;  %v131_v4 = vld [vmem:[#allocation3 + $0x8] sm:$0xff] }
  0xa6   :  { %v206_v10 = vld [vmem:[#allocation3 + $0x260] sm:$0xff]  ;;  %2913 = vmatpush1.bf16.msra.mxu1 %v6215_v13  ;;  %v143_v13 = vld [vmem:[#allocation3 + $0x68] sm:$0xff] }
  0xa7   :  { %v330_v11 = vld [vmem:[#allocation3 + $0x640] sm:$0xff]  ;;  %v6224_v15 = vcombine.high %v202_v9, %v206_v10  ;;  %2955 = vmatprep.subr.bf16.mxu0 %v6344_v8  ;;  %v6223_v22 = vcombine.low %v202_v9, %v206_v10  ;;  %v6154_v10 = vcombine.high %v131_v4, %v135_v5 }
  0xa8   :  { %v334_v12 = vld [vmem:[#allocation3 + $0x660] sm:$0xff]  ;;  %2956 = vmatpush1.bf16.msra.mxu0 %v6343_v14 }
  0xa9   :  { %v6352_v16 = vcombine.high %v330_v11, %v334_v12  ;;  %v210_v17 = vld [vmem:[#allocation3 + $0x280] sm:$0xff]  ;;  %2914 = vmatprep.subr.bf16.mxu1 %v6224_v15  ;;  %v6351_v23 = vcombine.low %v330_v11, %v334_v12  ;;  %v139_v12 = vld [vmem:[#allocation3 + $0x48] sm:$0xff] }
  0xaa   :  { %v214_v18 = vld [vmem:[#allocation3 + $0x2a0] sm:$0xff]  ;;  %2915 = vmatpush1.bf16.msra.mxu1 %v6223_v22 }
  0xab   :  { %v338_v19 = vld [vmem:[#allocation3 + $0x680] sm:$0xff]  ;;  %v6232_v24 = vcombine.high %v210_v17, %v214_v18  ;;  %2957 = vmatprep.subr.bf16.mxu0 %v6352_v16  ;;  %v6231_v30 = vcombine.low %v210_v17, %v214_v18  ;;  %v6153_v17 = vcombine.low %v131_v4, %v135_v5  ;;  %v191_v4 = vld [vmem:[#allocation3 + $0x1e8] sm:$0xff] }
  0xac   :  { %v342_v20 = vld [vmem:[#allocation3 + $0x6a0] sm:$0xff]  ;;  %2958 = vmatpush1.bf16.msra.mxu0 %v6351_v23  ;;  %v147_v23 = vld [vmem:[#allocation3 + $0x88] sm:$0xff] }
  0xad   :  { %v6360_v25 = vcombine.high %v338_v19, %v342_v20  ;;  %v218_v26 = vld [vmem:[#allocation3 + $0x2c0] sm:$0xff]  ;;  %2916 = vmatprep.subr.bf16.mxu1 %v6232_v24  ;;  %v6359_v31 = vcombine.low %v338_v19, %v342_v20  ;;  %v6162_v20 = vcombine.high %v139_v12, %v143_v13  ;;  %v151_v24 = vld [vmem:[#allocation3 + $0xa8] sm:$0xff] }
  0xae   :  { %v222_v27 = vld [vmem:[#allocation3 + $0x2e0] sm:$0xff]  ;;  %2917 = vmatpush1.bf16.msra.mxu1 %v6231_v30  ;;  %v6170_v30 = vcombine.high %v147_v23, %v151_v24 }
  0xaf   :  { %v346_v28 = vld [vmem:[#allocation3 + $0x6c0] sm:$0xff]  ;;  %v6240_v32 = vcombine.high %v218_v26, %v222_v27  ;;  %2959 = vmatprep.subr.bf16.mxu0 %v6360_v25  ;;  %v6239_v38 = vcombine.low %v218_v26, %v222_v27  ;;  %v7049_v25 = vld [vmem:[%s8054_s0 + $0x14] ss:$28 sps:$4 sm:$0xff]  }
  0xb0   :  { %v350_v29 = vld [vmem:[#allocation3 + $0x6e0] sm:$0xff]  ;;  %2960 = vmatpush1.bf16.msra.mxu0 %v6359_v31 }
  0xb1   :  { %v6368_v33 = vcombine.high %v346_v28, %v350_v29  ;;  %v226_v34 = vld [vmem:[#allocation3 + $0x300] sm:$0xff]  ;;  %2918 = vmatprep.subr.bf16.mxu1 %v6240_v32  ;;  %v6367_v39 = vcombine.low %v346_v28, %v350_v29  ;;  %v6161_v28 = vcombine.low %v139_v12, %v143_v13  ;;  %v155_v32 = vld [vmem:[#allocation3 + $0xc8] sm:$0xff] }
  0xb2   :  { %v230_v35 = vld [vmem:[#allocation3 + $0x320] sm:$0xff]  ;;  %2919 = vmatpush1.bf16.msra.mxu1 %v6239_v38  ;;  %v199_v12 = vld [vmem:[#allocation3 + $0x228] sm:$0xff] }
  0xb3   :  { %v354_v36 = vld [vmem:[#allocation3 + $0x700] sm:$0xff]  ;;  %v6248_v40 = vcombine.high %v226_v34, %v230_v35  ;;  %2961 = vmatprep.subr.bf16.mxu0 %v6368_v33  ;;  %v6247_v46 = vcombine.low %v226_v34, %v230_v35  ;;  %v159_v33 = vld [vmem:[#allocation3 + $0xe8] sm:$0xff] }
  0xb4   :  { %v358_v37 = vld [vmem:[#allocation3 + $0x720] sm:$0xff]  ;;  %2962 = vmatpush1.bf16.msra.mxu0 %v6367_v39  ;;  %v6178_v38 = vcombine.high %v155_v32, %v159_v33 }
  0xb5   :  { %v6376_v41 = vcombine.high %v354_v36, %v358_v37  ;;  %v234_v42 = vld [vmem:[#allocation3 + $0x340] sm:$0xff]  ;;  %2920 = vmatprep.subr.bf16.mxu1 %v6248_v40  ;;  %v6375_v47 = vcombine.low %v354_v36, %v358_v37  ;;  %v6169_v36 = vcombine.low %v147_v23, %v151_v24 }
  0xb6   :  { %v238_v43 = vld [vmem:[#allocation3 + $0x360] sm:$0xff]  ;;  %2921 = vmatpush1.bf16.msra.mxu1 %v6247_v46 }
  0xb7   :  { %v362_v44 = vld [vmem:[#allocation3 + $0x740] sm:$0xff]  ;;  %v6256_v48 = vcombine.high %v234_v42, %v238_v43  ;;  %2963 = vmatprep.subr.bf16.mxu0 %v6376_v41  ;;  %v6255_v54 = vcombine.low %v234_v42, %v238_v43  ;;  %v163_v41 = vld [vmem:[#allocation3 + $0x108] sm:$0xff] }
  0xb8   :  { %v366_v45 = vld [vmem:[#allocation3 + $0x760] sm:$0xff]  ;;  %2964 = vmatpush1.bf16.msra.mxu0 %v6375_v47  ;;  %v167_v43 = vld [vmem:[#allocation3 + $0x128] sm:$0xff] }
  0xb9   :  { %v6384_v49 = vcombine.high %v362_v44, %v366_v45  ;;  %v242_v50 = vld [vmem:[#allocation3 + $0x380] sm:$0xff]  ;;  %2922 = vmatprep.subr.bf16.mxu1 %v6256_v48  ;;  %v6383_v55 = vcombine.low %v362_v44, %v366_v45  ;;  %v6177_v44 = vcombine.low %v155_v32, %v159_v33  ;;  %v6186_v46 = vcombine.high %v163_v41, %v167_v43  ;;  %v171_v48 = vld [vmem:[#allocation3 + $0x148] sm:$0xff] }
  0xba   :  { %v246_v51 = vld [vmem:[#allocation3 + $0x3a0] sm:$0xff]  ;;  %2923 = vmatpush1.bf16.msra.mxu1 %v6255_v54 }
  0xbb   :  { %v370_v52 = vld [vmem:[#allocation3 + $0x780] sm:$0xff]  ;;  %v6264_v56 = vcombine.high %v242_v50, %v246_v51  ;;  %2965 = vmatprep.subr.bf16.mxu0 %v6384_v49  ;;  %v6263_v0 = vcombine.low %v242_v50, %v246_v51  ;;  %v175_v50 = vld [vmem:[#allocation3 + $0x168] sm:$0xff]  ;;  %v6185_v51 = vcombine.low %v163_v41, %v167_v43 }
  0xbc   :  { %v374_v53 = vld [vmem:[#allocation3 + $0x7a0] sm:$0xff]  ;;  %2966 = vmatpush1.bf16.msra.mxu0 %v6383_v55 }
  0xbd   :  { %v6392_v57 = vcombine.high %v370_v52, %v374_v53  ;;  %v250_v59 = vld [vmem:[#allocation3 + $0x3c0] sm:$0xff]  ;;  %2924 = vmatprep.subr.bf16.mxu1 %v6264_v56  ;;  %v6391_v1 = vcombine.low %v370_v52, %v374_v53  ;;  %v6194_v53 = vcombine.high %v171_v48, %v175_v50  ;;  %v179_v56 = vld [vmem:[#allocation3 + $0x188] sm:$0xff] }
  0xbe   :  { %v254_v61 = vld [vmem:[#allocation3 + $0x3e0] sm:$0xff]  ;;  %2925 = vmatpush1.bf16.msra.mxu1 %v6263_v0 }
  0xbf   :  { %v378_v62 = vld [vmem:[#allocation3 + $0x7c0] sm:$0xff]  ;;  %v6272_v2 = vcombine.high %v250_v59, %v254_v61  ;;  %2967 = vmatprep.subr.bf16.mxu0 %v6392_v57  ;;  %v6271_v8 = vcombine.low %v250_v59, %v254_v61  ;;  %v183_v59 = vld [vmem:[#allocation3 + $0x1a8] sm:$0xff]  ;;  %v6193_v61 = vcombine.low %v171_v48, %v175_v50 }
  0xc0   :  { %v382_v63 = vld [vmem:[#allocation3 + $0x7e0] sm:$0xff]  ;;  %2968 = vmatpush1.bf16.msra.mxu0 %v6391_v1  ;;  %v6201_v5 = vcombine.low %v179_v56, %v183_v59 }
  0xc1   :  { %v6400_v3 = vcombine.high %v378_v62, %v382_v63  ;;  %v386_v6 = vld [vmem:[#allocation3 + $0x800] sm:$0xff]  ;;  %2926 = vmatprep.subr.bf16.mxu1 %v6272_v2  ;;  %v6399_v9 = vcombine.low %v378_v62, %v382_v63  ;;  %v6202_v63 = vcombine.high %v179_v56, %v183_v59  ;;  %v187_v2 = vld [vmem:[#allocation3 + $0x1c8] sm:$0xff] }
  0xc2   :  { %v390_v7 = vld [vmem:[#allocation3 + $0x820] sm:$0xff]  ;;  %2927 = vmatpush1.bf16.msra.mxu1 %v6271_v8  ;;  %v6209_v13 = vcombine.low %v187_v2, %v191_v4 }
  0xc3   :  { %2969 = vmatprep.subr.bf16.mxu0 %v6400_v3  ;;  %v6408_v11 = vcombine.high %v386_v6, %v390_v7  ;;  %v7886_v14 = vld [vmem:[%s8054_s0] ss:$28 sps:$4 sm:$0xff]   ;;  %v7048_v18 = vld [vmem:[%s8054_s0 + $0x8] ss:$28 sps:$4 sm:$0xff]   ;;  %v6407_v19 = vcombine.low %v386_v6, %v390_v7  ;;  %3068 = vmatprep.subr.bf16.mxu1 %v6154_v10  ;;  %v6210_v7 = vcombine.high %v187_v2, %v191_v4 }
  0xc4   :  { %v394_v15 = vld [vmem:[#allocation3 + $0x840] sm:$0xff]  ;;  %2970 = vmatpush1.bf16.msra.mxu0 %v6399_v9  ;;  %v195_v10 = vld [vmem:[#allocation3 + $0x208] sm:$0xff] }
  0xc5   :  { %v398_v16 = vld [vmem:[#allocation3 + $0x860] sm:$0xff]  ;;  %2982 = vmatprep.subr.bf16.mxu0 %v6408_v11  ;;  %2929 = vmatmul.mubr.bf16.vlgmr.msra.gmra.mrb[0].mxu1 %v7886_v14  ;;  %v6217_v23 = vcombine.low %v195_v10, %v199_v12 }
  0xc6   :  { %v6416_v22 = vcombine.high %v394_v15, %v398_v16  ;;  %v402_v26 = vld [vmem:[#allocation3 + $0x880] sm:$0xff]  ;;  %3069 = vmatpush1.bf16.msra.mxu1 %v6153_v17  ;;  %v6415_v29 = vcombine.low %v394_v15, %v398_v16  ;;  %3100 = vmatprep.mubr.bf16.mxu1 %v7873_v58  ;;  %v6218_v16 = vcombine.high %v195_v10, %v199_v12 }
  0xc7   :  { %v406_v27 = vld [vmem:[#allocation3 + $0x8a0] sm:$0xff]  ;;  %2972 = vmatmul.mubr.bf16.vlgmr.msra.gmra.mrb[0].mxu0 %v7048_v18  ;;  %3070 = vmatprep.subr.bf16.mxu1 %v6162_v20 }
  0xc8   :  { %2983 = vmatpush1.bf16.msra.mxu0 %v6407_v19  ;;  %v6424_v31 = vcombine.high %v402_v26, %v406_v27  ;;  %3014 = vmatprep.mubr.bf16.mxu0 %v7049_v25  ;;  %v410_v34 = vld [vmem:[#allocation3 + $0x8c0] sm:$0xff]  ;;  %v6423_v37 = vcombine.low %v402_v26, %v406_v27  ;;  %v203_v19 = vld [vmem:[#allocation3 + $0x248] sm:$0xff] }
  0xc9   :  { %2984 = vmatprep.subr.bf16.mxu0 %v6416_v22  ;;  %v414_v35 = vld [vmem:[#allocation3 + $0x8e0] sm:$0xff]  ;;  %v207_v22 = vld [vmem:[#allocation3 + $0x268] sm:$0xff] }
  0xca   :  { %3071 = vmatpush1.bf16.msra.mxu1 %v6161_v28  ;;  %v418_v39 = vld [vmem:[#allocation3 + $0x900] sm:$0xff]  ;;  %v6432_v42 = vcombine.high %v410_v34, %v414_v35  ;;  %v6431_v45 = vcombine.low %v410_v34, %v414_v35  ;;  %v6226_v25 = vcombine.high %v203_v19, %v207_v22  ;;  %v211_v28 = vld [vmem:[#allocation3 + $0x288] sm:$0xff] }
  0xcb   :  { %3072 = vmatprep.subr.bf16.mxu1 %v6170_v30  ;;  %v422_v40 = vld [vmem:[#allocation3 + $0x920] sm:$0xff]  ;;  %v215_v30 = vld [vmem:[#allocation3 + $0x2a8] sm:$0xff] }
  0xcc   :  { %2985 = vmatpush1.bf16.msra.mxu0 %v6415_v29  ;;  %v426_v47 = vld [vmem:[#allocation3 + $0x940] sm:$0xff]  ;;  %v6440_v49 = vcombine.high %v418_v39, %v422_v40  ;;  %v6439_v52 = vcombine.low %v418_v39, %v422_v40  ;;  %v6234_v33 = vcombine.high %v211_v28, %v215_v30  ;;  %v6233_v39 = vcombine.low %v211_v28, %v215_v30 }
  0xcd   :  { %2986 = vmatprep.subr.bf16.mxu0 %v6424_v31  ;;  %v430_v58 = vld [vmem:[#allocation3 + $0x960] sm:$0xff]  ;;  %v6225_v31 = vcombine.low %v203_v19, %v207_v22 }
  0xce   :  { %3073 = vmatpush1.bf16.msra.mxu1 %v6169_v36  ;;  %v434_v54 = vld [vmem:[#allocation3 + $0x980] sm:$0xff]  ;;  %v6448_v57 = vcombine.high %v426_v47, %v430_v58  ;;  %v6447_v62 = vcombine.low %v426_v47, %v430_v58  ;;  %v219_v36 = vld [vmem:[#allocation3 + $0x2c8] sm:$0xff] }
  0xcf   :  { %3074 = vmatprep.subr.bf16.mxu1 %v6178_v38  ;;  %v438_v55 = vld [vmem:[#allocation3 + $0x9a0] sm:$0xff]  ;;  %v223_v38 = vld [vmem:[#allocation3 + $0x2e8] sm:$0xff] }
  0xd0   :  { %2987 = vmatpush1.bf16.msra.mxu0 %v6423_v37  ;;  %v442_v0 = vld [vmem:[#allocation3 + $0x9c0] sm:$0xff]  ;;  %v6456_v3 = vcombine.high %v434_v54, %v438_v55  ;;  %v6455_v6 = vcombine.low %v434_v54, %v438_v55  ;;  %v6242_v41 = vcombine.high %v219_v36, %v223_v38  ;;  %v6241_v47 = vcombine.low %v219_v36, %v223_v38 }
  0xd1   :  { %2988 = vmatprep.subr.bf16.mxu0 %v6432_v42  ;;  %v446_v1 = vld [vmem:[#allocation3 + $0x9e0] sm:$0xff] }
  0xd2   :  { %3075 = vmatpush1.bf16.msra.mxu1 %v6177_v44  ;;  %v450_v8 = vld [vmem:[#allocation3 + $0xa00] sm:$0xff]  ;;  %v6464_v11 = vcombine.high %v442_v0, %v446_v1  ;;  %v6463_v15 = vcombine.low %v442_v0, %v446_v1  ;;  %v227_v44 = vld [vmem:[#allocation3 + $0x308] sm:$0xff] }
  0xd3   :  { %3076 = vmatprep.subr.bf16.mxu1 %v6186_v46  ;;  %v454_v9 = vld [vmem:[#allocation3 + $0xa20] sm:$0xff]  ;;  %v231_v46 = vld [vmem:[#allocation3 + $0x328] sm:$0xff] }
  0xd4   :  { %2989 = vmatpush1.bf16.msra.mxu0 %v6431_v45  ;;  %v458_v17 = vld [vmem:[#allocation3 + $0xa40] sm:$0xff]  ;;  %v6472_v20 = vcombine.high %v450_v8, %v454_v9  ;;  %v6471_v24 = vcombine.low %v450_v8, %v454_v9  ;;  %v6250_v48 = vcombine.high %v227_v44, %v231_v46  ;;  %v6249_v54 = vcombine.low %v227_v44, %v231_v46 }
  0xd5   :  { %2990 = vmatprep.subr.bf16.mxu0 %v6440_v49  ;;  %v462_v18 = vld [vmem:[#allocation3 + $0xa60] sm:$0xff] }
  0xd6   :  { %3077 = vmatpush1.bf16.msra.mxu1 %v6185_v51  ;;  %v466_v26 = vld [vmem:[#allocation3 + $0xa80] sm:$0xff]  ;;  %v6480_v29 = vcombine.high %v458_v17, %v462_v18  ;;  %v6479_v32 = vcombine.low %v458_v17, %v462_v18  ;;  %v235_v51 = vld [vmem:[#allocation3 + $0x348] sm:$0xff] }
  0xd7   :  { %3078 = vmatprep.subr.bf16.mxu1 %v6194_v53  ;;  %v470_v27 = vld [vmem:[#allocation3 + $0xaa0] sm:$0xff]  ;;  %v239_v53 = vld [vmem:[#allocation3 + $0x368] sm:$0xff] }
  0xd8   :  { %2991 = vmatpush1.bf16.msra.mxu0 %v6439_v52  ;;  %v474_v34 = vld [vmem:[#allocation3 + $0xac0] sm:$0xff]  ;;  %v6488_v37 = vcombine.high %v466_v26, %v470_v27  ;;  %v6487_v40 = vcombine.low %v466_v26, %v470_v27  ;;  %v6258_v56 = vcombine.high %v235_v51, %v239_v53  ;;  %v6257_v0 = vcombine.low %v235_v51, %v239_v53  ;;  %v271_v26 = vld [vmem:[#allocation3 + $0x468] sm:$0xff] }
  0xd9   :  { %2992 = vmatprep.subr.bf16.mxu0 %v6448_v57  ;;  %v478_v35 = vld [vmem:[#allocation3 + $0xae0] sm:$0xff]  ;;  %v299_v53 = vld [vmem:[#allocation3 + $0x548] sm:$0xff] }
  0xda   :  { %3079 = vmatpush1.bf16.msra.mxu1 %v6193_v61  ;;  %v482_v42 = vld [vmem:[#allocation3 + $0xb00] sm:$0xff]  ;;  %v6496_v45 = vcombine.high %v474_v34, %v478_v35  ;;  %v6495_v58 = vcombine.low %v474_v34, %v478_v35  ;;  %v243_v61 = vld [vmem:[#allocation3 + $0x388] sm:$0xff] }
  0xdb   :  { %3080 = vmatprep.subr.bf16.mxu1 %v6202_v63  ;;  %v486_v43 = vld [vmem:[#allocation3 + $0xb20] sm:$0xff]  ;;  %v247_v63 = vld [vmem:[#allocation3 + $0x3a8] sm:$0xff] }
  0xdc   :  { %2993 = vmatpush1.bf16.msra.mxu0 %v6447_v62  ;;  %v490_v49 = vld [vmem:[#allocation3 + $0xb40] sm:$0xff]  ;;  %v6504_v52 = vcombine.high %v482_v42, %v486_v43  ;;  %v6503_v55 = vcombine.low %v482_v42, %v486_v43  ;;  %v6266_v2 = vcombine.high %v243_v61, %v247_v63  ;;  %v6265_v8 = vcombine.low %v243_v61, %v247_v63  ;;  %v279_v34 = vld [vmem:[#allocation3 + $0x4a8] sm:$0xff] }
  0xdd   :  { %2994 = vmatprep.subr.bf16.mxu0 %v6456_v3  ;;  %v494_v50 = vld [vmem:[#allocation3 + $0xb60] sm:$0xff]  ;;  %v287_v42 = vld [vmem:[#allocation3 + $0x4e8] sm:$0xff] }
  0xde   :  { %3081 = vmatpush1.bf16.msra.mxu1 %v6201_v5  ;;  %v498_v57 = vld [vmem:[#allocation3 + $0xb80] sm:$0xff]  ;;  %v6512_v62 = vcombine.high %v490_v49, %v494_v50  ;;  %v6511_v1 = vcombine.low %v490_v49, %v494_v50  ;;  %v251_v5 = vld [vmem:[#allocation3 + $0x3c8] sm:$0xff] }
  0xdf   :  { %3082 = vmatprep.subr.bf16.mxu1 %v6210_v7  ;;  %v502_v59 = vld [vmem:[#allocation3 + $0xba0] sm:$0xff]  ;;  %v255_v7 = vld [vmem:[#allocation3 + $0x3e8] sm:$0xff] }
  0xe0   :  { %2995 = vmatpush1.bf16.msra.mxu0 %v6455_v6  ;;  %v506_v3 = vld [vmem:[#allocation3 + $0xbc0] sm:$0xff]  ;;  %v6520_v6 = vcombine.high %v498_v57, %v502_v59  ;;  %v6519_v9 = vcombine.low %v498_v57, %v502_v59  ;;  %v6274_v10 = vcombine.high %v251_v5, %v255_v7  ;;  %v6273_v17 = vcombine.low %v251_v5, %v255_v7  ;;  %v307_v63 = vld [vmem:[#allocation3 + $0x588] sm:$0xff] }
  0xe1   :  { %2996 = vmatprep.subr.bf16.mxu0 %v6464_v11  ;;  %v510_v4 = vld [vmem:[#allocation3 + $0xbe0] sm:$0xff] }
  0xe2   :  { %3083 = vmatpush1.bf16.msra.mxu1 %v6209_v13  ;;  %v514_v11 = vld [vmem:[#allocation3 + $0xc00] sm:$0xff]  ;;  %v259_v13 = vld [vmem:[#allocation3 + $0x408] sm:$0xff]  ;;  %v6527_v18 = vcombine.low %v506_v3, %v510_v4 }
  0xe3   :  { %3084 = vmatprep.subr.bf16.mxu1 %v6218_v16  ;;  %v518_v12 = vld [vmem:[#allocation3 + $0xc20] sm:$0xff]  ;;  %v263_v16 = vld [vmem:[#allocation3 + $0x428] sm:$0xff] }
  0xe4   :  { %2997 = vmatpush1.bf16.msra.mxu0 %v6463_v15  ;;  %v6528_v15 = vcombine.high %v506_v3, %v510_v4  ;;  %v6282_v19 = vcombine.high %v259_v13, %v263_v16  ;;  %v526_v22 = vld [vmem:[#allocation3 + $0xc60] sm:$0xff]  ;;  %v6281_v27 = vcombine.low %v259_v13, %v263_v16  ;;  %v6535_v28 = vcombine.low %v514_v11, %v518_v12  ;;  %v323_v13 = vld [vmem:[#allocation3 + $0x608] sm:$0xff]  ;;  %v132_v16 = vld [vmem:[#allocation3 + $0x10] sm:$0xff] }
  0xe5   :  { %2998 = vmatprep.subr.bf16.mxu0 %v6472_v20  ;;  %v522_v20 = vld [vmem:[#allocation3 + $0xc40] sm:$0xff] }
  0xe6   :  { %3085 = vmatpush1.bf16.msra.mxu1 %v6217_v23  ;;  %v267_v23 = vld [vmem:[#allocation3 + $0x448] sm:$0xff]  ;;  %v530_v30 = vld [vmem:[#allocation3 + $0xc80] sm:$0xff]  ;;  %v6543_v36 = vcombine.low %v522_v20, %v526_v22 }
  0xe7   :  { %3086 = vmatprep.subr.bf16.mxu1 %v6226_v25  ;;  %v7051_v25 = vld [vmem:[%s8054_s0 + $0x10] ss:$28 sps:$4 sm:$0xff]   ;;  %v6289_v35 = vcombine.low %v267_v23, %v271_v26  ;;  %v538_v38 = vld [vmem:[#allocation3 + $0xcc0] sm:$0xff] }
  0xe8   :  { %2999 = vmatpush1.bf16.msra.mxu0 %v6471_v24  ;;  %v6536_v24 = vcombine.high %v514_v11, %v518_v12  ;;  %v550_v46 = vld [vmem:[#allocation3 + $0xd20] sm:$0xff] }
  0xe9   :  { %3000 = vmatprep.subr.bf16.mxu0 %v6480_v29  ;;  %v6290_v29 = vcombine.high %v267_v23, %v271_v26  ;;  %v562_v61 = vld [vmem:[#allocation3 + $0xd80] sm:$0xff]  ;;  %v331_v23 = vld [vmem:[#allocation3 + $0x648] sm:$0xff]  ;;  %v7052_v26 = vld [vmem:[%s8054_s0 + $0x18] ss:$28 sps:$4 sm:$0xff]  }
  0xea   :  { %3087 = vmatpush1.bf16.msra.mxu1 %v6225_v31  ;;  %v534_v31 = vld [vmem:[#allocation3 + $0xca0] sm:$0xff] }
  0xeb   :  { %3088 = vmatprep.subr.bf16.mxu1 %v6234_v33  ;;  %v6544_v33 = vcombine.high %v522_v20, %v526_v22  ;;  %v570_v5 = vld [vmem:[#allocation3 + $0xdc0] sm:$0xff] }
  0xec   :  { %3001 = vmatpush1.bf16.msra.mxu0 %v6479_v32  ;;  %v275_v32 = vld [vmem:[#allocation3 + $0x488] sm:$0xff] }
  0xed   :  { %3002 = vmatprep.subr.bf16.mxu0 %v6488_v37  ;;  %v6298_v37 = vcombine.high %v275_v32, %v279_v34  ;;  %v6297_v43 = vcombine.low %v275_v32, %v279_v34  ;;  %v339_v32 = vld [vmem:[#allocation3 + $0x688] sm:$0xff]  ;;  %v148_v34 = vld [vmem:[#allocation3 + $0x90] sm:$0xff] }
  0xee   :  { %3089 = vmatpush1.bf16.msra.mxu1 %v6233_v39  ;;  %v542_v39 = vld [vmem:[#allocation3 + $0xce0] sm:$0xff] }
  0xef   :  { %3090 = vmatprep.subr.bf16.mxu1 %v6242_v41  ;;  %v6552_v41 = vcombine.high %v530_v30, %v534_v31  ;;  %v6559_v50 = vcombine.low %v538_v38, %v542_v39 }
  0xf0   :  { %3003 = vmatpush1.bf16.msra.mxu0 %v6487_v40  ;;  %v283_v40 = vld [vmem:[#allocation3 + $0x4c8] sm:$0xff] }
  0xf1   :  { %3004 = vmatprep.subr.bf16.mxu0 %v6496_v45  ;;  %v6306_v44 = vcombine.high %v283_v40, %v287_v42  ;;  %v546_v45 = vld [vmem:[#allocation3 + $0xd00] sm:$0xff]  ;;  %v6305_v49 = vcombine.low %v283_v40, %v287_v42  ;;  %v347_v40 = vld [vmem:[#allocation3 + $0x6c8] sm:$0xff]  ;;  %v156_v42 = vld [vmem:[#allocation3 + $0xd0] sm:$0xff] }
  0xf2   :  { %3091 = vmatpush1.bf16.msra.mxu1 %v6241_v47  ;;  %v291_v47 = vld [vmem:[#allocation3 + $0x508] sm:$0xff]  ;;  %v6567_v57 = vcombine.low %v546_v45, %v550_v46 }
  0xf3   :  { %3092 = vmatprep.subr.bf16.mxu1 %v6250_v48  ;;  %v295_v48 = vld [vmem:[#allocation3 + $0x528] sm:$0xff] }
  0xf4   :  { %3005 = vmatpush1.bf16.msra.mxu0 %v6495_v58  ;;  %v6560_v58 = vcombine.high %v538_v38, %v542_v39  ;;  %v6314_v51 = vcombine.high %v291_v47, %v295_v48 }
  0xf5   :  { %3006 = vmatprep.subr.bf16.mxu0 %v6504_v52  ;;  %v554_v52 = vld [vmem:[#allocation3 + $0xd40] sm:$0xff] }
  0xf6   :  { %3093 = vmatpush1.bf16.msra.mxu1 %v6249_v54  ;;  %v6568_v54 = vcombine.high %v546_v45, %v550_v46 }
  0xf7   :  { %3094 = vmatprep.subr.bf16.mxu1 %v6258_v56  ;;  %v6313_v56 = vcombine.low %v291_v47, %v295_v48  ;;  %v359_v48 = vld [vmem:[#allocation3 + $0x728] sm:$0xff] }
  0xf8   :  { %3007 = vmatpush1.bf16.msra.mxu0 %v6503_v55  ;;  %v303_v55 = vld [vmem:[#allocation3 + $0x568] sm:$0xff] }
  0xf9   :  { %3008 = vmatprep.subr.bf16.mxu0 %v6512_v62  ;;  %v6322_v59 = vcombine.high %v299_v53, %v303_v55  ;;  %v566_v62 = vld [vmem:[#allocation3 + $0xda0] sm:$0xff] }
  0xfa   :  { %3095 = vmatpush1.bf16.msra.mxu1 %v6257_v0  ;;  %v6584_v7 = vcombine.high %v562_v61, %v566_v62  ;;  %v6583_v11 = vcombine.low %v562_v61, %v566_v62 }
  0xfb   :  { %3096 = vmatprep.subr.bf16.mxu1 %v6266_v2  ;;  %v6321_v2 = vcombine.low %v299_v53, %v303_v55  ;;  %v367_v55 = vld [vmem:[#allocation3 + $0x768] sm:$0xff] }
  0xfc   :  { %3009 = vmatpush1.bf16.msra.mxu0 %v6511_v1  ;;  %v311_v1 = vld [vmem:[#allocation3 + $0x5a8] sm:$0xff] }
  0xfd   :  { %3010 = vmatprep.subr.bf16.mxu0 %v6520_v6  ;;  %v6330_v4 = vcombine.high %v307_v63, %v311_v1  ;;  %v574_v6 = vld [vmem:[#allocation3 + $0xde0] sm:$0xff] }
  0xfe   :  { %3097 = vmatpush1.bf16.msra.mxu1 %v6265_v8  ;;  %v315_v8 = vld [vmem:[#allocation3 + $0x5c8] sm:$0xff]  ;;  %v6591_v20 = vcombine.low %v570_v5, %v574_v6 }
  0xff   :  { %3098 = vmatprep.subr.bf16.mxu1 %v6274_v10  ;;  %v6329_v10 = vcombine.low %v307_v63, %v311_v1  ;;  %v375_v1 = vld [vmem:[#allocation3 + $0x7a8] sm:$0xff] }
 0x100   :  { %3011 = vmatpush1.bf16.msra.mxu0 %v6519_v9  ;;  %v319_v9 = vld [vmem:[#allocation3 + $0x5e8] sm:$0xff] }
 0x101   :  { %3012 = vmatprep.subr.bf16.mxu0 %v6528_v15  ;;  %v6338_v12 = vcombine.high %v315_v8, %v319_v9  ;;  %v327_v15 = vld [vmem:[#allocation3 + $0x628] sm:$0xff] }
 0x102   :  { %3099 = vmatpush1.bf16.msra.mxu1 %v6273_v17  ;;  %v6592_v17 = vcombine.high %v570_v5, %v574_v6  ;;  %v6346_v22 = vcombine.high %v323_v13, %v327_v15 }
 0x103   :  { %3111 = vmatprep.subr.bf16.mxu1 %v6282_v19  ;;  %v6337_v19 = vcombine.low %v315_v8, %v319_v9  ;;  %v379_v8 = vld [vmem:[#allocation3 + $0x7c8] sm:$0xff] }
 0x104   :  { %3013 = vmatpush1.bf16.msra.mxu0 %v6527_v18  ;;  %v136_v18 = vld [vmem:[#allocation3 + $0x30] sm:$0xff]  ;;  %v383_v9 = vld [vmem:[#allocation3 + $0x7e8] sm:$0xff] }
 0x105   :  { %3025 = vmatprep.subr.bf16.mxu0 %v6536_v24  ;;  %3101 = vmatmul.mubr.bf16.vlgmr.msra.gmra.mrb[4].mxu1 %v7886_v14  ;;  %v6551_v14 = vcombine.low %v530_v30, %v534_v31  ;;  %v335_v24 = vld [vmem:[#allocation3 + $0x668] sm:$0xff]  ;;  %v6155_v30 = vcombine.low %v132_v16, %v136_v18 }
 0x106   :  { %3112 = vmatpush1.bf16.msra.mxu1 %v6281_v27  ;;  %3143 = vmatprep.mubr.bf16.mxu1 %v7878_v60  ;;  %v558_v60 = vld [vmem:[#allocation3 + $0xd60] sm:$0xff]  ;;  %v6156_v27 = vcombine.high %v132_v16, %v136_v18  ;;  %v6354_v31 = vcombine.high %v331_v23, %v335_v24  ;;  %v6402_v16 = vcombine.high %v379_v8, %v383_v9  ;;  %v391_v18 = vld [vmem:[#allocation3 + $0x828] sm:$0xff] }
 0x107   :  { %3015 = vmatmul.mubr.bf16.vlgmr.msra.gmra.mrb[0].mxu0 %v7051_v25  ;;  %3113 = vmatprep.subr.bf16.mxu1 %v6290_v29  ;;  %v6576_v0 = vcombine.high %v554_v52, %v558_v60  ;;  %v6575_v3 = vcombine.low %v554_v52, %v558_v60  ;;  %v140_v25 = vld [vmem:[#allocation3 + $0x50] sm:$0xff]  ;;  %v6345_v29 = vcombine.low %v323_v13, %v327_v15 }
 0x108   :  { %3026 = vmatpush1.bf16.msra.mxu0 %v6535_v28  ;;  %3057 = vmatprep.mubr.bf16.mxu0 %v7725_v21  ;;  %v144_v28 = vld [vmem:[#allocation3 + $0x70] sm:$0xff] }
 0x109   :  { %3027 = vmatprep.subr.bf16.mxu0 %v6544_v33  ;;  %v343_v33 = vld [vmem:[#allocation3 + $0x6a8] sm:$0xff]  ;;  %v6163_v38 = vcombine.low %v140_v25, %v144_v28 }
 0x10a   :  { %3114 = vmatpush1.bf16.msra.mxu1 %v6289_v35  ;;  %v6164_v35 = vcombine.high %v140_v25, %v144_v28  ;;  %v6362_v39 = vcombine.high %v339_v32, %v343_v33  ;;  %v6361_v45 = vcombine.low %v339_v32, %v343_v33  ;;  %v204_v28 = vld [vmem:[#allocation3 + $0x250] sm:$0xff] }
 0x10b   :  { %3115 = vmatprep.subr.bf16.mxu1 %v6298_v37  ;;  %v6353_v37 = vcombine.low %v331_v23, %v335_v24  ;;  %v6401_v23 = vcombine.low %v379_v8, %v383_v9 }
 0x10c   :  { %3028 = vmatpush1.bf16.msra.mxu0 %v6543_v36  ;;  %v152_v36 = vld [vmem:[#allocation3 + $0xb0] sm:$0xff] }
 0x10d   :  { %3029 = vmatprep.subr.bf16.mxu0 %v6552_v41  ;;  %v351_v41 = vld [vmem:[#allocation3 + $0x6e8] sm:$0xff]  ;;  %v6171_v46 = vcombine.low %v148_v34, %v152_v36 }
 0x10e   :  { %3116 = vmatpush1.bf16.msra.mxu1 %v6297_v43  ;;  %v6172_v43 = vcombine.high %v148_v34, %v152_v36  ;;  %v6370_v47 = vcombine.high %v347_v40, %v351_v41  ;;  %v6369_v52 = vcombine.low %v347_v40, %v351_v41  ;;  %v403_v34 = vld [vmem:[#allocation3 + $0x888] sm:$0xff]  ;;  %v212_v36 = vld [vmem:[#allocation3 + $0x290] sm:$0xff] }
 0x10f   :  { %3117 = vmatprep.subr.bf16.mxu1 %v6306_v44  ;;  %v7537_v44 = vld [vmem:[%s8054_s0 + $0x4] ss:$28 sps:$4 sm:$0xff]   ;;  %v7917_v41 = vld [vmem:[%s8054_s0 + $0x14] ss:$28 sps:$4 sm:$0xff]  }
 0x110   :  { %3030 = vmatpush1.bf16.msra.mxu0 %v6551_v14  ;;  %v160_v14 = vld [vmem:[#allocation3 + $0xf0] sm:$0xff] }
 0x111   :  { %3031 = vmatprep.subr.bf16.mxu0 %v6560_v58  ;;  %v355_v58 = vld [vmem:[#allocation3 + $0x708] sm:$0xff]  ;;  %v6179_v60 = vcombine.low %v156_v42, %v160_v14 }
 0x112   :  { %3118 = vmatpush1.bf16.msra.mxu1 %v6305_v49  ;;  %v164_v49 = vld [vmem:[#allocation3 + $0x110] sm:$0xff]  ;;  %v6378_v53 = vcombine.high %v355_v58, %v359_v48  ;;  %v6377_v61 = vcombine.low %v355_v58, %v359_v48 }
 0x113   :  { %3119 = vmatprep.subr.bf16.mxu1 %v6314_v51  ;;  %v168_v51 = vld [vmem:[#allocation3 + $0x130] sm:$0xff] }
 0x114   :  { %3032 = vmatpush1.bf16.msra.mxu0 %v6559_v50  ;;  %v6180_v50 = vcombine.high %v156_v42, %v160_v14  ;;  %v6187_v62 = vcombine.low %v164_v49, %v168_v51  ;;  %v411_v14 = vld [vmem:[#allocation3 + $0x8c8] sm:$0xff] }
 0x115   :  { %3033 = vmatprep.subr.bf16.mxu0 %v6568_v54  ;;  %v363_v54 = vld [vmem:[#allocation3 + $0x748] sm:$0xff] }
 0x116   :  { %3120 = vmatpush1.bf16.msra.mxu1 %v6313_v56  ;;  %v172_v56 = vld [vmem:[#allocation3 + $0x150] sm:$0xff]  ;;  %v6386_v63 = vcombine.high %v363_v54, %v367_v55  ;;  %v6385_v5 = vcombine.low %v363_v54, %v367_v55 }
 0x117   :  { %3121 = vmatprep.subr.bf16.mxu1 %v6322_v59  ;;  %v176_v59 = vld [vmem:[#allocation3 + $0x170] sm:$0xff] }
 0x118   :  { %3034 = vmatpush1.bf16.msra.mxu0 %v6567_v57  ;;  %v6188_v57 = vcombine.high %v164_v49, %v168_v51  ;;  %v6195_v6 = vcombine.low %v172_v56, %v176_v59  ;;  %v423_v51 = vld [vmem:[#allocation3 + $0x928] sm:$0xff] }
 0x119   :  { %3035 = vmatprep.subr.bf16.mxu0 %v6576_v0  ;;  %v371_v0 = vld [vmem:[#allocation3 + $0x788] sm:$0xff] }
 0x11a   :  { %3122 = vmatpush1.bf16.msra.mxu1 %v6321_v2  ;;  %v180_v2 = vld [vmem:[#allocation3 + $0x190] sm:$0xff]  ;;  %v6393_v13 = vcombine.low %v371_v0, %v375_v1 }
 0x11b   :  { %3123 = vmatprep.subr.bf16.mxu1 %v6330_v4  ;;  %v184_v4 = vld [vmem:[#allocation3 + $0x1b0] sm:$0xff] }
 0x11c   :  { %3036 = vmatpush1.bf16.msra.mxu0 %v6575_v3  ;;  %v6196_v3 = vcombine.high %v172_v56, %v176_v59  ;;  %v6203_v15 = vcombine.low %v180_v2, %v184_v4  ;;  %v431_v59 = vld [vmem:[#allocation3 + $0x968] sm:$0xff] }
 0x11d   :  { %3037 = vmatprep.subr.bf16.mxu0 %v6584_v7  ;;  %v6394_v7 = vcombine.high %v371_v0, %v375_v1 }
 0x11e   :  { %3124 = vmatpush1.bf16.msra.mxu1 %v6329_v10  ;;  %v188_v10 = vld [vmem:[#allocation3 + $0x1d0] sm:$0xff] }
 0x11f   :  { %3125 = vmatprep.subr.bf16.mxu1 %v6338_v12  ;;  %v192_v12 = vld [vmem:[#allocation3 + $0x1f0] sm:$0xff] }
 0x120   :  { %3038 = vmatpush1.bf16.msra.mxu0 %v6583_v11  ;;  %v6204_v11 = vcombine.high %v180_v2, %v184_v4  ;;  %v6211_v24 = vcombine.low %v188_v10, %v192_v12  ;;  %v439_v4 = vld [vmem:[#allocation3 + $0x9a8] sm:$0xff] }
 0x121   :  { %3039 = vmatprep.subr.bf16.mxu0 %v6592_v17  ;;  %v387_v17 = vld [vmem:[#allocation3 + $0x808] sm:$0xff] }
 0x122   :  { %3126 = vmatpush1.bf16.msra.mxu1 %v6337_v19  ;;  %v196_v19 = vld [vmem:[#allocation3 + $0x210] sm:$0xff]  ;;  %v6410_v25 = vcombine.high %v387_v17, %v391_v18 }
 0x123   :  { %3127 = vmatprep.subr.bf16.mxu1 %v6346_v22  ;;  %v200_v22 = vld [vmem:[#allocation3 + $0x230] sm:$0xff] }
 0x124   :  { %3040 = vmatpush1.bf16.msra.mxu0 %v6591_v20  ;;  %v6212_v20 = vcombine.high %v188_v10, %v192_v12  ;;  %v6219_v32 = vcombine.low %v196_v19, %v200_v22  ;;  %v447_v12 = vld [vmem:[#allocation3 + $0x9e8] sm:$0xff] }
 0x125   :  { %3240 = vmatprep.subr.bf16.mxu0 %v6156_v27  ;;  %v399_v27 = vld [vmem:[#allocation3 + $0x868] sm:$0xff] }
 0x126   :  { %3128 = vmatpush1.bf16.msra.mxu1 %v6345_v29  ;;  %v6220_v29 = vcombine.high %v196_v19, %v200_v22  ;;  %v455_v22 = vld [vmem:[#allocation3 + $0xa28] sm:$0xff] }
 0x127   :  { %3058 = vmatmul.mubr.bf16.vlgmr.msra.gmra.mrb[0].mxu0 %v7052_v26  ;;  %3129 = vmatprep.subr.bf16.mxu1 %v6354_v31  ;;  %v395_v26 = vld [vmem:[#allocation3 + $0x848] sm:$0xff]  ;;  %v6409_v31 = vcombine.low %v387_v17, %v391_v18 }
 0x128   :  { %3241 = vmatpush1.bf16.msra.mxu0 %v6155_v30  ;;  %3272 = vmatprep.mubr.bf16.mxu0 %v7537_v44  ;;  %v208_v30 = vld [vmem:[#allocation3 + $0x270] sm:$0xff]  ;;  %v6418_v33 = vcombine.high %v395_v26, %v399_v27  ;;  %v6417_v40 = vcombine.low %v395_v26, %v399_v27  ;;  %v415_v44 = vld [vmem:[#allocation3 + $0x8e8] sm:$0xff] }
 0x129   :  { %3242 = vmatprep.subr.bf16.mxu0 %v6164_v35  ;;  %v407_v35 = vld [vmem:[#allocation3 + $0x8a8] sm:$0xff]  ;;  %v6227_v42 = vcombine.low %v204_v28, %v208_v30  ;;  %v6434_v49 = vcombine.high %v411_v14, %v415_v44  ;;  %v6433_v54 = vcombine.low %v411_v14, %v415_v44  ;;  %v7923_v14 = vld [vmem:[%s8054_s0] ss:$28 sps:$4 sm:$0xff]  }
 0x12a   :  { %3130 = vmatpush1.bf16.msra.mxu1 %v6353_v37  ;;  %v6228_v37 = vcombine.high %v204_v28, %v208_v30  ;;  %v6425_v58 = vcombine.low %v403_v34, %v407_v35  ;;  %v463_v30 = vld [vmem:[#allocation3 + $0xa68] sm:$0xff] }
 0x12b   :  { %3131 = vmatprep.subr.bf16.mxu1 %v6362_v39  ;;  %v7911_v39 = vld [vmem:[%s8054_s0 + $0x8] ss:$28 sps:$4 sm:$0xff]  }
 0x12c   :  { %3243 = vmatpush1.bf16.msra.mxu0 %v6163_v38  ;;  %v216_v38 = vld [vmem:[#allocation3 + $0x2b0] sm:$0xff] }
 0x12d   :  { %3244 = vmatprep.subr.bf16.mxu0 %v6172_v43  ;;  %v6426_v43 = vcombine.high %v403_v34, %v407_v35  ;;  %v6235_v48 = vcombine.low %v212_v36, %v216_v38 }
 0x12e   :  { %3132 = vmatpush1.bf16.msra.mxu1 %v6361_v45  ;;  %v220_v45 = vld [vmem:[#allocation3 + $0x2d0] sm:$0xff] }
 0x12f   :  { %3133 = vmatprep.subr.bf16.mxu1 %v6370_v47  ;;  %v224_v47 = vld [vmem:[#allocation3 + $0x2f0] sm:$0xff] }
 0x130   :  { %3245 = vmatpush1.bf16.msra.mxu0 %v6171_v46  ;;  %v6236_v46 = vcombine.high %v212_v36, %v216_v38  ;;  %v6243_v55 = vcombine.low %v220_v45, %v224_v47  ;;  %v471_v38 = vld [vmem:[#allocation3 + $0xaa8] sm:$0xff] }
 0x131   :  { %3246 = vmatprep.subr.bf16.mxu0 %v6180_v50  ;;  %v419_v50 = vld [vmem:[#allocation3 + $0x908] sm:$0xff] }
 0x132   :  { %3134 = vmatpush1.bf16.msra.mxu1 %v6369_v52  ;;  %v228_v52 = vld [vmem:[#allocation3 + $0x310] sm:$0xff]  ;;  %v6442_v56 = vcombine.high %v419_v50, %v423_v51  ;;  %v6441_v0 = vcombine.low %v419_v50, %v423_v51  ;;  %v7929_v51 = vld [vmem:[%s8054_s0 + $0xc] ss:$28 sps:$4 sm:$0xff]  }
 0x133   :  { %3135 = vmatprep.subr.bf16.mxu1 %v6378_v53  ;;  %v232_v53 = vld [vmem:[#allocation3 + $0x330] sm:$0xff] }
 0x134   :  { %3247 = vmatpush1.bf16.msra.mxu0 %v6179_v60  ;;  %v6244_v60 = vcombine.high %v220_v45, %v224_v47  ;;  %v6251_v1 = vcombine.low %v228_v52, %v232_v53  ;;  %v475_v47 = vld [vmem:[#allocation3 + $0xac8] sm:$0xff]  ;;  %v288_v50 = vld [vmem:[#allocation3 + $0x4f0] sm:$0xff] }
 0x135   :  { %3248 = vmatprep.subr.bf16.mxu0 %v6188_v57  ;;  %v427_v57 = vld [vmem:[#allocation3 + $0x948] sm:$0xff] }
 0x136   :  { %3136 = vmatpush1.bf16.msra.mxu1 %v6377_v61  ;;  %v236_v61 = vld [vmem:[#allocation3 + $0x350] sm:$0xff]  ;;  %v6450_v2 = vcombine.high %v427_v57, %v431_v59  ;;  %v6449_v8 = vcombine.low %v427_v57, %v431_v59 }
 0x137   :  { %3137 = vmatprep.subr.bf16.mxu1 %v6386_v63  ;;  %v240_v63 = vld [vmem:[#allocation3 + $0x370] sm:$0xff] }
 0x138   :  { %3249 = vmatpush1.bf16.msra.mxu0 %v6187_v62  ;;  %v6252_v62 = vcombine.high %v228_v52, %v232_v53  ;;  %v6259_v9 = vcombine.low %v236_v61, %v240_v63  ;;  %v292_v57 = vld [vmem:[#allocation3 + $0x510] sm:$0xff] }
 0x139   :  { %3250 = vmatprep.subr.bf16.mxu0 %v6196_v3  ;;  %v435_v3 = vld [vmem:[#allocation3 + $0x988] sm:$0xff]  ;;  %v296_v59 = vld [vmem:[#allocation3 + $0x530] sm:$0xff] }
 0x13a   :  { %3138 = vmatpush1.bf16.msra.mxu1 %v6385_v5  ;;  %v244_v5 = vld [vmem:[#allocation3 + $0x390] sm:$0xff]  ;;  %v6458_v10 = vcombine.high %v435_v3, %v439_v4  ;;  %v6457_v17 = vcombine.low %v435_v3, %v439_v4 }
 0x13b   :  { %3139 = vmatprep.subr.bf16.mxu1 %v6394_v7  ;;  %v248_v7 = vld [vmem:[#allocation3 + $0x3b0] sm:$0xff] }
 0x13c   :  { %3251 = vmatpush1.bf16.msra.mxu0 %v6195_v6  ;;  %v6260_v6 = vcombine.high %v236_v61, %v240_v63  ;;  %v6267_v18 = vcombine.low %v244_v5, %v248_v7  ;;  %v300_v3 = vld [vmem:[#allocation3 + $0x550] sm:$0xff] }
 0x13d   :  { %3252 = vmatprep.subr.bf16.mxu0 %v6204_v11  ;;  %v443_v11 = vld [vmem:[#allocation3 + $0x9c8] sm:$0xff]  ;;  %v304_v4 = vld [vmem:[#allocation3 + $0x570] sm:$0xff] }
 0x13e   :  { %3140 = vmatpush1.bf16.msra.mxu1 %v6393_v13  ;;  %v252_v13 = vld [vmem:[#allocation3 + $0x3d0] sm:$0xff]  ;;  %v6466_v19 = vcombine.high %v443_v11, %v447_v12  ;;  %v6465_v26 = vcombine.low %v443_v11, %v447_v12 }
 0x13f   :  { %3141 = vmatprep.subr.bf16.mxu1 %v6402_v16  ;;  %v256_v16 = vld [vmem:[#allocation3 + $0x3f0] sm:$0xff] }
 0x140   :  { %3253 = vmatpush1.bf16.msra.mxu0 %v6203_v15  ;;  %v6268_v15 = vcombine.high %v244_v5, %v248_v7  ;;  %v6275_v27 = vcombine.low %v252_v13, %v256_v16  ;;  %v308_v11 = vld [vmem:[#allocation3 + $0x590] sm:$0xff] }
 0x141   :  { %3254 = vmatprep.subr.bf16.mxu0 %v6212_v20  ;;  %v451_v20 = vld [vmem:[#allocation3 + $0xa08] sm:$0xff]  ;;  %v312_v12 = vld [vmem:[#allocation3 + $0x5b0] sm:$0xff] }
 0x142   :  { %3142 = vmatpush1.bf16.msra.mxu1 %v6401_v23  ;;  %v260_v23 = vld [vmem:[#allocation3 + $0x410] sm:$0xff]  ;;  %v6474_v28 = vcombine.high %v451_v20, %v455_v22  ;;  %v6473_v34 = vcombine.low %v451_v20, %v455_v22 }
 0x143   :  { %3154 = vmatprep.subr.bf16.mxu1 %v6410_v25  ;;  %v264_v25 = vld [vmem:[#allocation3 + $0x430] sm:$0xff] }
 0x144   :  { %3255 = vmatpush1.bf16.msra.mxu0 %v6211_v24  ;;  %v6276_v24 = vcombine.high %v252_v13, %v256_v16  ;;  %v6283_v35 = vcombine.low %v260_v23, %v264_v25  ;;  %v316_v20 = vld [vmem:[#allocation3 + $0x5d0] sm:$0xff] }
 0x145   :  { %3256 = vmatprep.subr.bf16.mxu0 %v6220_v29  ;;  %3144 = vmatmul.mubr.bf16.vlgmr.msra.gmra.mrb[4].mxu1 %v7911_v39  ;;  %v459_v29 = vld [vmem:[#allocation3 + $0xa48] sm:$0xff]  ;;  %v320_v22 = vld [vmem:[#allocation3 + $0x5f0] sm:$0xff] }
 0x146   :  { %3155 = vmatpush1.bf16.msra.mxu1 %v6409_v31  ;;  %3186 = vmatprep.mubr.bf16.mxu1 %v7917_v41  ;;  %v268_v31 = vld [vmem:[#allocation3 + $0x450] sm:$0xff]  ;;  %v6482_v36 = vcombine.high %v459_v29, %v463_v30  ;;  %v6481_v44 = vcombine.low %v459_v29, %v463_v30 }
 0x147   :  { %3156 = vmatprep.subr.bf16.mxu1 %v6418_v33  ;;  %v272_v33 = vld [vmem:[#allocation3 + $0x470] sm:$0xff] }
 0x148   :  { %3257 = vmatpush1.bf16.msra.mxu0 %v6219_v32  ;;  %v6284_v32 = vcombine.high %v260_v23, %v264_v25  ;;  %v6291_v45 = vcombine.low %v268_v31, %v272_v33  ;;  %v324_v29 = vld [vmem:[#allocation3 + $0x610] sm:$0xff] }
 0x149   :  { %3258 = vmatprep.subr.bf16.mxu0 %v6228_v37  ;;  %v467_v37 = vld [vmem:[#allocation3 + $0xa88] sm:$0xff]  ;;  %v328_v30 = vld [vmem:[#allocation3 + $0x630] sm:$0xff] }
 0x14a   :  { %3157 = vmatpush1.bf16.msra.mxu1 %v6417_v40  ;;  %v276_v40 = vld [vmem:[#allocation3 + $0x490] sm:$0xff]  ;;  %v6489_v52 = vcombine.low %v467_v37, %v471_v38 }
 0x14b   :  { %3158 = vmatprep.subr.bf16.mxu1 %v6426_v43  ;;  %v280_v43 = vld [vmem:[#allocation3 + $0x4b0] sm:$0xff] }
 0x14c   :  { %3259 = vmatpush1.bf16.msra.mxu0 %v6227_v42  ;;  %v6292_v42 = vcombine.high %v268_v31, %v272_v33 }
 0x14d   :  { %3260 = vmatprep.subr.bf16.mxu0 %v6236_v46  ;;  %v6490_v46 = vcombine.high %v467_v37, %v471_v38  ;;  %v332_v37 = vld [vmem:[#allocation3 + $0x650] sm:$0xff] }
 0x14e   :  { %3159 = vmatpush1.bf16.msra.mxu1 %v6425_v58  ;;  %v479_v58 = vld [vmem:[#allocation3 + $0xae8] sm:$0xff]  ;;  %v336_v38 = vld [vmem:[#allocation3 + $0x670] sm:$0xff] }
 0x14f   :  { %3160 = vmatprep.subr.bf16.mxu1 %v6434_v49  ;;  %v6300_v49 = vcombine.high %v276_v40, %v280_v43  ;;  %v6498_v53 = vcombine.high %v475_v47, %v479_v58  ;;  %v6497_v61 = vcombine.low %v475_v47, %v479_v58  ;;  %v7935_v47 = vld [vmem:[%s8054_s0 + $0x10] ss:$28 sps:$4 sm:$0xff]  }
 0x150   :  { %3261 = vmatpush1.bf16.msra.mxu0 %v6235_v48  ;;  %v284_v48 = vld [vmem:[#allocation3 + $0x4d0] sm:$0xff] }
 0x151   :  { %3262 = vmatprep.subr.bf16.mxu0 %v6244_v60  ;;  %v6299_v60 = vcombine.low %v276_v40, %v280_v43  ;;  %v340_v58 = vld [vmem:[#allocation3 + $0x690] sm:$0xff] }
 0x152   :  { %3161 = vmatpush1.bf16.msra.mxu1 %v6433_v54  ;;  %v6308_v54 = vcombine.high %v284_v48, %v288_v50 }
 0x153   :  { %3162 = vmatprep.subr.bf16.mxu1 %v6442_v56  ;;  %v487_v56 = vld [vmem:[#allocation3 + $0xb28] sm:$0xff] }
 0x154   :  { %3263 = vmatpush1.bf16.msra.mxu0 %v6243_v55  ;;  %v483_v55 = vld [vmem:[#allocation3 + $0xb08] sm:$0xff] }
 0x155   :  { %3264 = vmatprep.subr.bf16.mxu0 %v6252_v62  ;;  %v6307_v62 = vcombine.low %v284_v48, %v288_v50  ;;  %v6506_v63 = vcombine.high %v483_v55, %v487_v56  ;;  %v6505_v5 = vcombine.low %v483_v55, %v487_v56  ;;  %v344_v48 = vld [vmem:[#allocation3 + $0x6b0] sm:$0xff]  ;;  %v6355_v50 = vcombine.low %v332_v37, %v336_v38 }
 0x156   :  { %3163 = vmatpush1.bf16.msra.mxu1 %v6441_v0  ;;  %v6316_v0 = vcombine.high %v292_v57, %v296_v59  ;;  %v348_v55 = vld [vmem:[#allocation3 + $0x6d0] sm:$0xff] }
 0x157   :  { %3164 = vmatprep.subr.bf16.mxu1 %v6450_v2  ;;  %v495_v2 = vld [vmem:[#allocation3 + $0xb68] sm:$0xff]  ;;  %v352_v56 = vld [vmem:[#allocation3 + $0x6f0] sm:$0xff] }
 0x158   :  { %3265 = vmatpush1.bf16.msra.mxu0 %v6251_v1  ;;  %v491_v1 = vld [vmem:[#allocation3 + $0xb48] sm:$0xff] }
 0x159   :  { %3266 = vmatprep.subr.bf16.mxu0 %v6260_v6  ;;  %v6315_v6 = vcombine.low %v292_v57, %v296_v59  ;;  %v6514_v7 = vcombine.high %v491_v1, %v495_v2  ;;  %v6513_v13 = vcombine.low %v491_v1, %v495_v2  ;;  %v6363_v59 = vcombine.low %v340_v58, %v344_v48  ;;  %v356_v1 = vld [vmem:[#allocation3 + $0x710] sm:$0xff] }
 0x15a   :  { %3165 = vmatpush1.bf16.msra.mxu1 %v6449_v8  ;;  %v6324_v8 = vcombine.high %v300_v3, %v304_v4  ;;  %v360_v2 = vld [vmem:[#allocation3 + $0x730] sm:$0xff] }
 0x15b   :  { %3166 = vmatprep.subr.bf16.mxu1 %v6458_v10  ;;  %v503_v10 = vld [vmem:[#allocation3 + $0xba8] sm:$0xff] }
 0x15c   :  { %3267 = vmatpush1.bf16.msra.mxu0 %v6259_v9  ;;  %v499_v9 = vld [vmem:[#allocation3 + $0xb88] sm:$0xff] }
 0x15d   :  { %3268 = vmatprep.subr.bf16.mxu0 %v6268_v15  ;;  %v6323_v15 = vcombine.low %v300_v3, %v304_v4  ;;  %v6522_v16 = vcombine.high %v499_v9, %v503_v10  ;;  %v6521_v23 = vcombine.low %v499_v9, %v503_v10  ;;  %v6371_v4 = vcombine.low %v348_v55, %v352_v56  ;;  %v364_v9 = vld [vmem:[#allocation3 + $0x750] sm:$0xff] }
 0x15e   :  { %3167 = vmatpush1.bf16.msra.mxu1 %v6457_v17  ;;  %v6332_v17 = vcombine.high %v308_v11, %v312_v12  ;;  %v368_v10 = vld [vmem:[#allocation3 + $0x770] sm:$0xff] }
 0x15f   :  { %3168 = vmatprep.subr.bf16.mxu1 %v6466_v19  ;;  %v511_v19 = vld [vmem:[#allocation3 + $0xbe8] sm:$0xff] }
 0x160   :  { %3269 = vmatpush1.bf16.msra.mxu0 %v6267_v18  ;;  %v507_v18 = vld [vmem:[#allocation3 + $0xbc8] sm:$0xff] }
 0x161   :  { %3270 = vmatprep.subr.bf16.mxu0 %v6276_v24  ;;  %v6331_v24 = vcombine.low %v308_v11, %v312_v12  ;;  %v6530_v25 = vcombine.high %v507_v18, %v511_v19  ;;  %v6529_v31 = vcombine.low %v507_v18, %v511_v19  ;;  %v6379_v12 = vcombine.low %v356_v1, %v360_v2  ;;  %v372_v18 = vld [vmem:[#allocation3 + $0x790] sm:$0xff] }
 0x162   :  { %3169 = vmatpush1.bf16.msra.mxu1 %v6465_v26  ;;  %v6340_v26 = vcombine.high %v316_v20, %v320_v22  ;;  %v376_v19 = vld [vmem:[#allocation3 + $0x7b0] sm:$0xff] }
 0x163   :  { %3170 = vmatprep.subr.bf16.mxu1 %v6474_v28  ;;  %v519_v28 = vld [vmem:[#allocation3 + $0xc28] sm:$0xff] }
 0x164   :  { %3271 = vmatpush1.bf16.msra.mxu0 %v6275_v27  ;;  %v515_v27 = vld [vmem:[#allocation3 + $0xc08] sm:$0xff] }
 0x165   :  { %3283 = vmatprep.subr.bf16.mxu0 %v6284_v32  ;;  %v6339_v32 = vcombine.low %v316_v20, %v320_v22  ;;  %v6538_v33 = vcombine.high %v515_v27, %v519_v28  ;;  %v6537_v40 = vcombine.low %v515_v27, %v519_v28  ;;  %v6387_v22 = vcombine.low %v364_v9, %v368_v10  ;;  %v575_v27 = vld [vmem:[#allocation3 + $0xde8] sm:$0xff] }
 0x166   :  { %3171 = vmatpush1.bf16.msra.mxu1 %v6473_v34  ;;  %v6348_v34 = vcombine.high %v324_v29, %v328_v30 }
 0x167   :  { %3273 = vmatmul.mubr.bf16.vlgmr.msra.gmra.mrb[4].mxu0 %v7923_v14  ;;  %3172 = vmatprep.subr.bf16.mxu1 %v6482_v36  ;;  %v527_v36 = vld [vmem:[#allocation3 + $0xc68] sm:$0xff] }
 0x168   :  { %3284 = vmatpush1.bf16.msra.mxu0 %v6283_v35  ;;  %3315 = vmatprep.mubr.bf16.mxu0 %v7929_v51  ;;  %v523_v35 = vld [vmem:[#allocation3 + $0xc48] sm:$0xff] }
 0x169   :  { %3285 = vmatprep.subr.bf16.mxu0 %v6292_v42  ;;  %v6347_v42 = vcombine.low %v324_v29, %v328_v30  ;;  %v6546_v43 = vcombine.high %v523_v35, %v527_v36  ;;  %v380_v29 = vld [vmem:[#allocation3 + $0x7d0] sm:$0xff] }
 0x16a   :  { %3173 = vmatpush1.bf16.msra.mxu1 %v6481_v44  ;;  %v6356_v44 = vcombine.high %v332_v37, %v336_v38  ;;  %v384_v30 = vld [vmem:[#allocation3 + $0x7f0] sm:$0xff]  ;;  %v133_v37 = vld [vmem:[#allocation3 + $0x18] sm:$0xff] }
 0x16b   :  { %3174 = vmatprep.subr.bf16.mxu1 %v6490_v46  ;;  %v535_v46 = vld [vmem:[#allocation3 + $0xca8] sm:$0xff]  ;;  %v137_v38 = vld [vmem:[#allocation3 + $0x38] sm:$0xff] }
 0x16c   :  { %3286 = vmatpush1.bf16.msra.mxu0 %v6291_v45  ;;  %v531_v45 = vld [vmem:[#allocation3 + $0xc88] sm:$0xff] }
 0x16d   :  { %3287 = vmatprep.subr.bf16.mxu0 %v6300_v49  ;;  %v6545_v49 = vcombine.low %v523_v35, %v527_v36  ;;  %v6553_v57 = vcombine.low %v531_v45, %v535_v46  ;;  %v6404_v36 = vcombine.high %v380_v29, %v384_v30 }
 0x16e   :  { %3175 = vmatpush1.bf16.msra.mxu1 %v6489_v52  ;;  %v6554_v52 = vcombine.high %v531_v45, %v535_v46  ;;  %v6158_v45 = vcombine.high %v133_v37, %v137_v38 }
 0x16f   :  { %3176 = vmatprep.subr.bf16.mxu1 %v6498_v53  ;;  %v539_v53 = vld [vmem:[#allocation3 + $0xcc8] sm:$0xff] }
 0x170   :  { %3288 = vmatpush1.bf16.msra.mxu0 %v6299_v60  ;;  %v6364_v60 = vcombine.high %v340_v58, %v344_v48  ;;  %v141_v58 = vld [vmem:[#allocation3 + $0x58] sm:$0xff] }
 0x171   :  { %3289 = vmatprep.subr.bf16.mxu0 %v6308_v54  ;;  %v543_v54 = vld [vmem:[#allocation3 + $0xce8] sm:$0xff]  ;;  %v145_v48 = vld [vmem:[#allocation3 + $0x78] sm:$0xff] }
 0x172   :  { %3177 = vmatpush1.bf16.msra.mxu1 %v6497_v61  ;;  %v6562_v61 = vcombine.high %v539_v53, %v543_v54  ;;  %v6561_v3 = vcombine.low %v539_v53, %v543_v54  ;;  %v6166_v53 = vcombine.high %v141_v58, %v145_v48 }
 0x173   :  { %3178 = vmatprep.subr.bf16.mxu1 %v6506_v63  ;;  %v547_v63 = vld [vmem:[#allocation3 + $0xd08] sm:$0xff] }
 0x174   :  { %3290 = vmatpush1.bf16.msra.mxu0 %v6307_v62  ;;  %v6372_v62 = vcombine.high %v348_v55, %v352_v56  ;;  %v149_v55 = vld [vmem:[#allocation3 + $0x98] sm:$0xff] }
 0x175   :  { %3291 = vmatprep.subr.bf16.mxu0 %v6316_v0  ;;  %v551_v0 = vld [vmem:[#allocation3 + $0xd28] sm:$0xff]  ;;  %v153_v56 = vld [vmem:[#allocation3 + $0xb8] sm:$0xff] }
 0x176   :  { %3179 = vmatpush1.bf16.msra.mxu1 %v6505_v5  ;;  %v6570_v5 = vcombine.high %v547_v63, %v551_v0  ;;  %v6569_v11 = vcombine.low %v547_v63, %v551_v0  ;;  %v6174_v0 = vcombine.high %v149_v55, %v153_v56 }
 0x177   :  { %3180 = vmatprep.subr.bf16.mxu1 %v6514_v7  ;;  %v555_v7 = vld [vmem:[#allocation3 + $0xd48] sm:$0xff] }
 0x178   :  { %3292 = vmatpush1.bf16.msra.mxu0 %v6315_v6  ;;  %v6380_v6 = vcombine.high %v356_v1, %v360_v2  ;;  %v157_v2 = vld [vmem:[#allocation3 + $0xd8] sm:$0xff] }
 0x179   :  { %3293 = vmatprep.subr.bf16.mxu0 %v6324_v8  ;;  %v559_v8 = vld [vmem:[#allocation3 + $0xd68] sm:$0xff] }
 0x17a   :  { %3181 = vmatpush1.bf16.msra.mxu1 %v6513_v13  ;;  %v6578_v13 = vcombine.high %v555_v7, %v559_v8  ;;  %v6577_v20 = vcombine.low %v555_v7, %v559_v8 }
 0x17b   :  { %3182 = vmatprep.subr.bf16.mxu1 %v6522_v16  ;;  %v563_v16 = vld [vmem:[#allocation3 + $0xd88] sm:$0xff] }
 0x17c   :  { %3294 = vmatpush1.bf16.msra.mxu0 %v6323_v15  ;;  %v6388_v15 = vcombine.high %v364_v9, %v368_v10  ;;  %v165_v10 = vld [vmem:[#allocation3 + $0x118] sm:$0xff] }
 0x17d   :  { %3295 = vmatprep.subr.bf16.mxu0 %v6332_v17  ;;  %v567_v17 = vld [vmem:[#allocation3 + $0xda8] sm:$0xff] }
 0x17e   :  { %3183 = vmatpush1.bf16.msra.mxu1 %v6521_v23  ;;  %v6586_v23 = vcombine.high %v563_v16, %v567_v17 }
 0x17f   :  { %3184 = vmatprep.subr.bf16.mxu1 %v6530_v25  ;;  %v6396_v25 = vcombine.high %v372_v18, %v376_v19 }
 0x180   :  { %3296 = vmatpush1.bf16.msra.mxu0 %v6331_v24 }
 0x181   :  { %3297 = vmatprep.subr.bf16.mxu0 %v6340_v26  ;;  %v571_v26 = vld [vmem:[#allocation3 + $0xdc8] sm:$0xff] }
 0x182   :  { %3185 = vmatpush1.bf16.msra.mxu1 %v6529_v31  ;;  %v6594_v35 = vcombine.high %v571_v26, %v575_v27 }
 0x183   :  { %3197 = vmatprep.subr.bf16.mxu1 %v6538_v33 }
 0x184   :  { %3298 = vmatpush1.bf16.msra.mxu0 %v6339_v32  ;;  %v6585_v32 = vcombine.low %v563_v16, %v567_v17 }
 0x185   :  { %3299 = vmatprep.subr.bf16.mxu0 %v6348_v34  ;;  %3187 = vmatmul.mubr.bf16.vlgmr.msra.gmra.mrb[4].mxu1 %v7935_v47  ;;  %v6395_v34 = vcombine.low %v372_v18, %v376_v19  ;;  %v173_v18 = vld [vmem:[#allocation3 + $0x158] sm:$0xff] }
 0x186   :  { %3198 = vmatpush1.bf16.msra.mxu1 %v6537_v40  ;;  %3229 = vmatprep.mubr.bf16.mxu1 %v7725_v21  ;;  %v388_v40 = vld [vmem:[#allocation3 + $0x810] sm:$0xff]  ;;  %v177_v19 = vld [vmem:[#allocation3 + $0x178] sm:$0xff] }
 0x187   :  { %3199 = vmatprep.subr.bf16.mxu1 %v6546_v43  ;;  %v6593_v43 = vcombine.low %v571_v26, %v575_v27  ;;  %v6198_v26 = vcombine.high %v173_v18, %v177_v19 }
 0x188   :  { %3300 = vmatpush1.bf16.msra.mxu0 %v6347_v42  ;;  %v392_v42 = vld [vmem:[#allocation3 + $0x830] sm:$0xff] }
 0x189   :  { %3301 = vmatprep.subr.bf16.mxu0 %v6356_v44  ;;  %v6403_v44 = vcombine.low %v380_v29, %v384_v30  ;;  %v6412_v46 = vcombine.high %v388_v40, %v392_v42  ;;  %v181_v29 = vld [vmem:[#allocation3 + $0x198] sm:$0xff] }
 0x18a   :  { %3200 = vmatpush1.bf16.msra.mxu1 %v6545_v49  ;;  %v396_v49 = vld [vmem:[#allocation3 + $0x850] sm:$0xff]  ;;  %v185_v30 = vld [vmem:[#allocation3 + $0x1b8] sm:$0xff] }
 0x18b   :  { %3201 = vmatprep.subr.bf16.mxu1 %v6554_v52  ;;  %v6157_v52 = vcombine.low %v133_v37, %v137_v38  ;;  %v6206_v37 = vcombine.high %v181_v29, %v185_v30 }
 0x18c   :  { %3302 = vmatpush1.bf16.msra.mxu0 %v6355_v50  ;;  %v400_v50 = vld [vmem:[#allocation3 + $0x870] sm:$0xff] }
 0x18d   :  { %3303 = vmatprep.subr.bf16.mxu0 %v6364_v60  ;;  %v6411_v60 = vcombine.low %v388_v40, %v392_v42  ;;  %v6420_v54 = vcombine.high %v396_v49, %v400_v50  ;;  %v6419_v63 = vcombine.low %v396_v49, %v400_v50  ;;  %v189_v40 = vld [vmem:[#allocation3 + $0x1d8] sm:$0xff] }
 0x18e   :  { %3202 = vmatpush1.bf16.msra.mxu1 %v6553_v57  ;;  %v7950_v57 = vld [vmem:[%s8054_s0 + $0x18] ss:$28 sps:$4 sm:$0xff]  }
 0x18f   :  { %3203 = vmatprep.subr.bf16.mxu1 %v6562_v61  ;;  %v408_v61 = vld [vmem:[#allocation3 + $0x8b0] sm:$0xff]  ;;  %v193_v42 = vld [vmem:[#allocation3 + $0x1f8] sm:$0xff] }
 0x190   :  { %3304 = vmatpush1.bf16.msra.mxu0 %v6363_v59  ;;  %v404_v59 = vld [vmem:[#allocation3 + $0x890] sm:$0xff]  ;;  %v197_v49 = vld [vmem:[#allocation3 + $0x218] sm:$0xff] }
 0x191   :  { %3305 = vmatprep.subr.bf16.mxu0 %v6372_v62  ;;  %v6165_v62 = vcombine.low %v141_v58, %v145_v48  ;;  %v6428_v1 = vcombine.high %v404_v59, %v408_v61  ;;  %v6427_v7 = vcombine.low %v404_v59, %v408_v61  ;;  %v6214_v58 = vcombine.high %v189_v40, %v193_v42  ;;  %v201_v50 = vld [vmem:[#allocation3 + $0x238] sm:$0xff] }
 0x192   :  { %3204 = vmatpush1.bf16.msra.mxu1 %v6561_v3  ;;  %v161_v3 = vld [vmem:[#allocation3 + $0xf8] sm:$0xff] }
 0x193   :  { %3205 = vmatprep.subr.bf16.mxu1 %v6570_v5  ;;  %v416_v5 = vld [vmem:[#allocation3 + $0x8f0] sm:$0xff]  ;;  %v6182_v8 = vcombine.high %v157_v2, %v161_v3  ;;  %v205_v59 = vld [vmem:[#allocation3 + $0x258] sm:$0xff] }
 0x194   :  { %3306 = vmatpush1.bf16.msra.mxu0 %v6371_v4  ;;  %v412_v4 = vld [vmem:[#allocation3 + $0x8d0] sm:$0xff]  ;;  %v209_v61 = vld [vmem:[#allocation3 + $0x278] sm:$0xff] }
 0x195   :  { %3307 = vmatprep.subr.bf16.mxu0 %v6380_v6  ;;  %v7544_v6 = vld [vmem:[%s8054_s0 + $0x4] ss:$28 sps:$4 sm:$0xff]   ;;  %v6436_v9 = vcombine.high %v412_v4, %v416_v5 }
 0x196   :  { %3206 = vmatpush1.bf16.msra.mxu1 %v6569_v11  ;;  %v169_v11 = vld [vmem:[#allocation3 + $0x138] sm:$0xff] }
 0x197   :  { %3207 = vmatprep.subr.bf16.mxu1 %v6578_v13  ;;  %v424_v13 = vld [vmem:[#allocation3 + $0x930] sm:$0xff]  ;;  %v6190_v16 = vcombine.high %v165_v10, %v169_v11 }
 0x198   :  { %3308 = vmatpush1.bf16.msra.mxu0 %v6379_v12  ;;  %v7939_v24 = vpop.f32.mrb[0].mxu1  ;;  %v420_v12 = vld [vmem:[#allocation3 + $0x910] sm:$0xff] }
 0x199   :  { %3309 = vmatprep.subr.bf16.mxu0 %v6388_v15  ;;  %v7941_v28 = vpop.f32.mrb[1].mxu1  ;;  %v6435_v15 = vcombine.low %v412_v4, %v416_v5  ;;  %v6444_v17 = vcombine.high %v420_v12, %v424_v13  ;;  %v213_v4 = vld [vmem:[#allocation3 + $0x298] sm:$0xff] }
 0x19a   :  { %v7943_v31 = vpop.f32.mrb[2].mxu1  ;;  %3208 = vmatpush1.bf16.msra.mxu1 %v6577_v20  ;;  %v428_v20 = vld [vmem:[#allocation3 + $0x950] sm:$0xff]  ;;  %v217_v5 = vld [vmem:[#allocation3 + $0x2b8] sm:$0xff] }
 0x19b   :  { %v7945_v33 = vpop.f32.mrb[3].mxu1  ;;  %3209 = vmatprep.subr.bf16.mxu1 %v6586_v23  ;;  %v6189_v23 = vcombine.low %v165_v10, %v169_v11  ;;  %v221_v11 = vld [vmem:[#allocation3 + $0x2d8] sm:$0xff] }
 0x19c   :  { %3310 = vmatpush1.bf16.msra.mxu0 %v6387_v22  ;;  %v432_v22 = vld [vmem:[#allocation3 + $0x970] sm:$0xff] }
 0x19d   :  { %3311 = vmatprep.subr.bf16.mxu0 %v6396_v25  ;;  %v6443_v25 = vcombine.low %v420_v12, %v424_v13  ;;  %v6452_v27 = vcombine.high %v428_v20, %v432_v22  ;;  %v225_v12 = vld [vmem:[#allocation3 + $0x2f8] sm:$0xff]  ;;  %v476_v13 = vld [vmem:[#allocation3 + $0xad0] sm:$0xff] }
 0x19e   :  { %3210 = vmatpush1.bf16.msra.mxu1 %v6585_v32  ;;  %v436_v32 = vld [vmem:[#allocation3 + $0x990] sm:$0xff] }
 0x19f   :  { %3211 = vmatprep.subr.bf16.mxu1 %v6594_v35  ;;  %v6197_v35 = vcombine.low %v173_v18, %v177_v19  ;;  %v229_v19 = vld [vmem:[#allocation3 + $0x318] sm:$0xff] }
 0x1a0   :  { %3312 = vmatpush1.bf16.msra.mxu0 %v6395_v34  ;;  %v440_v34 = vld [vmem:[#allocation3 + $0x9b0] sm:$0xff] }
 0x1a1   :  { %3313 = vmatprep.subr.bf16.mxu0 %v6404_v36  ;;  %v6451_v36 = vcombine.low %v428_v20, %v432_v22  ;;  %v6460_v38 = vcombine.high %v436_v32, %v440_v34  ;;  %v233_v20 = vld [vmem:[#allocation3 + $0x338] sm:$0xff]  ;;  %v484_v22 = vld [vmem:[#allocation3 + $0xb10] sm:$0xff] }
 0x1a2   :  { %3212 = vmatpush1.bf16.msra.mxu1 %v6593_v43  ;;  %v444_v43 = vld [vmem:[#allocation3 + $0x9d0] sm:$0xff] }
 0x1a3   :  { %3412 = vmatprep.subr.bf16.mxu1 %v6158_v45  ;;  %v6205_v45 = vcombine.low %v181_v29, %v185_v30  ;;  %v237_v30 = vld [vmem:[#allocation3 + $0x358] sm:$0xff] }
 0x1a4   :  { %3314 = vmatpush1.bf16.msra.mxu0 %v6403_v44  ;;  %v448_v44 = vld [vmem:[#allocation3 + $0x9f0] sm:$0xff] }
 0x1a5   :  { %3326 = vmatprep.subr.bf16.mxu0 %v6412_v46  ;;  %3230 = vmatmul.mubr.bf16.vlgmr.msra.gmra.mrb[4].mxu1 %v7950_v57  ;;  %v6459_v46 = vcombine.low %v436_v32, %v440_v34  ;;  %v6468_v48 = vcombine.high %v444_v43, %v448_v44  ;;  %v241_v32 = vld [vmem:[#allocation3 + $0x378] sm:$0xff]  ;;  %v492_v34 = vld [vmem:[#allocation3 + $0xb50] sm:$0xff] }
 0x1a6   :  { %3413 = vmatpush1.bf16.msra.mxu1 %v6157_v52  ;;  %3444 = vmatprep.mubr.bf16.mxu1 %v7544_v6  ;;  %v452_v52 = vld [vmem:[#allocation3 + $0xa10] sm:$0xff] }
 0x1a7   :  { %3316 = vmatmul.mubr.bf16.vlgmr.msra.gmra.mrb[4].mxu0 %v7911_v39  ;;  %3414 = vmatprep.subr.bf16.mxu1 %v6166_v53  ;;  %v6173_v39 = vcombine.low %v149_v55, %v153_v56  ;;  %v6213_v53 = vcombine.low %v189_v40, %v193_v42  ;;  %v6222_v55 = vcombine.high %v197_v49, %v201_v50  ;;  %v468_v6 = vld [vmem:[#allocation3 + $0xa90] sm:$0xff]  ;;  %v245_v42 = vld [vmem:[#allocation3 + $0x398] sm:$0xff] }
 0x1a8   :  { %3327 = vmatpush1.bf16.msra.mxu0 %v6411_v60  ;;  %3358 = vmatprep.mubr.bf16.mxu0 %v7917_v41  ;;  %v6181_v41 = vcombine.low %v157_v2, %v161_v3  ;;  %v456_v60 = vld [vmem:[#allocation3 + $0xa30] sm:$0xff]  ;;  %v6230_v2 = vcombine.high %v205_v59, %v209_v61 }
 0x1a9   :  { %3328 = vmatprep.subr.bf16.mxu0 %v6420_v54  ;;  %v6467_v54 = vcombine.low %v444_v43, %v448_v44  ;;  %v6476_v56 = vcombine.high %v452_v52, %v456_v60  ;;  %v249_v43 = vld [vmem:[#allocation3 + $0x3b8] sm:$0xff]  ;;  %v500_v44 = vld [vmem:[#allocation3 + $0xb90] sm:$0xff] }
 0x1aa   :  { %3415 = vmatpush1.bf16.msra.mxu1 %v6165_v62  ;;  %v460_v62 = vld [vmem:[#allocation3 + $0xa50] sm:$0xff] }
 0x1ab   :  { %3416 = vmatprep.subr.bf16.mxu1 %v6174_v0  ;;  %v6221_v0 = vcombine.low %v197_v49, %v201_v50  ;;  %v253_v50 = vld [vmem:[#allocation3 + $0x3d8] sm:$0xff] }
 0x1ac   :  { %3329 = vmatpush1.bf16.msra.mxu0 %v6419_v63  ;;  %v464_v63 = vld [vmem:[#allocation3 + $0xa70] sm:$0xff] }
 0x1ad   :  { %3330 = vmatprep.subr.bf16.mxu0 %v6428_v1  ;;  %v6475_v1 = vcombine.low %v452_v52, %v456_v60  ;;  %v6484_v3 = vcombine.high %v460_v62, %v464_v63  ;;  %v257_v52 = vld [vmem:[#allocation3 + $0x3f8] sm:$0xff]  ;;  %v508_v60 = vld [vmem:[#allocation3 + $0xbd0] sm:$0xff] }
 0x1ae   :  { %3417 = vmatpush1.bf16.msra.mxu1 %v6173_v39  ;;  %v472_v39 = vld [vmem:[#allocation3 + $0xab0] sm:$0xff] }
 0x1af   :  { %3418 = vmatprep.subr.bf16.mxu1 %v6182_v8  ;;  %v6483_v8 = vcombine.low %v460_v62, %v464_v63  ;;  %v6492_v10 = vcombine.high %v468_v6, %v472_v39  ;;  %v265_v62 = vld [vmem:[#allocation3 + $0x438] sm:$0xff]  ;;  %v516_v63 = vld [vmem:[#allocation3 + $0xc10] sm:$0xff] }
 0x1b0   :  { %3331 = vmatpush1.bf16.msra.mxu0 %v6427_v7  ;;  %v6229_v7 = vcombine.low %v205_v59, %v209_v61  ;;  %v261_v61 = vld [vmem:[#allocation3 + $0x418] sm:$0xff] }
 0x1b1   :  { %3332 = vmatprep.subr.bf16.mxu0 %v6436_v9  ;;  %v6238_v9 = vcombine.high %v213_v4, %v217_v5 }
 0x1b2   :  { %3419 = vmatpush1.bf16.msra.mxu1 %v6181_v41  ;;  %v480_v41 = vld [vmem:[#allocation3 + $0xaf0] sm:$0xff] }
 0x1b3   :  { %3420 = vmatprep.subr.bf16.mxu1 %v6190_v16  ;;  %v6491_v16 = vcombine.low %v468_v6, %v472_v39  ;;  %v6500_v18 = vcombine.high %v476_v13, %v480_v41  ;;  %v273_v6 = vld [vmem:[#allocation3 + $0x478] sm:$0xff]  ;;  %v524_v39 = vld [vmem:[#allocation3 + $0xc50] sm:$0xff] }
 0x1b4   :  { %3333 = vmatpush1.bf16.msra.mxu0 %v6435_v15  ;;  %v6237_v15 = vcombine.low %v213_v4, %v217_v5  ;;  %v269_v5 = vld [vmem:[#allocation3 + $0x458] sm:$0xff] }
 0x1b5   :  { %3334 = vmatprep.subr.bf16.mxu0 %v6444_v17  ;;  %v6246_v17 = vcombine.high %v221_v11, %v225_v12 }
 0x1b6   :  { %3421 = vmatpush1.bf16.msra.mxu1 %v6189_v23  ;;  %v488_v23 = vld [vmem:[#allocation3 + $0xb30] sm:$0xff] }
 0x1b7   :  { %3422 = vmatprep.subr.bf16.mxu1 %v6198_v26  ;;  %v6499_v26 = vcombine.low %v476_v13, %v480_v41  ;;  %v6508_v29 = vcombine.high %v484_v22, %v488_v23  ;;  %v281_v13 = vld [vmem:[#allocation3 + $0x4b8] sm:$0xff]  ;;  %v532_v41 = vld [vmem:[#allocation3 + $0xc90] sm:$0xff] }
 0x1b8   :  { %3335 = vmatpush1.bf16.msra.mxu0 %v6443_v25  ;;  %v6245_v25 = vcombine.low %v221_v11, %v225_v12  ;;  %v277_v12 = vld [vmem:[#allocation3 + $0x498] sm:$0xff] }
 0x1b9   :  { %3336 = vmatprep.subr.bf16.mxu0 %v6452_v27  ;;  %v6254_v27 = vcombine.high %v229_v19, %v233_v20 }
 0x1ba   :  { %3423 = vmatpush1.bf16.msra.mxu1 %v6197_v35  ;;  %v496_v35 = vld [vmem:[#allocation3 + $0xb70] sm:$0xff] }
 0x1bb   :  { %3424 = vmatprep.subr.bf16.mxu1 %v6206_v37  ;;  %v6507_v37 = vcombine.low %v484_v22, %v488_v23  ;;  %v6516_v40 = vcombine.high %v492_v34, %v496_v35  ;;  %v285_v22 = vld [vmem:[#allocation3 + $0x4d8] sm:$0xff] }
 0x1bc   :  { %3337 = vmatpush1.bf16.msra.mxu0 %v6451_v36  ;;  %v6253_v36 = vcombine.low %v229_v19, %v233_v20  ;;  %v580_v19 = vlaneseq  ;;  %v289_v23 = vld [vmem:[#allocation3 + $0x4f8] sm:$0xff] }
 0x1bd   :  { %3338 = vmatprep.subr.bf16.mxu0 %v6460_v38  ;;  %v6262_v38 = vcombine.high %v237_v30, %v241_v32 }
 0x1be   :  { %3425 = vmatpush1.bf16.msra.mxu1 %v6205_v45  ;;  %v504_v45 = vld [vmem:[#allocation3 + $0xbb0] sm:$0xff] }
 0x1bf   :  { %3426 = vmatprep.subr.bf16.mxu1 %v6214_v58  ;;  %v6515_v58 = vcombine.low %v492_v34, %v496_v35  ;;  %v6524_v49 = vcombine.high %v500_v44, %v504_v45  ;;  %v297_v34 = vld [vmem:[#allocation3 + $0x538] sm:$0xff]  ;;  %v548_v35 = vld [vmem:[#allocation3 + $0xd10] sm:$0xff] }
 0x1c0   :  { %3339 = vmatpush1.bf16.msra.mxu0 %v6459_v46  ;;  %v6261_v46 = vcombine.low %v237_v30, %v241_v32  ;;  %v293_v32 = vld [vmem:[#allocation3 + $0x518] sm:$0xff] }
 0x1c1   :  { %3340 = vmatprep.subr.bf16.mxu0 %v6468_v48  ;;  %v6270_v48 = vcombine.high %v245_v42, %v249_v43 }
 0x1c2   :  { %3427 = vmatpush1.bf16.msra.mxu1 %v6213_v53  ;;  %v512_v53 = vld [vmem:[#allocation3 + $0xbf0] sm:$0xff] }
 0x1c3   :  { %3428 = vmatprep.subr.bf16.mxu1 %v6222_v55  ;;  %v6523_v55 = vcombine.low %v500_v44, %v504_v45  ;;  %v6532_v59 = vcombine.high %v508_v60, %v512_v53  ;;  %v305_v44 = vld [vmem:[#allocation3 + $0x578] sm:$0xff]  ;;  %v7967_v45 = vld [vmem:[#allocation5] sm:$0xff] }
 0x1c4   :  { %3341 = vmatpush1.bf16.msra.mxu0 %v6467_v54  ;;  %v6269_v54 = vcombine.low %v245_v42, %v249_v43  ;;  %v301_v43 = vld [vmem:[#allocation3 + $0x558] sm:$0xff] }
 0x1c5   :  { %3342 = vmatprep.subr.bf16.mxu0 %v6476_v56  ;;  %v6278_v56 = vcombine.high %v253_v50, %v257_v52 }
 0x1c6   :  { %3429 = vmatpush1.bf16.msra.mxu1 %v6221_v0  ;;  %v520_v0 = vld [vmem:[#allocation3 + $0xc30] sm:$0xff] }
 0x1c7   :  { %3430 = vmatprep.subr.bf16.mxu1 %v6230_v2  ;;  %v6531_v2 = vcombine.low %v508_v60, %v512_v53  ;;  %v6540_v4 = vcombine.high %v516_v63, %v520_v0 }
 0x1c8   :  { %3343 = vmatpush1.bf16.msra.mxu0 %v6475_v1  ;;  %v6277_v1 = vcombine.low %v253_v50, %v257_v52  ;;  %v6326_v52 = vcombine.high %v301_v43, %v305_v44 }
 0x1c9   :  { %3344 = vmatprep.subr.bf16.mxu0 %v6484_v3  ;;  %v6286_v3 = vcombine.high %v261_v61, %v265_v62 }
 0x1ca   :  { %3431 = vmatpush1.bf16.msra.mxu1 %v6229_v7  ;;  %v528_v7 = vld [vmem:[#allocation3 + $0xc70] sm:$0xff] }
 0x1cb   :  { %3432 = vmatprep.subr.bf16.mxu1 %v6238_v9  ;;  %v6539_v9 = vcombine.low %v516_v63, %v520_v0  ;;  %v6548_v11 = vcombine.high %v524_v39, %v528_v7 }
 0x1cc   :  { %3345 = vmatpush1.bf16.msra.mxu0 %v6483_v8  ;;  %v6285_v8 = vcombine.low %v261_v61, %v265_v62  ;;  %v568_v61 = vld [vmem:[#allocation3 + $0xdb0] sm:$0xff]  ;;  %v6325_v62 = vcombine.low %v301_v43, %v305_v44  ;;  %v7058_v44 = vld [vmem:[#allocation7 + $0x24] ss:$16 sps:$4 sm:$0xff]  }
 0x1cd   :  { %3346 = vmatprep.subr.bf16.mxu0 %v6492_v10  ;;  %v6294_v10 = vcombine.high %v269_v5, %v273_v6 }
 0x1ce   :  { %3433 = vmatpush1.bf16.msra.mxu1 %v6237_v15  ;;  %v536_v15 = vld [vmem:[#allocation3 + $0xcb0] sm:$0xff] }
 0x1cf   :  { %3434 = vmatprep.subr.bf16.mxu1 %v6246_v17  ;;  %v6547_v17 = vcombine.low %v524_v39, %v528_v7  ;;  %v6556_v20 = vcombine.high %v532_v41, %v536_v15  ;;  %v572_v39 = vld [vmem:[#allocation3 + $0xdd0] sm:$0xff] }
 0x1d0   :  { %3347 = vmatpush1.bf16.msra.mxu0 %v6491_v16  ;;  %v6293_v16 = vcombine.low %v269_v5, %v273_v6  ;;  %v576_v7 = vld [vmem:[#allocation3 + $0xdf0] sm:$0xff] }
 0x1d1   :  { %3348 = vmatprep.subr.bf16.mxu0 %v6500_v18  ;;  %v6302_v18 = vcombine.high %v277_v12, %v281_v13 }
 0x1d2   :  { %3435 = vmatpush1.bf16.msra.mxu1 %v6245_v25  ;;  %v540_v25 = vld [vmem:[#allocation3 + $0xcd0] sm:$0xff] }
 0x1d3   :  { %3436 = vmatprep.subr.bf16.mxu1 %v6254_v27  ;;  %v6310_v27 = vcombine.high %v285_v22, %v289_v23 }
 0x1d4   :  { %3349 = vmatpush1.bf16.msra.mxu0 %v6499_v26  ;;  %v544_v26 = vld [vmem:[#allocation3 + $0xcf0] sm:$0xff] }
 0x1d5   :  { %3350 = vmatprep.subr.bf16.mxu0 %v6508_v29  ;;  %v7962_v29 = vshrl.u32 %v580_v19, 7  ;;  %v6564_v30 = vcombine.high %v540_v25, %v544_v26  ;;  %v325_v19 = vld [vmem:[#allocation3 + $0x618] sm:$0xff] }
 0x1d6   :  { %3437 = vmatpush1.bf16.msra.mxu1 %v6253_v36  ;;  %v552_v36 = vld [vmem:[#allocation3 + $0xd30] sm:$0xff] }
 0x1d7   :  { %3438 = vmatprep.subr.bf16.mxu1 %v6262_v38  ;;  %v6563_v38 = vcombine.low %v540_v25, %v544_v26  ;;  %v6572_v42 = vcombine.high %v548_v35, %v552_v36  ;;  %v6571_v50 = vcombine.low %v548_v35, %v552_v36  ;;  %v333_v35 = vld [vmem:[#allocation3 + $0x658] sm:$0xff] }
 0x1d8   :  { %3351 = vmatpush1.bf16.msra.mxu0 %v6507_v37  ;;  %v6309_v37 = vcombine.low %v285_v22, %v289_v23  ;;  %v337_v36 = vld [vmem:[#allocation3 + $0x678] sm:$0xff] }
 0x1d9   :  { %3352 = vmatprep.subr.bf16.mxu0 %v6516_v40  ;;  %v7965_v40 = vsub.s32 0, %v7962_v29  ;;  %v6358_v43 = vcombine.high %v333_v35, %v337_v36 }
 0x1da   :  { %3439 = vmatpush1.bf16.msra.mxu1 %v6261_v46  ;;  %v7970_v46 = vsub.s32 1, %v7962_v29 }
 0x1db   :  { %3440 = vmatprep.subr.bf16.mxu1 %v6270_v48  ;;  %v560_v48 = vld [vmem:[#allocation3 + $0xd70] sm:$0xff]  ;;  %v583_v60 = vrot.slane %v7967_v45, %v7965_v40 }
 0x1dc   :  { %3353 = vmatpush1.bf16.msra.mxu0 %v6515_v58  ;;  %v556_v58 = vld [vmem:[#allocation3 + $0xd50] sm:$0xff] }
 0x1dd   :  { %3354 = vmatprep.subr.bf16.mxu0 %v6524_v49  ;;  %v6317_v49 = vcombine.low %v293_v32, %v297_v34  ;;  %v6580_v53 = vcombine.high %v556_v58, %v560_v48  ;;  %v6579_v63 = vcombine.low %v556_v58, %v560_v48  ;;  %v341_v58 = vld [vmem:[#allocation3 + $0x698] sm:$0xff] }
 0x1de   :  { %3441 = vmatpush1.bf16.msra.mxu1 %v6269_v54  ;;  %v309_v54 = vld [vmem:[#allocation3 + $0x598] sm:$0xff] }
 0x1df   :  { %3442 = vmatprep.subr.bf16.mxu1 %v6278_v56  ;;  %v587_v56 = vrot.slane %v7967_v45, %v7970_v46  ;;  %v345_v48 = vld [vmem:[#allocation3 + $0x6b8] sm:$0xff] }
 0x1e0   :  { %3355 = vmatpush1.bf16.msra.mxu0 %v6523_v55  ;;  %v313_v55 = vld [vmem:[#allocation3 + $0x5b8] sm:$0xff] }
 0x1e1   :  { %3356 = vmatprep.subr.bf16.mxu0 %v6532_v59  ;;  %v564_v59 = vld [vmem:[#allocation3 + $0xd90] sm:$0xff]  ;;  %v6334_v0 = vcombine.high %v309_v54, %v313_v55  ;;  %v2933_v5 = vadd.f32 %v7941_v28, %v587_v56 }
 0x1e2   :  { %3443 = vmatpush1.bf16.msra.mxu1 %v6277_v1  ;;  %v2931_v1 = vadd.f32 %v7939_v24, %v583_v60 }
 0x1e3   :  { %3455 = vmatprep.subr.bf16.mxu1 %v6286_v3  ;;  %v317_v3 = vld [vmem:[#allocation3 + $0x5d8] sm:$0xff] }
 0x1e4   :  { %3357 = vmatpush1.bf16.msra.mxu0 %v6531_v2  ;;  %v6588_v2 = vcombine.high %v564_v59, %v568_v61 }
 0x1e5   :  { %3369 = vmatprep.subr.bf16.mxu0 %v6540_v4  ;;  %3445 = vmatmul.mubr.bf16.vlgmr.msra.gmra.mrb[8].mxu1 %v7923_v14  ;;  %v6301_v14 = vcombine.low %v277_v12, %v281_v13  ;;  %v321_v4 = vld [vmem:[#allocation3 + $0x5f8] sm:$0xff]  ;;  %v6333_v12 = vcombine.low %v309_v54, %v313_v55  ;;  %v2937_v13 = vadd.f32 %v7945_v33, %v587_v56 }
 0x1e6   :  { %3456 = vmatpush1.bf16.msra.mxu1 %v6285_v8  ;;  %3487 = vmatprep.mubr.bf16.mxu1 %v7929_v51  ;;  %v6318_v51 = vcombine.high %v293_v32, %v297_v34  ;;  %v2935_v8 = vadd.f32 %v7943_v31, %v583_v60  ;;  %v6341_v25 = vcombine.low %v317_v3, %v321_v4  ;;  %v7061_v60 = vld [vmem:[#allocation7 + $0x44] ss:$16 sps:$4 sm:$0xff]   ;;  %v7059_v56 = vld [vmem:[#allocation7 + $0x40] ss:$16 sps:$4 sm:$0xff]  }
 0x1e7   :  { %3359 = vmatmul.mubr.bf16.vlgmr.msra.gmra.mrb[4].mxu0 %v7935_v47  ;;  %3457 = vmatprep.subr.bf16.mxu1 %v6294_v10  ;;  %v6555_v47 = vcombine.low %v532_v41, %v536_v15  ;;  %v6342_v15 = vcombine.high %v317_v3, %v321_v4  ;;  %v6595_v33 = vcombine.low %v572_v39, %v576_v7  ;;  %v353_v54 = vld [vmem:[#allocation3 + $0x6f8] sm:$0xff] }
 0x1e8   :  { %3370 = vmatpush1.bf16.msra.mxu0 %v6539_v9  ;;  %3401 = vmatprep.mubr.bf16.mxu0 %v7725_v21  ;;  %v6365_v55 = vcombine.low %v341_v58, %v345_v48  ;;  %v365_v3 = vld [vmem:[#allocation3 + $0x758] sm:$0xff] }
 0x1e9   :  { %3371 = vmatprep.subr.bf16.mxu0 %v6548_v11  ;;  %v6587_v11 = vcombine.low %v564_v59, %v568_v61  ;;  %v357_v61 = vld [vmem:[#allocation3 + $0x718] sm:$0xff] }
 0x1ea   :  { %3458 = vmatpush1.bf16.msra.mxu1 %v6293_v16  ;;  %v369_v4 = vld [vmem:[#allocation3 + $0x778] sm:$0xff] }
 0x1eb   :  { %3459 = vmatprep.subr.bf16.mxu1 %v6302_v18  ;;  %v6596_v18 = vcombine.high %v572_v39, %v576_v7  ;;  %v6390_v39 = vcombine.high %v365_v3, %v369_v4  ;;  %v7070_v7 = vld [vmem:[#allocation7 + $0xa4] ss:$16 sps:$4 sm:$0xff]  }
 0x1ec   :  { %3372 = vmatpush1.bf16.msra.mxu0 %v6547_v17 }
 0x1ed   :  { %3373 = vmatprep.subr.bf16.mxu0 %v6556_v20  ;;  %v329_v20 = vld [vmem:[#allocation3 + $0x638] sm:$0xff] }
 0x1ee   :  { %3460 = vmatpush1.bf16.msra.mxu1 %v6301_v14  ;;  %v6350_v14 = vcombine.high %v325_v19, %v329_v20 }
 0x1ef   :  { %3461 = vmatprep.subr.bf16.mxu1 %v6310_v27 }
 0x1f0   :  { %3374 = vmatpush1.bf16.msra.mxu0 %v6555_v47 }
 0x1f1   :  { %3375 = vmatprep.subr.bf16.mxu0 %v6564_v30  ;;  %v7055_v30 = vld [vmem:[#allocation7 + $0x4] ss:$16 sps:$4 sm:$0xff]  }
 0x1f2   :  { %3462 = vmatpush1.bf16.msra.mxu1 %v6309_v37 }
 0x1f3   :  { %3463 = vmatprep.subr.bf16.mxu1 %v6318_v51  ;;  %v7053_v51 = vld [vmem:[#allocation7] ss:$16 sps:$4 sm:$0xff]  }
 0x1f4   :  { %3376 = vmatpush1.bf16.msra.mxu0 %v6563_v38  ;;  %v6349_v38 = vcombine.low %v325_v19, %v329_v20  ;;  %v393_v19 = vld [vmem:[#allocation3 + $0x838] sm:$0xff] }
 0x1f5   :  { %3377 = vmatprep.subr.bf16.mxu0 %v6572_v42 }
 0x1f6   :  { %3464 = vmatpush1.bf16.msra.mxu1 %v6317_v49  ;;  %v6357_v49 = vcombine.low %v333_v35, %v337_v36  ;;  %v7546_v36 = vld [vmem:[%s8054_s0 + $0x14] ss:$28 sps:$4 sm:$0xff]  }
 0x1f7   :  { %3465 = vmatprep.subr.bf16.mxu1 %v6326_v52  ;;  %v6366_v52 = vcombine.high %v341_v58, %v345_v48  ;;  %v417_v58 = vld [vmem:[#allocation3 + $0x8f8] sm:$0xff] }
 0x1f8   :  { %3378 = vmatpush1.bf16.msra.mxu0 %v6571_v50  ;;  %v7056_v50 = vld [vmem:[#allocation7 + $0x20] ss:$16 sps:$4 sm:$0xff]  }
 0x1f9   :  { %3379 = vmatprep.subr.bf16.mxu0 %v6580_v53  ;;  %v349_v53 = vld [vmem:[#allocation3 + $0x6d8] sm:$0xff] }
 0x1fa   :  { %v3059_v6 = vpop.f32.mrb[0].mxu0  ;;  %3466 = vmatpush1.bf16.msra.mxu1 %v6325_v62  ;;  %v6374_v59 = vcombine.high %v349_v53, %v353_v54  ;;  %v361_v62 = vld [vmem:[#allocation3 + $0x738] sm:$0xff] }
 0x1fb   :  { %v6925_v9 = vadd.f32 %v3059_v6, %v2931_v1  ;;  %v3061_v10 = vpop.f32.mrb[1].mxu0  ;;  %3467 = vmatprep.subr.bf16.mxu1 %v6334_v0  ;;  %v7062_v0 = vld [vmem:[#allocation7 + $0x60] ss:$16 sps:$4 sm:$0xff]   ;;  %v6382_v1 = vcombine.high %v357_v61, %v361_v62 }
 0x1fc   :  { %v6927_v41 = vadd.f32 %v3061_v10, %v2933_v5  ;;  %v3063_v24 = vpop.f32.mrb[2].mxu0  ;;  %3380 = vmatpush1.bf16.msra.mxu0 %v6579_v63  ;;  %v6373_v63 = vcombine.low %v349_v53, %v353_v54  ;;  %v6381_v5 = vcombine.low %v357_v61, %v361_v62  ;;  %v7065_v6 = vld [vmem:[#allocation7 + $0x80] ss:$16 sps:$4 sm:$0xff]   ;;  %v6389_v10 = vcombine.low %v365_v3, %v369_v4 }
 0x1fd   :  { %v3584_v16 = vmul.f32 0.2, %v6925_v9  ;;  %v6929_v17 = vadd.f32 %v3063_v24, %v2935_v8  ;;  %v3065_v28 = vpop.f32.mrb[3].mxu0  ;;  %3381 = vmatprep.subr.bf16.mxu0 %v6588_v2  ;;  %v7067_v2 = vld [vmem:[#allocation7 + $0x84] ss:$16 sps:$4 sm:$0xff]  }
 0x1fe   :  { %v3585_v31 = vmul.f32 0.2, %v6927_v41  ;;  %v6931_v22 = vadd.f32 %v3065_v28, %v2937_v13  ;;  %3468 = vmatpush1.bf16.msra.mxu1 %v6333_v12  ;;  %v373_v8 = vld [vmem:[#allocation3 + $0x798] sm:$0xff] }
 0x1ff   :  { %v3592_v23 = vmul.f32 0.2, %v6929_v17  ;;  %3469 = vmatprep.subr.bf16.mxu1 %v6342_v15  ;;  %v3600_v47 = vmax.f32 %v6925_v9, %v3584_v16  ;;  %v377_v9 = vld [vmem:[#allocation3 + $0x7b8] sm:$0xff] }
 0x200   :  { %v3593_v26 = vmul.f32 0.2, %v6931_v22  ;;  %3382 = vmatpush1.bf16.msra.mxu0 %v6587_v11  ;;  %v3601_v32 = vmax.f32 %v6927_v41, %v3585_v31  ;;  %v7068_v11 = vld [vmem:[#allocation7 + $0xa0] ss:$16 sps:$4 sm:$0xff]   ;;  %v6398_v12 = vcombine.high %v373_v8, %v377_v9  ;;  %v7073_v13 = vld [vmem:[#allocation7 + $0xc4] ss:$16 sps:$4 sm:$0xff]   ;;  %v6397_v15 = vcombine.low %v373_v8, %v377_v9 }
 0x201   :  { %v3608_v27 = vmax.f32 %v6929_v17, %v3592_v23  ;;  %3383 = vmatprep.subr.bf16.mxu0 %v6596_v18  ;;  %v381_v41 = vld [vmem:[#allocation3 + $0x7d8] sm:$0xff] }
 0x202   :  { %v3609_v34 = vmax.f32 %v6931_v22, %v3593_v26  ;;  %3470 = vmatpush1.bf16.msra.mxu1 %v6341_v25  ;;  %v385_v24 = vld [vmem:[#allocation3 + $0x7f8] sm:$0xff] }
 0x203   :  { %v7980_v37 = vpack.c.bf16 %v3608_v27, %v3600_v47  ;;  %3471 = vmatprep.subr.bf16.mxu1 %v6350_v14  ;;  %v7071_v16 = vld [vmem:[#allocation7 + $0xc0] ss:$16 sps:$4 sm:$0xff]   ;;  %v6406_v17 = vcombine.high %v381_v41, %v385_v24  ;;  %v7076_v28 = vld [vmem:[#allocation7 + $0xe4] ss:$16 sps:$4 sm:$0xff]   ;;  %v6405_v20 = vcombine.low %v381_v41, %v385_v24 }
 0x204   :  { %3384 = vmatpush1.bf16.msra.mxu0 %v6595_v33  ;;  %v7982_v42 = vpack.c.bf16 %v3609_v34, %v3601_v32  ;;  %v389_v18 = vld [vmem:[#allocation3 + $0x818] sm:$0xff]  ;;  %v7545_v34 = vld [vmem:[%s8054_s0 + $0x8] ss:$28 sps:$4 sm:$0xff]  }
 0x205   :  { %5182 = vmatprep.subr.bf16.mxu0 %v7055_v30  ;;  %v7074_v31 = vld [vmem:[#allocation7 + $0xe0] ss:$16 sps:$4 sm:$0xff]   ;;  %v6414_v22 = vcombine.high %v389_v18, %v393_v19  ;;  %v7079_v23 = vld [vmem:[#allocation7 + $0x104] ss:$16 sps:$4 sm:$0xff]   ;;  %v6413_v33 = vcombine.low %v389_v18, %v393_v19 }
 0x206   :  { %3472 = vmatpush1.bf16.msra.mxu1 %v6349_v38  ;;  %v397_v25 = vld [vmem:[#allocation3 + $0x858] sm:$0xff] }
 0x207   :  { %3402 = vmatmul.mubr.bf16.vlgmr.msra.gmra.mrb[4].mxu0 %v7950_v57  ;;  %3473 = vmatprep.subr.bf16.mxu1 %v6358_v43  ;;  %v7064_v57 = vld [vmem:[#allocation7 + $0x64] ss:$16 sps:$4 sm:$0xff]   ;;  %v7077_v14 = vld [vmem:[#allocation7 + $0x100] ss:$16 sps:$4 sm:$0xff]  }
 0x208   :  { %5183 = vmatpush1.bf16.msra.mxu0 %v7053_v51  ;;  %5214 = vmatprep.mubr.bf16.mxu0 %v7982_v42  ;;  %v401_v26 = vld [vmem:[#allocation3 + $0x878] sm:$0xff] }
 0x209   :  { %5184 = vmatprep.subr.bf16.mxu0 %v7058_v44  ;;  %v6422_v47 = vcombine.high %v397_v25, %v401_v26  ;;  %v7082_v27 = vld [vmem:[#allocation7 + $0x124] ss:$16 sps:$4 sm:$0xff]   ;;  %v6421_v35 = vcombine.low %v397_v25, %v401_v26  ;;  %v7080_v38 = vld [vmem:[#allocation7 + $0x120] ss:$16 sps:$4 sm:$0xff]  }
 0x20a   :  { %3474 = vmatpush1.bf16.msra.mxu1 %v6357_v49  ;;  %v405_v30 = vld [vmem:[#allocation3 + $0x898] sm:$0xff] }
 0x20b   :  { %3475 = vmatprep.subr.bf16.mxu1 %v6366_v52  ;;  %v409_v32 = vld [vmem:[#allocation3 + $0x8b8] sm:$0xff] }
 0x20c   :  { %5185 = vmatpush1.bf16.msra.mxu0 %v7056_v50  ;;  %v6430_v51 = vcombine.high %v405_v30, %v409_v32  ;;  %v7085_v43 = vld [vmem:[#allocation7 + $0x144] ss:$16 sps:$4 sm:$0xff]   ;;  %v6429_v48 = vcombine.low %v405_v30, %v409_v32  ;;  %v7083_v49 = vld [vmem:[#allocation7 + $0x140] ss:$16 sps:$4 sm:$0xff]  }
 0x20d   :  { %5186 = vmatprep.subr.bf16.mxu0 %v7061_v60  ;;  %v413_v44 = vld [vmem:[#allocation3 + $0x8d8] sm:$0xff] }
 0x20e   :  { %3476 = vmatpush1.bf16.msra.mxu1 %v6365_v55  ;;  %v6438_v50 = vcombine.high %v413_v44, %v417_v58  ;;  %v7088_v52 = vld [vmem:[#allocation7 + $0x164] ss:$16 sps:$4 sm:$0xff]   ;;  %v6437_v54 = vcombine.low %v413_v44, %v417_v58  ;;  %v7086_v55 = vld [vmem:[#allocation7 + $0x160] ss:$16 sps:$4 sm:$0xff]  }
 0x20f   :  { %3477 = vmatprep.subr.bf16.mxu1 %v6374_v59  ;;  %v421_v60 = vld [vmem:[#allocation3 + $0x918] sm:$0xff] }
 0x210   :  { %5187 = vmatpush1.bf16.msra.mxu0 %v7059_v56  ;;  %v425_v53 = vld [vmem:[#allocation3 + $0x938] sm:$0xff] }
 0x211   :  { %5188 = vmatprep.subr.bf16.mxu0 %v7064_v57  ;;  %v6446_v56 = vcombine.high %v421_v60, %v425_v53  ;;  %v7091_v59 = vld [vmem:[#allocation7 + $0x184] ss:$16 sps:$4 sm:$0xff]   ;;  %v6445_v62 = vcombine.low %v421_v60, %v425_v53  ;;  %v7110_v44 = vld [vmem:[#allocation7 + $0x260] ss:$16 sps:$4 sm:$0xff]  }
 0x212   :  { %3478 = vmatpush1.bf16.msra.mxu1 %v6373_v63  ;;  %v429_v57 = vld [vmem:[#allocation3 + $0x958] sm:$0xff] }
 0x213   :  { %3479 = vmatprep.subr.bf16.mxu1 %v6382_v1  ;;  %v433_v61 = vld [vmem:[#allocation3 + $0x978] sm:$0xff] }
 0x214   :  { %5189 = vmatpush1.bf16.msra.mxu0 %v7062_v0  ;;  %v7089_v63 = vld [vmem:[#allocation7 + $0x180] ss:$16 sps:$4 sm:$0xff]   ;;  %v6454_v0 = vcombine.high %v429_v57, %v433_v61  ;;  %v7094_v1 = vld [vmem:[#allocation7 + $0x1a4] ss:$16 sps:$4 sm:$0xff]   ;;  %v6453_v4 = vcombine.low %v429_v57, %v433_v61 }
 0x215   :  { %5190 = vmatprep.subr.bf16.mxu0 %v7067_v2  ;;  %v437_v2 = vld [vmem:[#allocation3 + $0x998] sm:$0xff] }
 0x216   :  { %3480 = vmatpush1.bf16.msra.mxu1 %v6381_v5  ;;  %v441_v3 = vld [vmem:[#allocation3 + $0x9b8] sm:$0xff] }
 0x217   :  { %3481 = vmatprep.subr.bf16.mxu1 %v6390_v39  ;;  %v7092_v5 = vld [vmem:[#allocation7 + $0x1a0] ss:$16 sps:$4 sm:$0xff]   ;;  %v7097_v39 = vld [vmem:[#allocation7 + $0x1c4] ss:$16 sps:$4 sm:$0xff]   ;;  %v6461_v9 = vcombine.low %v437_v2, %v441_v3 }
 0x218   :  { %5191 = vmatpush1.bf16.msra.mxu0 %v7065_v6  ;;  %v6462_v6 = vcombine.high %v437_v2, %v441_v3  ;;  %v449_v8 = vld [vmem:[#allocation3 + $0x9f8] sm:$0xff] }
 0x219   :  { %5192 = vmatprep.subr.bf16.mxu0 %v7070_v7  ;;  %v445_v7 = vld [vmem:[#allocation3 + $0x9d8] sm:$0xff] }
 0x21a   :  { %3482 = vmatpush1.bf16.msra.mxu1 %v6389_v10  ;;  %v7095_v10 = vld [vmem:[#allocation7 + $0x1c0] ss:$16 sps:$4 sm:$0xff]   ;;  %v6469_v24 = vcombine.low %v445_v7, %v449_v8 }
 0x21b   :  { %3483 = vmatprep.subr.bf16.mxu1 %v6398_v12  ;;  %v7100_v12 = vld [vmem:[#allocation7 + $0x1e4] ss:$16 sps:$4 sm:$0xff]   ;;  %v7113_v60 = vld [vmem:[#allocation7 + $0x280] ss:$16 sps:$4 sm:$0xff]  }
 0x21c   :  { %5193 = vmatpush1.bf16.msra.mxu0 %v7068_v11  ;;  %v6470_v11 = vcombine.high %v445_v7, %v449_v8  ;;  %v457_v41 = vld [vmem:[#allocation3 + $0xa38] sm:$0xff] }
 0x21d   :  { %5194 = vmatprep.subr.bf16.mxu0 %v7073_v13  ;;  %v453_v13 = vld [vmem:[#allocation3 + $0xa18] sm:$0xff] }
 0x21e   :  { %3484 = vmatpush1.bf16.msra.mxu1 %v6397_v15  ;;  %v7098_v15 = vld [vmem:[#allocation7 + $0x1e0] ss:$16 sps:$4 sm:$0xff]   ;;  %v6477_v19 = vcombine.low %v453_v13, %v457_v41 }
 0x21f   :  { %3485 = vmatprep.subr.bf16.mxu1 %v6406_v17  ;;  %v7103_v17 = vld [vmem:[#allocation7 + $0x204] ss:$16 sps:$4 sm:$0xff]   ;;  %v7116_v57 = vld [vmem:[#allocation7 + $0x2a0] ss:$16 sps:$4 sm:$0xff]  }
 0x220   :  { %5195 = vmatpush1.bf16.msra.mxu0 %v7071_v16  ;;  %v6478_v16 = vcombine.high %v453_v13, %v457_v41  ;;  %v465_v18 = vld [vmem:[#allocation3 + $0xa78] sm:$0xff] }
 0x221   :  { %5196 = vmatprep.subr.bf16.mxu0 %v7076_v28  ;;  %v461_v28 = vld [vmem:[#allocation3 + $0xa58] sm:$0xff] }
 0x222   :  { %3486 = vmatpush1.bf16.msra.mxu1 %v6405_v20  ;;  %v7101_v20 = vld [vmem:[#allocation7 + $0x200] ss:$16 sps:$4 sm:$0xff]   ;;  %v6485_v26 = vcombine.low %v461_v28, %v465_v18 }
 0x223   :  { %3498 = vmatprep.subr.bf16.mxu1 %v6414_v22  ;;  %v7106_v22 = vld [vmem:[#allocation7 + $0x224] ss:$16 sps:$4 sm:$0xff]   ;;  %v7119_v2 = vld [vmem:[#allocation7 + $0x2c0] ss:$16 sps:$4 sm:$0xff]  }
 0x224   :  { %5197 = vmatpush1.bf16.msra.mxu0 %v7074_v31  ;;  %v6486_v31 = vcombine.high %v461_v28, %v465_v18  ;;  %v473_v25 = vld [vmem:[#allocation3 + $0xab8] sm:$0xff] }
 0x225   :  { %5198 = vmatprep.subr.bf16.mxu0 %v7079_v23  ;;  %3488 = vmatmul.mubr.bf16.vlgmr.msra.gmra.mrb[8].mxu1 %v7545_v34  ;;  %v469_v23 = vld [vmem:[#allocation3 + $0xa98] sm:$0xff] }
 0x226   :  { %3499 = vmatpush1.bf16.msra.mxu1 %v6413_v33  ;;  %3530 = vmatprep.mubr.bf16.mxu1 %v7546_v36  ;;  %v7104_v33 = vld [vmem:[#allocation7 + $0x220] ss:$16 sps:$4 sm:$0xff]   ;;  %v6493_v32 = vcombine.low %v469_v23, %v473_v25  ;;  %v7112_v36 = vld [vmem:[#allocation7 + $0x264] ss:$16 sps:$4 sm:$0xff]  }
 0x227   :  { %3500 = vmatprep.subr.bf16.mxu1 %v6422_v47  ;;  %v7109_v47 = vld [vmem:[#allocation7 + $0x244] ss:$16 sps:$4 sm:$0xff]   ;;  %v7107_v34 = vld [vmem:[#allocation7 + $0x240] ss:$16 sps:$4 sm:$0xff]  }
 0x228   :  { %5199 = vmatpush1.bf16.msra.mxu0 %v7077_v14  ;;  %v6494_v14 = vcombine.high %v469_v23, %v473_v25  ;;  %v481_v30 = vld [vmem:[#allocation3 + $0xaf8] sm:$0xff] }
 0x229   :  { %5200 = vmatprep.subr.bf16.mxu0 %v7082_v27  ;;  %v477_v27 = vld [vmem:[#allocation3 + $0xad8] sm:$0xff] }
 0x22a   :  { %3501 = vmatpush1.bf16.msra.mxu1 %v6421_v35  ;;  %v6502_v35 = vcombine.high %v477_v27, %v481_v30  ;;  %v7122_v7 = vld [vmem:[#allocation7 + $0x2e0] ss:$16 sps:$4 sm:$0xff]  }
 0x22b   :  { %3502 = vmatprep.subr.bf16.mxu1 %v6430_v51  ;;  %v489_v51 = vld [vmem:[#allocation3 + $0xb38] sm:$0xff] }
 0x22c   :  { %5201 = vmatpush1.bf16.msra.mxu0 %v7080_v38  ;;  %v485_v38 = vld [vmem:[#allocation3 + $0xb18] sm:$0xff] }
 0x22d   :  { %5202 = vmatprep.subr.bf16.mxu0 %v7085_v43  ;;  %v6501_v43 = vcombine.low %v477_v27, %v481_v30  ;;  %v6510_v58 = vcombine.high %v485_v38, %v489_v51  ;;  %v7125_v13 = vld [vmem:[#allocation7 + $0x300] ss:$16 sps:$4 sm:$0xff]  }
 0x22e   :  { %3503 = vmatpush1.bf16.msra.mxu1 %v6429_v48  ;;  %v7115_v48 = vld [vmem:[#allocation7 + $0x284] ss:$16 sps:$4 sm:$0xff]   ;;  %v7128_v18 = vld [vmem:[#allocation7 + $0x320] ss:$16 sps:$4 sm:$0xff]  }
 0x22f   :  { %3504 = vmatprep.subr.bf16.mxu1 %v6438_v50  ;;  %v497_v50 = vld [vmem:[#allocation3 + $0xb78] sm:$0xff] }
 0x230   :  { %5203 = vmatpush1.bf16.msra.mxu0 %v7083_v49  ;;  %v493_v49 = vld [vmem:[#allocation3 + $0xb58] sm:$0xff] }
 0x231   :  { %5204 = vmatprep.subr.bf16.mxu0 %v7088_v52  ;;  %v6509_v52 = vcombine.low %v485_v38, %v489_v51  ;;  %v6518_v53 = vcombine.high %v493_v49, %v497_v50  ;;  %v7131_v25 = vld [vmem:[#allocation7 + $0x340] ss:$16 sps:$4 sm:$0xff]   ;;  %v594_v51 = vsub.s32 3, %v7962_v29 }
 0x232   :  { %3505 = vmatpush1.bf16.msra.mxu1 %v6437_v54  ;;  %v7118_v54 = vld [vmem:[#allocation7 + $0x2a4] ss:$16 sps:$4 sm:$0xff]   ;;  %v7134_v27 = vld [vmem:[#allocation7 + $0x360] ss:$16 sps:$4 sm:$0xff]  }
 0x233   :  { %3506 = vmatprep.subr.bf16.mxu1 %v6446_v56  ;;  %v505_v56 = vld [vmem:[#allocation3 + $0xbb8] sm:$0xff] }
 0x234   :  { %5205 = vmatpush1.bf16.msra.mxu0 %v7086_v55  ;;  %v501_v55 = vld [vmem:[#allocation3 + $0xb98] sm:$0xff] }
 0x235   :  { %5206 = vmatprep.subr.bf16.mxu0 %v7091_v59  ;;  %v6517_v59 = vcombine.low %v493_v49, %v497_v50  ;;  %v6526_v61 = vcombine.high %v501_v55, %v505_v56  ;;  %v569_v49 = vld [vmem:[#allocation3 + $0xdb8] sm:$0xff] }
 0x236   :  { %3507 = vmatpush1.bf16.msra.mxu1 %v6445_v62  ;;  %v7121_v62 = vld [vmem:[#allocation7 + $0x2c4] ss:$16 sps:$4 sm:$0xff]  }
 0x237   :  { %3508 = vmatprep.subr.bf16.mxu1 %v6454_v0  ;;  %v513_v0 = vld [vmem:[#allocation3 + $0xbf8] sm:$0xff] }
 0x238   :  { %5207 = vmatpush1.bf16.msra.mxu0 %v7089_v63  ;;  %v509_v63 = vld [vmem:[#allocation3 + $0xbd8] sm:$0xff] }
 0x239   :  { %5208 = vmatprep.subr.bf16.mxu0 %v7094_v1  ;;  %v6525_v1 = vcombine.low %v501_v55, %v505_v56  ;;  %v6534_v3 = vcombine.high %v509_v63, %v513_v0  ;;  %v7145_v56 = vld [vmem:[#allocation7 + $0x3c4] ss:$16 sps:$4 sm:$0xff]  }
 0x23a   :  { %3509 = vmatpush1.bf16.msra.mxu1 %v6453_v4  ;;  %v7124_v4 = vld [vmem:[#allocation7 + $0x2e4] ss:$16 sps:$4 sm:$0xff]  }
 0x23b   :  { %3510 = vmatprep.subr.bf16.mxu1 %v6462_v6  ;;  %v521_v6 = vld [vmem:[#allocation3 + $0xc38] sm:$0xff] }
 0x23c   :  { %5209 = vmatpush1.bf16.msra.mxu0 %v7092_v5  ;;  %v517_v5 = vld [vmem:[#allocation3 + $0xc18] sm:$0xff] }
 0x23d   :  { %5210 = vmatprep.subr.bf16.mxu0 %v7097_v39  ;;  %v6533_v39 = vcombine.low %v509_v63, %v513_v0  ;;  %v6542_v8 = vcombine.high %v517_v5, %v521_v6 }
 0x23e   :  { %3511 = vmatpush1.bf16.msra.mxu1 %v6461_v9  ;;  %v7127_v9 = vld [vmem:[#allocation7 + $0x304] ss:$16 sps:$4 sm:$0xff]  }
 0x23f   :  { %3512 = vmatprep.subr.bf16.mxu1 %v6470_v11  ;;  %v529_v11 = vld [vmem:[#allocation3 + $0xc78] sm:$0xff] }
 0x240   :  { %5211 = vmatpush1.bf16.msra.mxu0 %v7095_v10  ;;  %v525_v10 = vld [vmem:[#allocation3 + $0xc58] sm:$0xff] }
 0x241   :  { %5212 = vmatprep.subr.bf16.mxu0 %v7100_v12  ;;  %v6541_v12 = vcombine.low %v517_v5, %v521_v6  ;;  %v6550_v41 = vcombine.high %v525_v10, %v529_v11  ;;  %v6549_v28 = vcombine.low %v525_v10, %v529_v11 }
 0x242   :  { %3513 = vmatpush1.bf16.msra.mxu1 %v6469_v24  ;;  %v7130_v24 = vld [vmem:[#allocation7 + $0x324] ss:$16 sps:$4 sm:$0xff]  }
 0x243   :  { %3514 = vmatprep.subr.bf16.mxu1 %v6478_v16  ;;  %v537_v16 = vld [vmem:[#allocation3 + $0xcb8] sm:$0xff] }
 0x244   :  { %5213 = vmatpush1.bf16.msra.mxu0 %v7098_v15  ;;  %v533_v15 = vld [vmem:[#allocation3 + $0xc98] sm:$0xff] }
 0x245   :  { %5225 = vmatprep.subr.bf16.mxu0 %v7103_v17  ;;  %v7547_v17 = vld [vmem:[%s8054_s0 + $0x10] ss:$28 sps:$4 sm:$0xff]   ;;  %v6557_v23 = vcombine.low %v533_v15, %v537_v16 }
 0x246   :  { %3515 = vmatpush1.bf16.msra.mxu1 %v6477_v19  ;;  %v6558_v19 = vcombine.high %v533_v15, %v537_v16  ;;  %v7175_v16 = vld [vmem:[#allocation7 + $0x404] ss:$16 sps:$4 sm:$0xff]  }
 0x247   :  { %5215 = vmatmul.mubr.bf16.vlgmr.msra.gmra.mrb[8].mxu0 %v7980_v37  ;;  %3516 = vmatprep.subr.bf16.mxu1 %v6486_v31  ;;  %v541_v31 = vld [vmem:[#allocation3 + $0xcd8] sm:$0xff] }
 0x248   :  { %5226 = vmatpush1.bf16.msra.mxu0 %v7101_v20  ;;  %v7133_v20 = vld [vmem:[#allocation7 + $0x344] ss:$16 sps:$4 sm:$0xff]  }
 0x249   :  { %5227 = vmatprep.subr.bf16.mxu0 %v7106_v22  ;;  %v545_v22 = vld [vmem:[#allocation3 + $0xcf8] sm:$0xff] }
 0x24a   :  { %3517 = vmatpush1.bf16.msra.mxu1 %v6485_v26  ;;  %v6566_v26 = vcombine.high %v541_v31, %v545_v22 }
 0x24b   :  { %3518 = vmatprep.subr.bf16.mxu1 %v6494_v14  ;;  %v549_v14 = vld [vmem:[#allocation3 + $0xd18] sm:$0xff] }
 0x24c   :  { %5228 = vmatpush1.bf16.msra.mxu0 %v7104_v33  ;;  %v7136_v33 = vld [vmem:[#allocation7 + $0x364] ss:$16 sps:$4 sm:$0xff]  }
 0x24d   :  { %5229 = vmatprep.subr.bf16.mxu0 %v7109_v47  ;;  %v553_v47 = vld [vmem:[#allocation3 + $0xd38] sm:$0xff] }
 0x24e   :  { %3519 = vmatpush1.bf16.msra.mxu1 %v6493_v32  ;;  %v6574_v30 = vcombine.high %v549_v14, %v553_v47  ;;  %v7139_v32 = vld [vmem:[#allocation7 + $0x384] ss:$16 sps:$4 sm:$0xff]   ;;  %v6573_v38 = vcombine.low %v549_v14, %v553_v47  ;;  %v7155_v14 = vld [vmem:[#allocation7 + $0x48] ss:$16 sps:$4 sm:$0xff]   ;;  %v7160_v47 = vld [vmem:[#allocation7 + $0x6c] ss:$16 sps:$4 sm:$0xff]  }
 0x24f   :  { %3520 = vmatprep.subr.bf16.mxu1 %v6502_v35  ;;  %v561_v35 = vld [vmem:[#allocation3 + $0xd78] sm:$0xff] }
 0x250   :  { %5230 = vmatpush1.bf16.msra.mxu0 %v7107_v34  ;;  %v557_v34 = vld [vmem:[#allocation3 + $0xd58] sm:$0xff] }
 0x251   :  { %5231 = vmatprep.subr.bf16.mxu0 %v7112_v36  ;;  %v590_v36 = vsub.s32 2, %v7962_v29 }
 0x252   :  { %3521 = vmatpush1.bf16.msra.mxu1 %v6501_v43  ;;  %v7137_v43 = vld [vmem:[#allocation7 + $0x380] ss:$16 sps:$4 sm:$0xff]  }
 0x253   :  { %3522 = vmatprep.subr.bf16.mxu1 %v6510_v58  ;;  %v7142_v58 = vld [vmem:[#allocation7 + $0x3a4] ss:$16 sps:$4 sm:$0xff]   ;;  %v591_v50 = vrot.slane %v7967_v45, %v590_v36 }
 0x254   :  { %5232 = vmatpush1.bf16.msra.mxu0 %v7110_v44  ;;  %v6582_v44 = vcombine.high %v557_v34, %v561_v35 }
 0x255   :  { %5233 = vmatprep.subr.bf16.mxu0 %v7115_v48  ;;  %v565_v48 = vld [vmem:[#allocation3 + $0xd98] sm:$0xff] }
 0x256   :  { %3523 = vmatpush1.bf16.msra.mxu1 %v6509_v52  ;;  %v595_v52 = vrot.slane %v7967_v45, %v594_v51 }
 0x257   :  { %3524 = vmatprep.subr.bf16.mxu1 %v6518_v53  ;;  %v7140_v53 = vld [vmem:[#allocation7 + $0x3a0] ss:$16 sps:$4 sm:$0xff]  }
 0x258   :  { %5234 = vmatpush1.bf16.msra.mxu0 %v7113_v60  ;;  %v6581_v60 = vcombine.low %v557_v34, %v561_v35  ;;  %v7199_v34 = vld [vmem:[#allocation7 + $0x484] ss:$16 sps:$4 sm:$0xff]   ;;  %v7161_v35 = vld [vmem:[#allocation7 + $0x88] ss:$16 sps:$4 sm:$0xff]  }
 0x259   :  { %5235 = vmatprep.subr.bf16.mxu0 %v7118_v54  ;;  %v6590_v54 = vcombine.high %v565_v48, %v569_v49 }
 0x25a   :  { %3525 = vmatpush1.bf16.msra.mxu1 %v6517_v59  ;;  %v573_v59 = vld [vmem:[#allocation3 + $0xdd8] sm:$0xff] }
 0x25b   :  { %3526 = vmatprep.subr.bf16.mxu1 %v6526_v61 }
 0x25c   :  { %5236 = vmatpush1.bf16.msra.mxu0 %v7116_v57  ;;  %v577_v57 = vld [vmem:[#allocation3 + $0xdf8] sm:$0xff] }
 0x25d   :  { %5237 = vmatprep.subr.bf16.mxu0 %v7121_v62  ;;  %v6598_v5 = vcombine.high %v573_v59, %v577_v57  ;;  %v6597_v10 = vcombine.low %v573_v59, %v577_v57  ;;  %v7215_v59 = vld [vmem:[#allocation7 + $0x4e0] ss:$16 sps:$4 sm:$0xff]   ;;  %v7223_v57 = vld [vmem:[#allocation7 + $0x504] ss:$16 sps:$4 sm:$0xff]  }
 0x25e   :  { %3527 = vmatpush1.bf16.msra.mxu1 %v6525_v1  ;;  %v6589_v1 = vcombine.low %v565_v48, %v569_v49  ;;  %v7169_v48 = vld [vmem:[#allocation7 + $0xcc] ss:$16 sps:$4 sm:$0xff]   ;;  %v7203_v49 = vld [vmem:[#allocation7 + $0x4a0] ss:$16 sps:$4 sm:$0xff]  }
 0x25f   :  { %3528 = vmatprep.subr.bf16.mxu1 %v6534_v3 }
 0x260   :  { %5238 = vmatpush1.bf16.msra.mxu0 %v7119_v2 }
 0x261   :  { %5239 = vmatprep.subr.bf16.mxu0 %v7124_v4  ;;  %v7143_v4 = vld [vmem:[#allocation7 + $0x3c0] ss:$16 sps:$4 sm:$0xff]  }
 0x262   :  { %3529 = vmatpush1.bf16.msra.mxu1 %v6533_v39 }
 0x263   :  { %3541 = vmatprep.subr.bf16.mxu1 %v6542_v8 }
 0x264   :  { %5240 = vmatpush1.bf16.msra.mxu0 %v7122_v7  ;;  %v7148_v7 = vld [vmem:[#allocation7 + $0x3e4] ss:$16 sps:$4 sm:$0xff]  }
 0x265   :  { %5241 = vmatprep.subr.bf16.mxu0 %v7127_v9  ;;  %3531 = vmatmul.mubr.bf16.vlgmr.msra.gmra.mrb[8].mxu1 %v7547_v17 }
 0x266   :  { %3542 = vmatpush1.bf16.msra.mxu1 %v6541_v12  ;;  %3573 = vmatprep.mubr.bf16.mxu1 %v7725_v21  ;;  %v6565_v21 = vcombine.low %v541_v31, %v545_v22  ;;  %v7548_v31 = vld [vmem:[%s8054_s0 + $0x18] ss:$28 sps:$4 sm:$0xff]   ;;  %v7181_v22 = vld [vmem:[#allocation7 + $0x424] ss:$16 sps:$4 sm:$0xff]  }
 0x267   :  { %3543 = vmatprep.subr.bf16.mxu1 %v6550_v41  ;;  %v7151_v41 = vld [vmem:[#allocation7 + $0xc] ss:$16 sps:$4 sm:$0xff]  }
 0x268   :  { %5242 = vmatpush1.bf16.msra.mxu0 %v7125_v13  ;;  %v7146_v13 = vld [vmem:[#allocation7 + $0x3e0] ss:$16 sps:$4 sm:$0xff]  }
 0x269   :  { %5243 = vmatprep.subr.bf16.mxu0 %v7130_v24 }
 0x26a   :  { %3544 = vmatpush1.bf16.msra.mxu1 %v6549_v28 }
 0x26b   :  { %3545 = vmatprep.subr.bf16.mxu1 %v6558_v19  ;;  %v7154_v19 = vld [vmem:[#allocation7 + $0x2c] ss:$16 sps:$4 sm:$0xff]  }
 0x26c   :  { %5244 = vmatpush1.bf16.msra.mxu0 %v7128_v18  ;;  %v7149_v18 = vld [vmem:[#allocation7 + $0x8] ss:$16 sps:$4 sm:$0xff]  }
 0x26d   :  { %5245 = vmatprep.subr.bf16.mxu0 %v7133_v20  ;;  %v7173_v20 = vld [vmem:[#allocation7 + $0x400] ss:$16 sps:$4 sm:$0xff]  }
 0x26e   :  { %3546 = vmatpush1.bf16.msra.mxu1 %v6557_v23  ;;  %v7152_v23 = vld [vmem:[#allocation7 + $0x28] ss:$16 sps:$4 sm:$0xff]  }
 0x26f   :  { %3547 = vmatprep.subr.bf16.mxu1 %v6566_v26  ;;  %v7179_v26 = vld [vmem:[#allocation7 + $0x420] ss:$16 sps:$4 sm:$0xff]  }
 0x270   :  { %5246 = vmatpush1.bf16.msra.mxu0 %v7131_v25  ;;  %v7157_v25 = vld [vmem:[#allocation7 + $0x4c] ss:$16 sps:$4 sm:$0xff]  }
 0x271   :  { %5247 = vmatprep.subr.bf16.mxu0 %v7136_v33  ;;  %v7187_v33 = vld [vmem:[#allocation7 + $0x444] ss:$16 sps:$4 sm:$0xff]  }
 0x272   :  { %3548 = vmatpush1.bf16.msra.mxu1 %v6565_v21  ;;  %v7185_v21 = vld [vmem:[#allocation7 + $0x440] ss:$16 sps:$4 sm:$0xff]  }
 0x273   :  { %3549 = vmatprep.subr.bf16.mxu1 %v6574_v30  ;;  %v7158_v30 = vld [vmem:[#allocation7 + $0x68] ss:$16 sps:$4 sm:$0xff]  }
 0x274   :  { %5248 = vmatpush1.bf16.msra.mxu0 %v7134_v27  ;;  %v7193_v27 = vld [vmem:[#allocation7 + $0x464] ss:$16 sps:$4 sm:$0xff]  }
 0x275   :  { %5249 = vmatprep.subr.bf16.mxu0 %v7139_v32  ;;  %v7163_v32 = vld [vmem:[#allocation7 + $0x8c] ss:$16 sps:$4 sm:$0xff]  }
 0x276   :  { %3550 = vmatpush1.bf16.msra.mxu1 %v6573_v38  ;;  %v7166_v38 = vld [vmem:[#allocation7 + $0xac] ss:$16 sps:$4 sm:$0xff]  }
 0x277   :  { %3551 = vmatprep.subr.bf16.mxu1 %v6582_v44  ;;  %v7205_v44 = vld [vmem:[#allocation7 + $0x4a4] ss:$16 sps:$4 sm:$0xff]  }
 0x278   :  { %5250 = vmatpush1.bf16.msra.mxu0 %v7137_v43  ;;  %v3231_v55 = vpop.f32.mrb[4].mxu1  ;;  %v7197_v43 = vld [vmem:[#allocation7 + $0x480] ss:$16 sps:$4 sm:$0xff]  }
 0x279   :  { %5251 = vmatprep.subr.bf16.mxu0 %v7142_v58  ;;  %v6932_v61 = vadd.f32 %v3231_v55, %v591_v50  ;;  %v3233_v62 = vpop.f32.mrb[5].mxu1  ;;  %v7164_v58 = vld [vmem:[#allocation7 + $0xa8] ss:$16 sps:$4 sm:$0xff]  }
 0x27a   :  { %v6933_v63 = vadd.f32 %v3233_v62, %v595_v52  ;;  %v3235_v0 = vpop.f32.mrb[6].mxu1  ;;  %3552 = vmatpush1.bf16.msra.mxu1 %v6581_v60  ;;  %v7172_v60 = vld [vmem:[#allocation7 + $0xec] ss:$16 sps:$4 sm:$0xff]   ;;  %v7170_v55 = vld [vmem:[#allocation7 + $0xe8] ss:$16 sps:$4 sm:$0xff]  }
 0x27b   :  { %v3586_v2 = vmul.f32 0.2, %v6932_v61  ;;  %v6934_v3 = vadd.f32 %v3235_v0, %v591_v50  ;;  %v3237_v45 = vpop.f32.mrb[7].mxu1  ;;  %3553 = vmatprep.subr.bf16.mxu1 %v6590_v54  ;;  %v7211_v50 = vld [vmem:[#allocation7 + $0x4c4] ss:$16 sps:$4 sm:$0xff]  }
 0x27c   :  { %5252 = vmatpush1.bf16.msra.mxu0 %v7140_v53  ;;  %v3587_v6 = vmul.f32 0.2, %v6933_v63  ;;  %v6935_v39 = vadd.f32 %v3237_v45, %v595_v52  ;;  %v7167_v52 = vld [vmem:[#allocation7 + $0xc8] ss:$16 sps:$4 sm:$0xff]   ;;  %v7209_v53 = vld [vmem:[#allocation7 + $0x4c0] ss:$16 sps:$4 sm:$0xff]  }
 0x27d   :  { %5253 = vmatprep.subr.bf16.mxu0 %v7145_v56  ;;  %v3594_v8 = vmul.f32 0.2, %v6934_v3  ;;  %v3602_v11 = vmax.f32 %v6932_v61, %v3586_v2  ;;  %v7217_v54 = vld [vmem:[#allocation7 + $0x4e4] ss:$16 sps:$4 sm:$0xff]   ;;  %v7178_v56 = vld [vmem:[#allocation7 + $0x10c] ss:$16 sps:$4 sm:$0xff]  }
 0x27e   :  { %v3595_v9 = vmul.f32 0.2, %v6935_v39  ;;  %3554 = vmatpush1.bf16.msra.mxu1 %v6589_v1  ;;  %v3603_v24 = vmax.f32 %v6933_v63, %v3587_v6  ;;  %v7176_v61 = vld [vmem:[#allocation7 + $0x108] ss:$16 sps:$4 sm:$0xff]   ;;  %v7184_v62 = vld [vmem:[#allocation7 + $0x12c] ss:$16 sps:$4 sm:$0xff]  }
 0x27f   :  { %v3610_v12 = vmax.f32 %v6934_v3, %v3594_v8  ;;  %3555 = vmatprep.subr.bf16.mxu1 %v6598_v5  ;;  %v7221_v63 = vld [vmem:[#allocation7 + $0x500] ss:$16 sps:$4 sm:$0xff]   ;;  %v7229_v0 = vld [vmem:[#allocation7 + $0x524] ss:$16 sps:$4 sm:$0xff]   ;;  %v7182_v1 = vld [vmem:[#allocation7 + $0x128] ss:$16 sps:$4 sm:$0xff]  }
 0x280   :  { %5254 = vmatpush1.bf16.msra.mxu0 %v7143_v4  ;;  %v3611_v15 = vmax.f32 %v6935_v39, %v3595_v9  ;;  %v7190_v2 = vld [vmem:[#allocation7 + $0x14c] ss:$16 sps:$4 sm:$0xff]   ;;  %v7227_v3 = vld [vmem:[#allocation7 + $0x520] ss:$16 sps:$4 sm:$0xff]   ;;  %v7235_v45 = vld [vmem:[#allocation7 + $0x544] ss:$16 sps:$4 sm:$0xff]  }
 0x281   :  { %5255 = vmatprep.subr.bf16.mxu0 %v7148_v7  ;;  %v8005_v17 = vpack.c.bf16 %v3610_v12, %v3602_v11  ;;  %v7188_v4 = vld [vmem:[#allocation7 + $0x148] ss:$16 sps:$4 sm:$0xff]   ;;  %v7196_v5 = vld [vmem:[#allocation7 + $0x16c] ss:$16 sps:$4 sm:$0xff]   ;;  %v7233_v6 = vld [vmem:[#allocation7 + $0x540] ss:$16 sps:$4 sm:$0xff]  }
 0x282   :  { %3556 = vmatpush1.bf16.msra.mxu1 %v6597_v10  ;;  %v8007_v28 = vpack.c.bf16 %v3611_v15, %v3603_v24  ;;  %v7241_v39 = vld [vmem:[#allocation7 + $0x564] ss:$16 sps:$4 sm:$0xff]   ;;  %v7194_v7 = vld [vmem:[#allocation7 + $0x168] ss:$16 sps:$4 sm:$0xff]   ;;  %v7202_v8 = vld [vmem:[#allocation7 + $0x18c] ss:$16 sps:$4 sm:$0xff]  }
 0x283   :  { %5354 = vmatprep.subr.bf16.mxu1 %v7151_v41  ;;  %v7239_v9 = vld [vmem:[#allocation7 + $0x560] ss:$16 sps:$4 sm:$0xff]   ;;  %v7247_v10 = vld [vmem:[#allocation7 + $0x584] ss:$16 sps:$4 sm:$0xff]   ;;  %v7200_v11 = vld [vmem:[#allocation7 + $0x188] ss:$16 sps:$4 sm:$0xff]  }
 0x284   :  { %5256 = vmatpush1.bf16.msra.mxu0 %v7146_v13  ;;  %5257 = vmatprep.mubr.bf16.mxu0 %v8007_v28  ;;  %v7208_v12 = vld [vmem:[#allocation7 + $0x1ac] ss:$16 sps:$4 sm:$0xff]   ;;  %v7245_v13 = vld [vmem:[#allocation7 + $0x580] ss:$16 sps:$4 sm:$0xff]   ;;  %v7253_v41 = vld [vmem:[#allocation7 + $0x5a4] ss:$16 sps:$4 sm:$0xff]  }
 0x285   :  { %5268 = vmatprep.subr.bf16.mxu0 %v7175_v16  ;;  %3574 = vmatmul.mubr.bf16.vlgmr.msra.gmra.mrb[8].mxu1 %v7548_v31  ;;  %v7206_v24 = vld [vmem:[#allocation7 + $0x1a8] ss:$16 sps:$4 sm:$0xff]   ;;  %v7214_v15 = vld [vmem:[#allocation7 + $0x1cc] ss:$16 sps:$4 sm:$0xff]   ;;  %v7251_v16 = vld [vmem:[#allocation7 + $0x5a0] ss:$16 sps:$4 sm:$0xff]  }
 0x286   :  { %5355 = vmatpush1.bf16.msra.mxu1 %v7149_v18  ;;  %5386 = vmatprep.mubr.bf16.mxu1 %v7982_v42  ;;  %v7191_v42 = vld [vmem:[#allocation7 + $0x460] ss:$16 sps:$4 sm:$0xff]   ;;  %v7259_v18 = vld [vmem:[#allocation7 + $0x5c4] ss:$16 sps:$4 sm:$0xff]  }
 0x287   :  { %5258 = vmatmul.mubr.bf16.vlgmr.msra.gmra.mrb[8].mxu0 %v8005_v17  ;;  %5356 = vmatprep.subr.bf16.mxu1 %v7154_v19  ;;  %v7212_v19 = vld [vmem:[#allocation7 + $0x1c8] ss:$16 sps:$4 sm:$0xff]   ;;  %v7257_v31 = vld [vmem:[#allocation7 + $0x5c0] ss:$16 sps:$4 sm:$0xff]  }
 0x288   :  { %5269 = vmatpush1.bf16.msra.mxu0 %v7173_v20  ;;  %v7220_v20 = vld [vmem:[#allocation7 + $0x1ec] ss:$16 sps:$4 sm:$0xff]  }
 0x289   :  { %5270 = vmatprep.subr.bf16.mxu0 %v7181_v22  ;;  %v7265_v22 = vld [vmem:[#allocation7 + $0x5e4] ss:$16 sps:$4 sm:$0xff]  }
 0x28a   :  { %5357 = vmatpush1.bf16.msra.mxu1 %v7152_v23  ;;  %v7218_v23 = vld [vmem:[#allocation7 + $0x1e8] ss:$16 sps:$4 sm:$0xff]  }
 0x28b   :  { %5358 = vmatprep.subr.bf16.mxu1 %v7157_v25  ;;  %v7226_v25 = vld [vmem:[#allocation7 + $0x20c] ss:$16 sps:$4 sm:$0xff]  }
 0x28c   :  { %5271 = vmatpush1.bf16.msra.mxu0 %v7179_v26  ;;  %v7263_v26 = vld [vmem:[#allocation7 + $0x5e0] ss:$16 sps:$4 sm:$0xff]  }
 0x28d   :  { %5272 = vmatprep.subr.bf16.mxu0 %v7187_v33  ;;  %v7319_v33 = vld [vmem:[#allocation7 + $0x604] ss:$16 sps:$4 sm:$0xff]  }
 0x28e   :  { %5359 = vmatpush1.bf16.msra.mxu1 %v7155_v14  ;;  %v7224_v14 = vld [vmem:[#allocation7 + $0x208] ss:$16 sps:$4 sm:$0xff]  }
 0x28f   :  { %5360 = vmatprep.subr.bf16.mxu1 %v7160_v47  ;;  %v7232_v47 = vld [vmem:[#allocation7 + $0x22c] ss:$16 sps:$4 sm:$0xff]  }
 0x290   :  { %5273 = vmatpush1.bf16.msra.mxu0 %v7185_v21  ;;  %v7230_v21 = vld [vmem:[#allocation7 + $0x228] ss:$16 sps:$4 sm:$0xff]  }
 0x291   :  { %5274 = vmatprep.subr.bf16.mxu0 %v7193_v27  ;;  %v7238_v27 = vld [vmem:[#allocation7 + $0x24c] ss:$16 sps:$4 sm:$0xff]  }
 0x292   :  { %5361 = vmatpush1.bf16.msra.mxu1 %v7158_v30  ;;  %v7236_v30 = vld [vmem:[#allocation7 + $0x248] ss:$16 sps:$4 sm:$0xff]  }
 0x293   :  { %5362 = vmatprep.subr.bf16.mxu1 %v7163_v32  ;;  %v7244_v32 = vld [vmem:[#allocation7 + $0x26c] ss:$16 sps:$4 sm:$0xff]  }
 0x294   :  { %5275 = vmatpush1.bf16.msra.mxu0 %v7191_v42  ;;  %v7242_v42 = vld [vmem:[#allocation7 + $0x268] ss:$16 sps:$4 sm:$0xff]  }
 0x295   :  { %5276 = vmatprep.subr.bf16.mxu0 %v7199_v34  ;;  %v7250_v34 = vld [vmem:[#allocation7 + $0x28c] ss:$16 sps:$4 sm:$0xff]  }
 0x296   :  { %5363 = vmatpush1.bf16.msra.mxu1 %v7161_v35  ;;  %v7248_v35 = vld [vmem:[#allocation7 + $0x288] ss:$16 sps:$4 sm:$0xff]  }
 0x297   :  { %5364 = vmatprep.subr.bf16.mxu1 %v7166_v38  ;;  %v598_v38 = vsub.s32 4, %v7962_v29 }
 0x298   :  { %5277 = vmatpush1.bf16.msra.mxu0 %v7197_v43  ;;  %v7256_v43 = vld [vmem:[#allocation7 + $0x2ac] ss:$16 sps:$4 sm:$0xff]  }
 0x299   :  { %5278 = vmatprep.subr.bf16.mxu0 %v7205_v44 }
 0x29a   :  { %5365 = vmatpush1.bf16.msra.mxu1 %v7164_v58  ;;  %v7254_v58 = vld [vmem:[#allocation7 + $0x2a8] ss:$16 sps:$4 sm:$0xff]  }
 0x29b   :  { %5366 = vmatprep.subr.bf16.mxu1 %v7169_v48 }
 0x29c   :  { %5279 = vmatpush1.bf16.msra.mxu0 %v7203_v49  ;;  %v7262_v49 = vld [vmem:[#allocation7 + $0x2cc] ss:$16 sps:$4 sm:$0xff]  }
 0x29d   :  { %5280 = vmatprep.subr.bf16.mxu0 %v7211_v50 }
 0x29e   :  { %5367 = vmatpush1.bf16.msra.mxu1 %v7167_v52 }
 0x29f   :  { %5368 = vmatprep.subr.bf16.mxu1 %v7172_v60 }
 0x2a0   :  { %5281 = vmatpush1.bf16.msra.mxu0 %v7209_v53  ;;  %v7260_v53 = vld [vmem:[#allocation7 + $0x2c8] ss:$16 sps:$4 sm:$0xff]  }
 0x2a1   :  { %5282 = vmatprep.subr.bf16.mxu0 %v7217_v54 }
 0x2a2   :  { %5369 = vmatpush1.bf16.msra.mxu1 %v7170_v55 }
 0x2a3   :  { %5370 = vmatprep.subr.bf16.mxu1 %v7178_v56  ;;  %v7268_v56 = vld [vmem:[#allocation7 + $0x2ec] ss:$16 sps:$4 sm:$0xff]  }
 0x2a4   :  { %5283 = vmatpush1.bf16.msra.mxu0 %v7215_v59 }
 0x2a5   :  { %5284 = vmatprep.subr.bf16.mxu0 %v7223_v57 }
 0x2a6   :  { %5371 = vmatpush1.bf16.msra.mxu1 %v7176_v61 }
 0x2a7   :  { %5372 = vmatprep.subr.bf16.mxu1 %v7184_v62 }
 0x2a8   :  { %5285 = vmatpush1.bf16.msra.mxu0 %v7221_v63 }
 0x2a9   :  { %5286 = vmatprep.subr.bf16.mxu0 %v7229_v0 }
 0x2aa   :  { %5373 = vmatpush1.bf16.msra.mxu1 %v7182_v1  ;;  %v7266_v1 = vld [vmem:[#allocation7 + $0x2e8] ss:$16 sps:$4 sm:$0xff]  }
 0x2ab   :  { %5374 = vmatprep.subr.bf16.mxu1 %v7190_v2 }
 0x2ac   :  { %5287 = vmatpush1.bf16.msra.mxu0 %v7227_v3  ;;  %v7271_v3 = vld [vmem:[#allocation7 + $0x30c] ss:$16 sps:$4 sm:$0xff]  }
 0x2ad   :  { %5288 = vmatprep.subr.bf16.mxu0 %v7235_v45 }
 0x2ae   :  { %5375 = vmatpush1.bf16.msra.mxu1 %v7188_v4 }
 0x2af   :  { %5376 = vmatprep.subr.bf16.mxu1 %v7196_v5 }
 0x2b0   :  { %5289 = vmatpush1.bf16.msra.mxu0 %v7233_v6 }
 0x2b1   :  { %5290 = vmatprep.subr.bf16.mxu0 %v7241_v39 }
 0x2b2   :  { %5377 = vmatpush1.bf16.msra.mxu1 %v7194_v7  ;;  %v7269_v7 = vld [vmem:[#allocation7 + $0x308] ss:$16 sps:$4 sm:$0xff]  }
 0x2b3   :  { %5378 = vmatprep.subr.bf16.mxu1 %v7202_v8 }
 0x2b4   :  { %5291 = vmatpush1.bf16.msra.mxu0 %v7239_v9  ;;  %v7274_v9 = vld [vmem:[#allocation7 + $0x32c] ss:$16 sps:$4 sm:$0xff]  }
 0x2b5   :  { %5292 = vmatprep.subr.bf16.mxu0 %v7247_v10  ;;  %v7317_v10 = vld [vmem:[#allocation7 + $0x600] ss:$16 sps:$4 sm:$0xff]  }
 0x2b6   :  { %5379 = vmatpush1.bf16.msra.mxu1 %v7200_v11  ;;  %v7325_v11 = vld [vmem:[#allocation7 + $0x624] ss:$16 sps:$4 sm:$0xff]  }
 0x2b7   :  { %5380 = vmatprep.subr.bf16.mxu1 %v7208_v12  ;;  %v7272_v12 = vld [vmem:[#allocation7 + $0x328] ss:$16 sps:$4 sm:$0xff]  }
 0x2b8   :  { %5293 = vmatpush1.bf16.msra.mxu0 %v7245_v13  ;;  %v7277_v13 = vld [vmem:[#allocation7 + $0x34c] ss:$16 sps:$4 sm:$0xff]  }
 0x2b9   :  { %5294 = vmatprep.subr.bf16.mxu0 %v7253_v41  ;;  %v7323_v41 = vld [vmem:[#allocation7 + $0x620] ss:$16 sps:$4 sm:$0xff]  }
 0x2ba   :  { %5381 = vmatpush1.bf16.msra.mxu1 %v7206_v24  ;;  %v7331_v24 = vld [vmem:[#allocation7 + $0x644] ss:$16 sps:$4 sm:$0xff]  }
 0x2bb   :  { %5382 = vmatprep.subr.bf16.mxu1 %v7214_v15  ;;  %v7275_v15 = vld [vmem:[#allocation7 + $0x348] ss:$16 sps:$4 sm:$0xff]  }
 0x2bc   :  { %5295 = vmatpush1.bf16.msra.mxu0 %v7251_v16  ;;  %v7280_v16 = vld [vmem:[#allocation7 + $0x36c] ss:$16 sps:$4 sm:$0xff]  }
 0x2bd   :  { %5296 = vmatprep.subr.bf16.mxu0 %v7259_v18  ;;  %v7329_v18 = vld [vmem:[#allocation7 + $0x640] ss:$16 sps:$4 sm:$0xff]  }
 0x2be   :  { %5383 = vmatpush1.bf16.msra.mxu1 %v7212_v19  ;;  %v7337_v19 = vld [vmem:[#allocation7 + $0x664] ss:$16 sps:$4 sm:$0xff]  }
 0x2bf   :  { %5384 = vmatprep.subr.bf16.mxu1 %v7220_v20  ;;  %v7278_v20 = vld [vmem:[#allocation7 + $0x368] ss:$16 sps:$4 sm:$0xff]  }
 0x2c0   :  { %5297 = vmatpush1.bf16.msra.mxu0 %v7257_v31  ;;  %v7283_v31 = vld [vmem:[#allocation7 + $0x38c] ss:$16 sps:$4 sm:$0xff]  }
 0x2c1   :  { %5298 = vmatprep.subr.bf16.mxu0 %v7265_v22  ;;  %v7335_v22 = vld [vmem:[#allocation7 + $0x660] ss:$16 sps:$4 sm:$0xff]  }
 0x2c2   :  { %5385 = vmatpush1.bf16.msra.mxu1 %v7218_v23  ;;  %v7343_v23 = vld [vmem:[#allocation7 + $0x684] ss:$16 sps:$4 sm:$0xff]  }
 0x2c3   :  { %5397 = vmatprep.subr.bf16.mxu1 %v7226_v25  ;;  %v7281_v25 = vld [vmem:[#allocation7 + $0x388] ss:$16 sps:$4 sm:$0xff]  }
 0x2c4   :  { %5299 = vmatpush1.bf16.msra.mxu0 %v7263_v26  ;;  %v7286_v26 = vld [vmem:[#allocation7 + $0x3ac] ss:$16 sps:$4 sm:$0xff]  }
 0x2c5   :  { %5387 = vmatmul.mubr.bf16.vlgmr.msra.gmra.mrb[12].mxu1 %v7980_v37  ;;  %5311 = vmatprep.subr.bf16.mxu0 %v7319_v33  ;;  %v602_v37 = vsub.s32 5, %v7962_v29  ;;  %v7341_v33 = vld [vmem:[#allocation7 + $0x680] ss:$16 sps:$4 sm:$0xff]  }
 0x2c6   :  { %5398 = vmatpush1.bf16.msra.mxu1 %v7224_v14  ;;  %5429 = vmatprep.mubr.bf16.mxu1 %v8007_v28  ;;  %v8019_v28 = vld [vmem:[#allocation5] sm:$0xff]  ;;  %v7349_v14 = vld [vmem:[#allocation7 + $0x6a4] ss:$16 sps:$4 sm:$0xff]  }
 0x2c7   :  { %5399 = vmatprep.subr.bf16.mxu1 %v7232_v47  ;;  %v599_v44 = vrot.slane %v8019_v28, %v598_v38  ;;  %v603_v48 = vrot.slane %v8019_v28, %v602_v37  ;;  %v7284_v47 = vld [vmem:[#allocation7 + $0x3a8] ss:$16 sps:$4 sm:$0xff]   ;;  %v7295_v37 = vld [vmem:[#allocation7 + $0x40c] ss:$16 sps:$4 sm:$0xff]  }
 0x2c8   :  { %v7290_v38 = vld [vmem:[#allocation7 + $0x3e8] ss:$16 sps:$4 sm:$0xff]  }
 0x2ca   :  { %5400 = vmatpush1.bf16.msra.mxu1 %v7230_v21  ;;  %v7289_v21 = vld [vmem:[#allocation7 + $0x3cc] ss:$16 sps:$4 sm:$0xff]  }
 0x2cb   :  { %5401 = vmatprep.subr.bf16.mxu1 %v7238_v27  ;;  %v7347_v27 = vld [vmem:[#allocation7 + $0x6a0] ss:$16 sps:$4 sm:$0xff]  }
 0x2ce   :  { %5402 = vmatpush1.bf16.msra.mxu1 %v7236_v30  ;;  %v7355_v30 = vld [vmem:[#allocation7 + $0x6c4] ss:$16 sps:$4 sm:$0xff]  }
 0x2cf   :  { %5403 = vmatprep.subr.bf16.mxu1 %v7244_v32  ;;  %v7287_v32 = vld [vmem:[#allocation7 + $0x3c8] ss:$16 sps:$4 sm:$0xff]  }
 0x2d2   :  { %5404 = vmatpush1.bf16.msra.mxu1 %v7242_v42  ;;  %v7292_v42 = vld [vmem:[#allocation7 + $0x3ec] ss:$16 sps:$4 sm:$0xff]  }
 0x2d3   :  { %5405 = vmatprep.subr.bf16.mxu1 %v7250_v34  ;;  %v7353_v34 = vld [vmem:[#allocation7 + $0x6c0] ss:$16 sps:$4 sm:$0xff]  }
 0x2d6   :  { %5406 = vmatpush1.bf16.msra.mxu1 %v7248_v35  ;;  %v7361_v35 = vld [vmem:[#allocation7 + $0x6e4] ss:$16 sps:$4 sm:$0xff]  }
 0x2d7   :  { %5407 = vmatprep.subr.bf16.mxu1 %v7256_v43  ;;  %v7359_v43 = vld [vmem:[#allocation7 + $0x6e0] ss:$16 sps:$4 sm:$0xff]  }
 0x2da   :  { %v3403_v50 = vpop.f32.mrb[4].mxu0  ;;  %5408 = vmatpush1.bf16.msra.mxu1 %v7254_v58  ;;  %v7293_v58 = vld [vmem:[#allocation7 + $0x408] ss:$16 sps:$4 sm:$0xff]  }
 0x2db   :  { %v6936_v52 = vadd.f32 %v3403_v50, %v599_v44  ;;  %v3405_v60 = vpop.f32.mrb[5].mxu0  ;;  %5409 = vmatprep.subr.bf16.mxu1 %v7262_v49  ;;  %v7365_v49 = vld [vmem:[#allocation7 + $0x700] ss:$16 sps:$4 sm:$0xff]   ;;  %v7373_v50 = vld [vmem:[#allocation7 + $0x724] ss:$16 sps:$4 sm:$0xff]  }
 0x2dc   :  { %v6937_v54 = vadd.f32 %v3405_v60, %v603_v48  ;;  %v3407_v55 = vpop.f32.mrb[6].mxu0  ;;  %v7301_v60 = vld [vmem:[#allocation7 + $0x44c] ss:$16 sps:$4 sm:$0xff]  }
 0x2dd   :  { %v3588_v59 = vmul.f32 0.2, %v6936_v52  ;;  %v6938_v57 = vadd.f32 %v3407_v55, %v599_v44  ;;  %v3409_v61 = vpop.f32.mrb[7].mxu0  ;;  %v7367_v44 = vld [vmem:[#allocation7 + $0x704] ss:$16 sps:$4 sm:$0xff]  }
 0x2de   :  { %v3589_v62 = vmul.f32 0.2, %v6937_v54  ;;  %v6939_v63 = vadd.f32 %v3409_v61, %v603_v48  ;;  %5410 = vmatpush1.bf16.msra.mxu1 %v7260_v53  ;;  %v7298_v48 = vld [vmem:[#allocation7 + $0x42c] ss:$16 sps:$4 sm:$0xff]   ;;  %v7371_v53 = vld [vmem:[#allocation7 + $0x720] ss:$16 sps:$4 sm:$0xff]  }
 0x2df   :  { %v3596_v0 = vmul.f32 0.2, %v6938_v57  ;;  %5411 = vmatprep.subr.bf16.mxu1 %v7268_v56  ;;  %v3604_v45 = vmax.f32 %v6936_v52, %v3588_v59  ;;  %v7296_v52 = vld [vmem:[#allocation7 + $0x428] ss:$16 sps:$4 sm:$0xff]   ;;  %v7304_v56 = vld [vmem:[#allocation7 + $0x46c] ss:$16 sps:$4 sm:$0xff]  }
 0x2e0   :  { %v3597_v2 = vmul.f32 0.2, %v6939_v63  ;;  %v3605_v5 = vmax.f32 %v6937_v54, %v3589_v62  ;;  %v7379_v54 = vld [vmem:[#allocation7 + $0x744] ss:$16 sps:$4 sm:$0xff]   ;;  %v7299_v55 = vld [vmem:[#allocation7 + $0x448] ss:$16 sps:$4 sm:$0xff]  }
 0x2e1   :  { %v3612_v4 = vmax.f32 %v6938_v57, %v3596_v0  ;;  %v7377_v59 = vld [vmem:[#allocation7 + $0x740] ss:$16 sps:$4 sm:$0xff]   ;;  %v7385_v57 = vld [vmem:[#allocation7 + $0x764] ss:$16 sps:$4 sm:$0xff]   ;;  %v7307_v61 = vld [vmem:[#allocation7 + $0x48c] ss:$16 sps:$4 sm:$0xff]  }
 0x2e2   :  { %v3613_v6 = vmax.f32 %v6939_v63, %v3597_v2  ;;  %5412 = vmatpush1.bf16.msra.mxu1 %v7266_v1  ;;  %v7383_v62 = vld [vmem:[#allocation7 + $0x760] ss:$16 sps:$4 sm:$0xff]   ;;  %v7391_v63 = vld [vmem:[#allocation7 + $0x784] ss:$16 sps:$4 sm:$0xff]   ;;  %v7305_v0 = vld [vmem:[#allocation7 + $0x488] ss:$16 sps:$4 sm:$0xff]  }
 0x2e3   :  { %v8023_v39 = vpack.c.bf16 %v3612_v4, %v3604_v45  ;;  %5413 = vmatprep.subr.bf16.mxu1 %v7271_v3  ;;  %v7310_v1 = vld [vmem:[#allocation7 + $0x4ac] ss:$16 sps:$4 sm:$0xff]   ;;  %v7389_v2 = vld [vmem:[#allocation7 + $0x780] ss:$16 sps:$4 sm:$0xff]   ;;  %v7397_v3 = vld [vmem:[#allocation7 + $0x7a4] ss:$16 sps:$4 sm:$0xff]  }
 0x2e4   :  { %v8025_v8 = vpack.c.bf16 %v3613_v6, %v3605_v5  ;;  %v7308_v45 = vld [vmem:[#allocation7 + $0x4a8] ss:$16 sps:$4 sm:$0xff]   ;;  %v7313_v4 = vld [vmem:[#allocation7 + $0x4cc] ss:$16 sps:$4 sm:$0xff]   ;;  %v7395_v5 = vld [vmem:[#allocation7 + $0x7a0] ss:$16 sps:$4 sm:$0xff]  }
 0x2e5   :  { %v7403_v6 = vld [vmem:[#allocation7 + $0x7c4] ss:$16 sps:$4 sm:$0xff]  }
 0x2e6   :  { %5300 = vmatprep.mubr.bf16.mxu0 %v8025_v8  ;;  %5414 = vmatpush1.bf16.msra.mxu1 %v7269_v7  ;;  %v7311_v7 = vld [vmem:[#allocation7 + $0x4c8] ss:$16 sps:$4 sm:$0xff]  }
 0x2e7   :  { %5301 = vmatmul.mubr.bf16.vlgmr.msra.gmra.mrb[8].mxu0 %v8023_v39  ;;  %5415 = vmatprep.subr.bf16.mxu1 %v7274_v9  ;;  %v7401_v9 = vld [vmem:[#allocation7 + $0x7c0] ss:$16 sps:$4 sm:$0xff]  }
 0x2e8   :  { %5312 = vmatpush1.bf16.msra.mxu0 %v7317_v10  ;;  %v7409_v10 = vld [vmem:[#allocation7 + $0x7e4] ss:$16 sps:$4 sm:$0xff]  }
 0x2e9   :  { %5313 = vmatprep.subr.bf16.mxu0 %v7325_v11  ;;  %v7314_v11 = vld [vmem:[#allocation7 + $0x4e8] ss:$16 sps:$4 sm:$0xff]  }
 0x2ea   :  { %5416 = vmatpush1.bf16.msra.mxu1 %v7272_v12  ;;  %v7322_v12 = vld [vmem:[#allocation7 + $0x50c] ss:$16 sps:$4 sm:$0xff]  }
 0x2eb   :  { %5417 = vmatprep.subr.bf16.mxu1 %v7277_v13  ;;  %v7407_v13 = vld [vmem:[#allocation7 + $0x7e0] ss:$16 sps:$4 sm:$0xff]  }
 0x2ec   :  { %5314 = vmatpush1.bf16.msra.mxu0 %v7323_v41  ;;  %v7439_v41 = vld [vmem:[#allocation10 + $0x4] ss:$8 sps:$4 sm:$0xff]  }
 0x2ed   :  { %5315 = vmatprep.subr.bf16.mxu0 %v7331_v24  ;;  %v7320_v24 = vld [vmem:[#allocation7 + $0x508] ss:$16 sps:$4 sm:$0xff]  }
 0x2ee   :  { %5418 = vmatpush1.bf16.msra.mxu1 %v7275_v15  ;;  %v7328_v15 = vld [vmem:[#allocation7 + $0x52c] ss:$16 sps:$4 sm:$0xff]  }
 0x2ef   :  { %5419 = vmatprep.subr.bf16.mxu1 %v7280_v16  ;;  %v7326_v16 = vld [vmem:[#allocation7 + $0x528] ss:$16 sps:$4 sm:$0xff]  }
 0x2f0   :  { %5316 = vmatpush1.bf16.msra.mxu0 %v7329_v18  ;;  %v7334_v18 = vld [vmem:[#allocation7 + $0x54c] ss:$16 sps:$4 sm:$0xff]  }
 0x2f1   :  { %5317 = vmatprep.subr.bf16.mxu0 %v7337_v19  ;;  %v7332_v19 = vld [vmem:[#allocation7 + $0x548] ss:$16 sps:$4 sm:$0xff]  }
 0x2f2   :  { %5420 = vmatpush1.bf16.msra.mxu1 %v7278_v20  ;;  %v7340_v20 = vld [vmem:[#allocation7 + $0x56c] ss:$16 sps:$4 sm:$0xff]  }
 0x2f3   :  { %5421 = vmatprep.subr.bf16.mxu1 %v7283_v31  ;;  %v7338_v31 = vld [vmem:[#allocation7 + $0x568] ss:$16 sps:$4 sm:$0xff]  }
 0x2f4   :  { %5318 = vmatpush1.bf16.msra.mxu0 %v7335_v22  ;;  %v7346_v22 = vld [vmem:[#allocation7 + $0x58c] ss:$16 sps:$4 sm:$0xff]  }
 0x2f5   :  { %5319 = vmatprep.subr.bf16.mxu0 %v7343_v23  ;;  %v7344_v23 = vld [vmem:[#allocation7 + $0x588] ss:$16 sps:$4 sm:$0xff]  }
 0x2f6   :  { %5422 = vmatpush1.bf16.msra.mxu1 %v7281_v25  ;;  %v7352_v25 = vld [vmem:[#allocation7 + $0x5ac] ss:$16 sps:$4 sm:$0xff]  }
 0x2f7   :  { %5423 = vmatprep.subr.bf16.mxu1 %v7286_v26  ;;  %v7350_v26 = vld [vmem:[#allocation7 + $0x5a8] ss:$16 sps:$4 sm:$0xff]  }
 0x2f8   :  { %5320 = vmatpush1.bf16.msra.mxu0 %v7341_v33  ;;  %v7358_v33 = vld [vmem:[#allocation7 + $0x5cc] ss:$16 sps:$4 sm:$0xff]  }
 0x2f9   :  { %5321 = vmatprep.subr.bf16.mxu0 %v7349_v14  ;;  %v7356_v14 = vld [vmem:[#allocation7 + $0x5c8] ss:$16 sps:$4 sm:$0xff]  }
 0x2fa   :  { %5424 = vmatpush1.bf16.msra.mxu1 %v7284_v47  ;;  %v7364_v47 = vld [vmem:[#allocation7 + $0x5ec] ss:$16 sps:$4 sm:$0xff]  }
 0x2fb   :  { %5425 = vmatprep.subr.bf16.mxu1 %v7289_v21  ;;  %v7362_v21 = vld [vmem:[#allocation7 + $0x5e8] ss:$16 sps:$4 sm:$0xff]  }
 0x2fc   :  { %5322 = vmatpush1.bf16.msra.mxu0 %v7347_v27  ;;  %v7370_v27 = vld [vmem:[#allocation7 + $0x60c] ss:$16 sps:$4 sm:$0xff]  }
 0x2fd   :  { %5323 = vmatprep.subr.bf16.mxu0 %v7355_v30  ;;  %v7368_v30 = vld [vmem:[#allocation7 + $0x608] ss:$16 sps:$4 sm:$0xff]  }
 0x2fe   :  { %5426 = vmatpush1.bf16.msra.mxu1 %v7287_v32  ;;  %v7376_v32 = vld [vmem:[#allocation7 + $0x62c] ss:$16 sps:$4 sm:$0xff]  }
 0x2ff   :  { %5427 = vmatprep.subr.bf16.mxu1 %v7292_v42  ;;  %v7374_v42 = vld [vmem:[#allocation7 + $0x628] ss:$16 sps:$4 sm:$0xff]  }
 0x300   :  { %5324 = vmatpush1.bf16.msra.mxu0 %v7353_v34  ;;  %v7382_v34 = vld [vmem:[#allocation7 + $0x64c] ss:$16 sps:$4 sm:$0xff]  }
 0x301   :  { %5325 = vmatprep.subr.bf16.mxu0 %v7361_v35  ;;  %v7380_v35 = vld [vmem:[#allocation7 + $0x648] ss:$16 sps:$4 sm:$0xff]  }
 0x302   :  { %5428 = vmatpush1.bf16.msra.mxu1 %v7290_v38  ;;  %v7388_v38 = vld [vmem:[#allocation7 + $0x66c] ss:$16 sps:$4 sm:$0xff]  }
 0x303   :  { %5440 = vmatprep.subr.bf16.mxu1 %v7295_v37  ;;  %v7386_v37 = vld [vmem:[#allocation7 + $0x668] ss:$16 sps:$4 sm:$0xff]  }
 0x304   :  { %5326 = vmatpush1.bf16.msra.mxu0 %v7359_v43  ;;  %v7394_v43 = vld [vmem:[#allocation7 + $0x68c] ss:$16 sps:$4 sm:$0xff]  }
 0x305   :  { %5327 = vmatprep.subr.bf16.mxu0 %v7367_v44  ;;  %5430 = vmatmul.mubr.bf16.vlgmr.msra.gmra.mrb[12].mxu1 %v8005_v17  ;;  %v7302_v17 = vld [vmem:[#allocation7 + $0x468] ss:$16 sps:$4 sm:$0xff]   ;;  %v606_v44 = vsub.s32 6, %v7962_v29 }
 0x306   :  { %5441 = vmatpush1.bf16.msra.mxu1 %v7293_v58  ;;  %5472 = vmatprep.mubr.bf16.mxu1 %v8025_v8  ;;  %v7316_v8 = vld [vmem:[#allocation7 + $0x4ec] ss:$16 sps:$4 sm:$0xff]   ;;  %v7392_v58 = vld [vmem:[#allocation7 + $0x688] ss:$16 sps:$4 sm:$0xff]  }
 0x307   :  { %5442 = vmatprep.subr.bf16.mxu1 %v7298_v48  ;;  %v610_v48 = vsub.s32 7, %v7962_v29  ;;  %v7506_v29 = vld [vmem:[#allocation10 + $0x170] ss:$8 sps:$4 sm:$0xff]  }
 0x308   :  { %5328 = vmatpush1.bf16.msra.mxu0 %v7365_v49  ;;  %v607_v49 = vrot.slane %v8019_v28, %v606_v44  ;;  %v7458_v44 = vld [vmem:[#allocation10 + $0x70] ss:$8 sps:$4 sm:$0xff]  }
 0x309   :  { %5329 = vmatprep.subr.bf16.mxu0 %v7373_v50  ;;  %v611_v50 = vrot.slane %v8019_v28, %v610_v48  ;;  %v7410_v28 = vld [vmem:[#allocation7 + $0x6e8] ss:$16 sps:$4 sm:$0xff]   ;;  %v7461_v48 = vld [vmem:[#allocation10 + $0x80] ss:$8 sps:$4 sm:$0xff]  }
 0x30a   :  { %5443 = vmatpush1.bf16.msra.mxu1 %v7296_v52  ;;  %v7398_v52 = vld [vmem:[#allocation7 + $0x6a8] ss:$16 sps:$4 sm:$0xff]  }
 0x30b   :  { %5444 = vmatprep.subr.bf16.mxu1 %v7301_v60  ;;  %v7406_v60 = vld [vmem:[#allocation7 + $0x6cc] ss:$16 sps:$4 sm:$0xff]  }
 0x30c   :  { %5330 = vmatpush1.bf16.msra.mxu0 %v7371_v53 }
 0x30d   :  { %5331 = vmatprep.subr.bf16.mxu0 %v7379_v54 }
 0x30e   :  { %5445 = vmatpush1.bf16.msra.mxu1 %v7299_v55 }
 0x30f   :  { %5446 = vmatprep.subr.bf16.mxu1 %v7304_v56 }
 0x310   :  { %5332 = vmatpush1.bf16.msra.mxu0 %v7377_v59 }
 0x311   :  { %5333 = vmatprep.subr.bf16.mxu0 %v7385_v57  ;;  %v7404_v57 = vld [vmem:[#allocation7 + $0x6c8] ss:$16 sps:$4 sm:$0xff]  }
 0x312   :  { %5447 = vmatpush1.bf16.msra.mxu1 %v7302_v17 }
 0x313   :  { %5448 = vmatprep.subr.bf16.mxu1 %v7307_v61 }
 0x314   :  { %5334 = vmatpush1.bf16.msra.mxu0 %v7383_v62 }
 0x315   :  { %5335 = vmatprep.subr.bf16.mxu0 %v7391_v63  ;;  %v7412_v63 = vld [vmem:[#allocation7 + $0x6ec] ss:$16 sps:$4 sm:$0xff]  }
 0x316   :  { %5449 = vmatpush1.bf16.msra.mxu1 %v7305_v0 }
 0x317   :  { %5450 = vmatprep.subr.bf16.mxu1 %v7310_v1 }
 0x318   :  { %5336 = vmatpush1.bf16.msra.mxu0 %v7389_v2 }
 0x319   :  { %5337 = vmatprep.subr.bf16.mxu0 %v7397_v3 }
 0x31a   :  { %5451 = vmatpush1.bf16.msra.mxu1 %v7308_v45 }
 0x31b   :  { %5452 = vmatprep.subr.bf16.mxu1 %v7313_v4 }
 0x31c   :  { %5338 = vmatpush1.bf16.msra.mxu0 %v7395_v5  ;;  %v7415_v5 = vld [vmem:[#allocation7 + $0x70c] ss:$16 sps:$4 sm:$0xff]  }
 0x31d   :  { %5339 = vmatprep.subr.bf16.mxu0 %v7403_v6 }
 0x31e   :  { %5453 = vmatpush1.bf16.msra.mxu1 %v7311_v7 }
 0x31f   :  { %5454 = vmatprep.subr.bf16.mxu1 %v7316_v8 }
 0x320   :  { %5340 = vmatpush1.bf16.msra.mxu0 %v7401_v9 }
 0x321   :  { %5341 = vmatprep.subr.bf16.mxu0 %v7409_v10  ;;  %v7413_v10 = vld [vmem:[#allocation7 + $0x708] ss:$16 sps:$4 sm:$0xff]  }
 0x322   :  { %5455 = vmatpush1.bf16.msra.mxu1 %v7314_v11  ;;  %v7437_v11 = vld [vmem:[#allocation10] ss:$8 sps:$4 sm:$0xff]  }
 0x323   :  { %5456 = vmatprep.subr.bf16.mxu1 %v7322_v12  ;;  %v7418_v12 = vld [vmem:[#allocation7 + $0x72c] ss:$16 sps:$4 sm:$0xff]  }
 0x324   :  { %5342 = vmatpush1.bf16.msra.mxu0 %v7407_v13  ;;  %v7442_v13 = vld [vmem:[#allocation10 + $0x14] ss:$8 sps:$4 sm:$0xff]  }
 0x325   :  { %5942 = vmatprep.subr.bf16.mxu0 %v7439_v41  ;;  %v7416_v41 = vld [vmem:[#allocation7 + $0x728] ss:$16 sps:$4 sm:$0xff]  }
 0x326   :  { %5457 = vmatpush1.bf16.msra.mxu1 %v7320_v24  ;;  %v7440_v24 = vld [vmem:[#allocation10 + $0x10] ss:$8 sps:$4 sm:$0xff]  }
 0x327   :  { %5458 = vmatprep.subr.bf16.mxu1 %v7328_v15  ;;  %v7421_v15 = vld [vmem:[#allocation7 + $0x74c] ss:$16 sps:$4 sm:$0xff]  }
 0x32a   :  { %5459 = vmatpush1.bf16.msra.mxu1 %v7326_v16  ;;  %v7445_v16 = vld [vmem:[#allocation10 + $0x24] ss:$8 sps:$4 sm:$0xff]  }
 0x32b   :  { %5460 = vmatprep.subr.bf16.mxu1 %v7334_v18  ;;  %v7419_v18 = vld [vmem:[#allocation7 + $0x748] ss:$16 sps:$4 sm:$0xff]  }
 0x32e   :  { %5461 = vmatpush1.bf16.msra.mxu1 %v7332_v19  ;;  %v7443_v19 = vld [vmem:[#allocation10 + $0x20] ss:$8 sps:$4 sm:$0xff]  }
 0x32f   :  { %5462 = vmatprep.subr.bf16.mxu1 %v7340_v20  ;;  %v7424_v20 = vld [vmem:[#allocation7 + $0x76c] ss:$16 sps:$4 sm:$0xff]  }
 0x332   :  { %5463 = vmatpush1.bf16.msra.mxu1 %v7338_v31  ;;  %v7448_v31 = vld [vmem:[#allocation10 + $0x34] ss:$8 sps:$4 sm:$0xff]  }
 0x333   :  { %5464 = vmatprep.subr.bf16.mxu1 %v7346_v22  ;;  %v7422_v22 = vld [vmem:[#allocation7 + $0x768] ss:$16 sps:$4 sm:$0xff]  }
 0x336   :  { %5465 = vmatpush1.bf16.msra.mxu1 %v7344_v23  ;;  %v7446_v23 = vld [vmem:[#allocation10 + $0x30] ss:$8 sps:$4 sm:$0xff]  }
 0x337   :  { %5466 = vmatprep.subr.bf16.mxu1 %v7352_v25  ;;  %v7427_v25 = vld [vmem:[#allocation7 + $0x78c] ss:$16 sps:$4 sm:$0xff]  }
 0x33a   :  { %5467 = vmatpush1.bf16.msra.mxu1 %v7350_v26  ;;  %v7451_v26 = vld [vmem:[#allocation10 + $0x44] ss:$8 sps:$4 sm:$0xff]  }
 0x33b   :  { %5468 = vmatprep.subr.bf16.mxu1 %v7358_v33  ;;  %v7425_v33 = vld [vmem:[#allocation7 + $0x788] ss:$16 sps:$4 sm:$0xff]  }
 0x33e   :  { %5469 = vmatpush1.bf16.msra.mxu1 %v7356_v14  ;;  %v7449_v14 = vld [vmem:[#allocation10 + $0x40] ss:$8 sps:$4 sm:$0xff]  }
 0x33f   :  { %5470 = vmatprep.subr.bf16.mxu1 %v7364_v47  ;;  %v7430_v47 = vld [vmem:[#allocation7 + $0x7ac] ss:$16 sps:$4 sm:$0xff]  }
 0x342   :  { %5471 = vmatpush1.bf16.msra.mxu1 %v7362_v21  ;;  %v7454_v21 = vld [vmem:[#allocation10 + $0x54] ss:$8 sps:$4 sm:$0xff]  }
 0x343   :  { %5483 = vmatprep.subr.bf16.mxu1 %v7370_v27  ;;  %v7428_v27 = vld [vmem:[#allocation7 + $0x7a8] ss:$16 sps:$4 sm:$0xff]  }
 0x345   :  { %5473 = vmatmul.mubr.bf16.vlgmr.msra.gmra.mrb[12].mxu1 %v8023_v39  ;;  %v7400_v39 = vld [vmem:[#allocation7 + $0x6ac] ss:$16 sps:$4 sm:$0xff]  }
 0x346   :  { %5484 = vmatpush1.bf16.msra.mxu1 %v7368_v30  ;;  %v7452_v30 = vld [vmem:[#allocation10 + $0x50] ss:$8 sps:$4 sm:$0xff]  }
 0x347   :  { %5485 = vmatprep.subr.bf16.mxu1 %v7376_v32  ;;  %v7433_v32 = vld [vmem:[#allocation7 + $0x7cc] ss:$16 sps:$4 sm:$0xff]  }
 0x34a   :  { %5486 = vmatpush1.bf16.msra.mxu1 %v7374_v42  ;;  %v7457_v42 = vld [vmem:[#allocation10 + $0x64] ss:$8 sps:$4 sm:$0xff]  }
 0x34b   :  { %5487 = vmatprep.subr.bf16.mxu1 %v7382_v34  ;;  %v7431_v34 = vld [vmem:[#allocation7 + $0x7c8] ss:$16 sps:$4 sm:$0xff]  }
 0x34e   :  { %5488 = vmatpush1.bf16.msra.mxu1 %v7380_v35  ;;  %v7455_v35 = vld [vmem:[#allocation10 + $0x60] ss:$8 sps:$4 sm:$0xff]  }
 0x34f   :  { %5489 = vmatprep.subr.bf16.mxu1 %v7388_v38  ;;  %v7436_v38 = vld [vmem:[#allocation7 + $0x7ec] ss:$16 sps:$4 sm:$0xff]  }
 0x352   :  { %5490 = vmatpush1.bf16.msra.mxu1 %v7386_v37  ;;  %v7460_v37 = vld [vmem:[#allocation10 + $0x74] ss:$8 sps:$4 sm:$0xff]  }
 0x353   :  { %5491 = vmatprep.subr.bf16.mxu1 %v7394_v43  ;;  %v7434_v43 = vld [vmem:[#allocation7 + $0x7e8] ss:$16 sps:$4 sm:$0xff]  }
 0x356   :  { %5492 = vmatpush1.bf16.msra.mxu1 %v7392_v58  ;;  %v7463_v58 = vld [vmem:[#allocation10 + $0x84] ss:$8 sps:$4 sm:$0xff]  }
 0x357   :  { %5493 = vmatprep.subr.bf16.mxu1 %v7400_v39  ;;  %v7466_v39 = vld [vmem:[#allocation10 + $0x94] ss:$8 sps:$4 sm:$0xff]  }
 0x358   :  { %v3575_v53 = vpop.f32.mrb[8].mxu1 }
 0x359   :  { %v6940_v54 = vadd.f32 %v3575_v53, %v607_v49  ;;  %v3577_v55 = vpop.f32.mrb[9].mxu1  ;;  %v7470_v53 = vld [vmem:[#allocation10 + $0xb0] ss:$8 sps:$4 sm:$0xff]  }
 0x35a   :  { %v6941_v56 = vadd.f32 %v3577_v55, %v611_v50  ;;  %v3579_v59 = vpop.f32.mrb[10].mxu1  ;;  %5494 = vmatpush1.bf16.msra.mxu1 %v7398_v52  ;;  %v7467_v52 = vld [vmem:[#allocation10 + $0xa0] ss:$8 sps:$4 sm:$0xff]  }
 0x35b   :  { %v3590_v17 = vmul.f32 0.2, %v6940_v54  ;;  %v6942_v61 = vadd.f32 %v3579_v59, %v607_v49  ;;  %v3581_v62 = vpop.f32.mrb[11].mxu1  ;;  %5495 = vmatprep.subr.bf16.mxu1 %v7406_v60  ;;  %v7464_v49 = vld [vmem:[#allocation10 + $0x90] ss:$8 sps:$4 sm:$0xff]  }
 0x35c   :  { %v3591_v0 = vmul.f32 0.2, %v6941_v56  ;;  %v6943_v1 = vadd.f32 %v3581_v62, %v611_v50  ;;  %v7469_v50 = vld [vmem:[#allocation10 + $0xa4] ss:$8 sps:$4 sm:$0xff]   ;;  %v7472_v60 = vld [vmem:[#allocation10 + $0xb4] ss:$8 sps:$4 sm:$0xff]  }
 0x35d   :  { %v3598_v2 = vmul.f32 0.2, %v6942_v61  ;;  %v3606_v45 = vmax.f32 %v6940_v54, %v3590_v17  ;;  %v7475_v54 = vld [vmem:[#allocation10 + $0xc4] ss:$8 sps:$4 sm:$0xff]   ;;  %v7473_v55 = vld [vmem:[#allocation10 + $0xc0] ss:$8 sps:$4 sm:$0xff]  }
 0x35e   :  { %v3599_v3 = vmul.f32 0.2, %v6943_v1  ;;  %5496 = vmatpush1.bf16.msra.mxu1 %v7404_v57  ;;  %v3607_v6 = vmax.f32 %v6941_v56, %v3591_v0  ;;  %v7478_v56 = vld [vmem:[#allocation10 + $0xd4] ss:$8 sps:$4 sm:$0xff]   ;;  %v7476_v59 = vld [vmem:[#allocation10 + $0xd0] ss:$8 sps:$4 sm:$0xff]  }
 0x35f   :  { %v3614_v4 = vmax.f32 %v6942_v61, %v3598_v2  ;;  %5497 = vmatprep.subr.bf16.mxu1 %v7412_v63  ;;  %v7481_v57 = vld [vmem:[#allocation10 + $0xe4] ss:$8 sps:$4 sm:$0xff]   ;;  %v7479_v17 = vld [vmem:[#allocation10 + $0xe0] ss:$8 sps:$4 sm:$0xff]   ;;  %v7484_v61 = vld [vmem:[#allocation10 + $0xf4] ss:$8 sps:$4 sm:$0xff]  }
 0x360   :  { %v3615_v7 = vmax.f32 %v6943_v1, %v3599_v3  ;;  %v7482_v62 = vld [vmem:[#allocation10 + $0xf0] ss:$8 sps:$4 sm:$0xff]   ;;  %v7487_v63 = vld [vmem:[#allocation10 + $0x104] ss:$8 sps:$4 sm:$0xff]   ;;  %v3880_v0 = vld [vmem:[#allocation8] sm:$0xf] }
 0x361   :  { %v8036_v8 = vpack.c.bf16 %v3614_v4, %v3606_v45  ;;  %v3885_v1 = vrot.slane %v3880_v0, %v7965_v40  ;;  %v3889_v2 = vrot.slane %v3880_v0, %v7970_v46 }
 0x362   :  { %5498 = vmatpush1.bf16.msra.mxu1 %v7410_v28  ;;  %v3623_v9 = vpack.c.bf16 %v3615_v7, %v3607_v6 }
 0x363   :  { %5499 = vmatprep.subr.bf16.mxu1 %v7415_v5 }
 0x364   :  { %5343 = vmatprep.mubr.bf16.mxu0 %v3623_v9  ;;  %5515 = vmatprep.mubr.bf16.mxu1 %v3623_v9 }
 0x365   :  { %5344 = vmatmul.mubr.bf16.vlgmr.msra.gmra.mrb[8].mxu0 %v8036_v8 }
 0x366   :  { %5500 = vmatpush1.bf16.msra.mxu1 %v7413_v10  ;;  %5943 = vmatpush1.bf16.msra.mxu0 %v7437_v11 }
 0x367   :  { %5501 = vmatprep.subr.bf16.mxu1 %v7418_v12  ;;  %5944 = vmatprep.subr.bf16.mxu0 %v7442_v13 }
 0x36a   :  { %5502 = vmatpush1.bf16.msra.mxu1 %v7416_v41  ;;  %5945 = vmatpush1.bf16.msra.mxu0 %v7440_v24 }
 0x36b   :  { %5503 = vmatprep.subr.bf16.mxu1 %v7421_v15  ;;  %5946 = vmatprep.subr.bf16.mxu0 %v7445_v16 }
 0x36e   :  { %5504 = vmatpush1.bf16.msra.mxu1 %v7419_v18  ;;  %5947 = vmatpush1.bf16.msra.mxu0 %v7443_v19  ;;  %v7485_v19 = vld [vmem:[#allocation10 + $0x100] ss:$8 sps:$4 sm:$0xff]  }
 0x36f   :  { %5505 = vmatprep.subr.bf16.mxu1 %v7424_v20  ;;  %5948 = vmatprep.subr.bf16.mxu0 %v7448_v31  ;;  %v7490_v20 = vld [vmem:[#allocation10 + $0x114] ss:$8 sps:$4 sm:$0xff]   ;;  %v7488_v31 = vld [vmem:[#allocation10 + $0x110] ss:$8 sps:$4 sm:$0xff]  }
 0x372   :  { %5506 = vmatpush1.bf16.msra.mxu1 %v7422_v22  ;;  %5949 = vmatpush1.bf16.msra.mxu0 %v7446_v23  ;;  %v7493_v22 = vld [vmem:[#allocation10 + $0x124] ss:$8 sps:$4 sm:$0xff]   ;;  %v7491_v23 = vld [vmem:[#allocation10 + $0x120] ss:$8 sps:$4 sm:$0xff]  }
 0x373   :  { %5507 = vmatprep.subr.bf16.mxu1 %v7427_v25  ;;  %5950 = vmatprep.subr.bf16.mxu0 %v7451_v26  ;;  %v7496_v25 = vld [vmem:[#allocation10 + $0x134] ss:$8 sps:$4 sm:$0xff]   ;;  %v7494_v26 = vld [vmem:[#allocation10 + $0x130] ss:$8 sps:$4 sm:$0xff]  }
 0x376   :  { %5508 = vmatpush1.bf16.msra.mxu1 %v7425_v33  ;;  %5951 = vmatpush1.bf16.msra.mxu0 %v7449_v14  ;;  %v7499_v33 = vld [vmem:[#allocation10 + $0x144] ss:$8 sps:$4 sm:$0xff]   ;;  %v7497_v14 = vld [vmem:[#allocation10 + $0x140] ss:$8 sps:$4 sm:$0xff]  }
 0x377   :  { %5509 = vmatprep.subr.bf16.mxu1 %v7430_v47  ;;  %5952 = vmatprep.subr.bf16.mxu0 %v7454_v21  ;;  %v7502_v47 = vld [vmem:[#allocation10 + $0x154] ss:$8 sps:$4 sm:$0xff]   ;;  %v3893_v21 = vrot.slane %v3880_v0, %v590_v36 }
 0x37a   :  { %5510 = vmatpush1.bf16.msra.mxu1 %v7428_v27  ;;  %5953 = vmatpush1.bf16.msra.mxu0 %v7452_v30  ;;  %v7500_v27 = vld [vmem:[#allocation10 + $0x150] ss:$8 sps:$4 sm:$0xff]   ;;  %v3897_v30 = vrot.slane %v3880_v0, %v594_v51  ;;  %v7520_v0 = vld [vmem:[#allocation10 + $0x1b4] ss:$8 sps:$4 sm:$0xff]  }
 0x37b   :  { %5511 = vmatprep.subr.bf16.mxu1 %v7433_v32  ;;  %5954 = vmatprep.subr.bf16.mxu0 %v7457_v42  ;;  %v7505_v32 = vld [vmem:[#allocation10 + $0x164] ss:$8 sps:$4 sm:$0xff]  }
 0x37e   :  { %5512 = vmatpush1.bf16.msra.mxu1 %v7431_v34  ;;  %5955 = vmatpush1.bf16.msra.mxu0 %v7455_v35 }
 0x37f   :  { %5513 = vmatprep.subr.bf16.mxu1 %v7436_v38  ;;  %5956 = vmatprep.subr.bf16.mxu0 %v7460_v37 }
 0x382   :  { %5514 = vmatpush1.bf16.msra.mxu1 %v7434_v43  ;;  %5957 = vmatpush1.bf16.msra.mxu0 %v7458_v44  ;;  %v7503_v43 = vld [vmem:[#allocation10 + $0x160] ss:$8 sps:$4 sm:$0xff]  }
 0x383   :  { %5958 = vmatprep.subr.bf16.mxu0 %v7463_v58 }
 0x385   :  { %5516 = vmatmul.mubr.bf16.vlgmr.msra.gmra.mrb[12].mxu1 %v8036_v8 }
 0x386   :  { %5959 = vmatpush1.bf16.msra.mxu0 %v7461_v48 }
 0x387   :  { %5960 = vmatprep.subr.bf16.mxu0 %v7466_v39  ;;  %v7508_v39 = vld [vmem:[#allocation10 + $0x174] ss:$8 sps:$4 sm:$0xff]  }
 0x38a   :  { %5961 = vmatpush1.bf16.msra.mxu0 %v7464_v49 }
 0x38b   :  { %5962 = vmatprep.subr.bf16.mxu0 %v7469_v50 }
 0x38e   :  { %5963 = vmatpush1.bf16.msra.mxu0 %v7467_v52 }
 0x38f   :  { %5964 = vmatprep.subr.bf16.mxu0 %v7472_v60 }
 0x392   :  { %5965 = vmatpush1.bf16.msra.mxu0 %v7470_v53  ;;  %v7511_v53 = vld [vmem:[#allocation10 + $0x184] ss:$8 sps:$4 sm:$0xff]  }
 0x393   :  { %5966 = vmatprep.subr.bf16.mxu0 %v7475_v54 }
 0x396   :  { %5967 = vmatpush1.bf16.msra.mxu0 %v7473_v55 }
 0x397   :  { %5968 = vmatprep.subr.bf16.mxu0 %v7478_v56 }
 0x39a   :  { %5969 = vmatpush1.bf16.msra.mxu0 %v7476_v59  ;;  %v7509_v59 = vld [vmem:[#allocation10 + $0x180] ss:$8 sps:$4 sm:$0xff]  }
 0x39b   :  { %5970 = vmatprep.subr.bf16.mxu0 %v7481_v57 }
 0x39e   :  { %5971 = vmatpush1.bf16.msra.mxu0 %v7479_v17  ;;  %v7514_v17 = vld [vmem:[#allocation10 + $0x194] ss:$8 sps:$4 sm:$0xff]  }
 0x39f   :  { %5972 = vmatprep.subr.bf16.mxu0 %v7484_v61  ;;  %v7512_v61 = vld [vmem:[#allocation10 + $0x190] ss:$8 sps:$4 sm:$0xff]  }
 0x3a2   :  { %5973 = vmatpush1.bf16.msra.mxu0 %v7482_v62  ;;  %v7517_v62 = vld [vmem:[#allocation10 + $0x1a4] ss:$8 sps:$4 sm:$0xff]  }
 0x3a3   :  { %5985 = vmatprep.subr.bf16.mxu0 %v7487_v63  ;;  %v7515_v63 = vld [vmem:[#allocation10 + $0x1a0] ss:$8 sps:$4 sm:$0xff]  }
 0x438   :  { %v5345_v3 = vpop.f32.mrb[8].mxu0 }
 0x439   :  { %v6944_v28 = vadd.f32 %v5345_v3, %v3885_v1  ;;  %v5347_v45 = vpop.f32.mrb[9].mxu0  ;;  %v7521_v3 = vld [vmem:[#allocation10 + $0x1c0] ss:$8 sps:$4 sm:$0xff]  }
 0x43a   :  { %v6945_v4 = vadd.f32 %v5347_v45, %v3889_v2  ;;  %v5349_v5 = vpop.f32.mrb[10].mxu0  ;;  %v7524_v45 = vld [vmem:[#allocation10 + $0x1d0] ss:$8 sps:$4 sm:$0xff]  }
 0x43b   :  { %v5526_v6 = vmul.f32 0.2, %v6944_v28  ;;  %v6946_v7 = vadd.f32 %v5349_v5, %v3885_v1  ;;  %v5351_v8 = vpop.f32.mrb[11].mxu0  ;;  %v7518_v1 = vld [vmem:[#allocation10 + $0x1b0] ss:$8 sps:$4 sm:$0xff]  }
 0x43c   :  { %v5527_v9 = vmul.f32 0.2, %v6945_v4  ;;  %v6947_v10 = vadd.f32 %v5351_v8, %v3889_v2  ;;  %v7523_v2 = vld [vmem:[#allocation10 + $0x1c4] ss:$8 sps:$4 sm:$0xff]   ;;  %v7527_v5 = vld [vmem:[#allocation10 + $0x1e0] ss:$8 sps:$4 sm:$0xff]  }
 0x43d   :  { %v5530_v11 = vmul.f32 0.2, %v6946_v7  ;;  %v5534_v13 = vmax.f32 %v6944_v28, %v5526_v6  ;;  %v7526_v28 = vld [vmem:[#allocation10 + $0x1d4] ss:$8 sps:$4 sm:$0xff]   ;;  %v6036_v8 = vld [vmem:[#allocation13] sm:$0x3] }
 0x43e   :  { %v5531_v12 = vmul.f32 0.2, %v6947_v10  ;;  %v5535_v24 = vmax.f32 %v6945_v4, %v5527_v9  ;;  %v7529_v4 = vld [vmem:[#allocation10 + $0x1e4] ss:$8 sps:$4 sm:$0xff]   ;;  %v7532_v6 = vld [vmem:[#allocation10 + $0x1f4] ss:$8 sps:$4 sm:$0xff]   ;;  %v6055_v9 = vrot.slane %v6036_v8, %v7970_v46 }
 0x43f   :  { %v5538_v41 = vmax.f32 %v6946_v7, %v5530_v11  ;;  %v7530_v7 = vld [vmem:[#allocation10 + $0x1f0] ss:$8 sps:$4 sm:$0xff]   ;;  %v5610_v11 = vld [vmem:[#allocation11] sm:$0x3] }
 0x440   :  { %v5539_v15 = vmax.f32 %v6947_v10, %v5531_v12  ;;  %6122 = vmatprep.mubr.f32.mxu1 %v6055_v9  ;;  %v6037_v10 = vld [vmem:[#allocation2] sm:$0x1]  ;;  %v5615_v12 = vrot.slane %v5610_v11, %v7965_v40 }
 0x441   :  { %v5542_v16 = vpack.c.bf16 %v5538_v41, %v5534_v13  ;;  %6040 = vperm.xlu0 %7042, %v6037_v10   ;;  %v5619_v13 = vrot.slane %v5610_v11, %v7970_v46  ;;  %v6051_v46 = vrot.slane %v6036_v8, %v7965_v40 }
 0x442   :  { %v5543_v18 = vpack.c.bf16 %v5539_v15, %v5535_v24 }
 0x444   :  { %5974 = vmatprep.mubr.bf16.mxu0 %v5543_v18 }
 0x445   :  { %5975 = vmatmul.mubr.bf16.vlgmr.msra.gmra.mrb[12].mxu0 %v5542_v16 }
 0x446   :  { %5986 = vmatpush1.bf16.msra.mxu0 %v7485_v19 }
 0x447   :  { %5987 = vmatprep.subr.bf16.mxu0 %v7490_v20 }
 0x44a   :  { %5988 = vmatpush1.bf16.msra.mxu0 %v7488_v31 }
 0x44b   :  { %5989 = vmatprep.subr.bf16.mxu0 %v7493_v22 }
 0x44e   :  { %5990 = vmatpush1.bf16.msra.mxu0 %v7491_v23 }
 0x44f   :  { %5991 = vmatprep.subr.bf16.mxu0 %v7496_v25 }
 0x452   :  { %5992 = vmatpush1.bf16.msra.mxu0 %v7494_v26 }
 0x453   :  { %5993 = vmatprep.subr.bf16.mxu0 %v7499_v33 }
 0x456   :  { %5994 = vmatpush1.bf16.msra.mxu0 %v7497_v14 }
 0x457   :  { %5995 = vmatprep.subr.bf16.mxu0 %v7502_v47 }
 0x458   :  { %v5517_v42 = vpop.f32.mrb[12].mxu1 }
 0x459   :  { %v6948_v34 = vadd.f32 %v5517_v42, %v3893_v21  ;;  %v5519_v35 = vpop.f32.mrb[13].mxu1 }
 0x45a   :  { %v6949_v38 = vadd.f32 %v5519_v35, %v3897_v30  ;;  %5996 = vmatpush1.bf16.msra.mxu0 %v7500_v27  ;;  %v5521_v37 = vpop.f32.mrb[14].mxu1 }
 0x45b   :  { %v5528_v44 = vmul.f32 0.2, %v6948_v34  ;;  %v6950_v58 = vadd.f32 %v5521_v37, %v3893_v21  ;;  %v5523_v48 = vpop.f32.mrb[15].mxu1  ;;  %5997 = vmatprep.subr.bf16.mxu0 %v7505_v32 }
 0x45c   :  { %v5529_v36 = vmul.f32 0.2, %v6949_v38  ;;  %v6951_v49 = vadd.f32 %v5523_v48, %v3897_v30 }
 0x45d   :  { %v5532_v50 = vmul.f32 0.2, %v6950_v58  ;;  %v5536_v51 = vmax.f32 %v6948_v34, %v5528_v44 }
 0x45e   :  { %v5533_v52 = vmul.f32 0.2, %v6951_v49  ;;  %5998 = vmatpush1.bf16.msra.mxu0 %v7503_v43  ;;  %v5537_v54 = vmax.f32 %v6949_v38, %v5529_v36 }
 0x45f   :  { %v5540_v60 = vmax.f32 %v6950_v58, %v5532_v50  ;;  %5999 = vmatprep.subr.bf16.mxu0 %v7508_v39 }
 0x460   :  { %v5541_v55 = vmax.f32 %v6951_v49, %v5533_v52 }
 0x461   :  { %v5544_v56 = vpack.c.bf16 %v5540_v60, %v5536_v51 }
 0x462   :  { %6000 = vmatpush1.bf16.msra.mxu0 %v7506_v29  ;;  %v5545_v57 = vpack.c.bf16 %v5541_v55, %v5537_v54 }
 0x463   :  { %6001 = vmatprep.subr.bf16.mxu0 %v7511_v53 }
 0x464   :  { %6017 = vmatprep.mubr.bf16.mxu0 %v5545_v57 }
 0x466   :  { %6002 = vmatpush1.bf16.msra.mxu0 %v7509_v59 }
 0x467   :  { %6003 = vmatprep.subr.bf16.mxu0 %v7514_v17 }
 0x46a   :  { %6004 = vmatpush1.bf16.msra.mxu0 %v7512_v61 }
 0x46b   :  { %6005 = vmatprep.subr.bf16.mxu0 %v7517_v62 }
 0x46e   :  { %6006 = vmatpush1.bf16.msra.mxu0 %v7515_v63 }
 0x46f   :  { %6007 = vmatprep.subr.bf16.mxu0 %v7520_v0 }
 0x472   :  { %6008 = vmatpush1.bf16.msra.mxu0 %v7518_v1 }
 0x473   :  { %6009 = vmatprep.subr.bf16.mxu0 %v7523_v2 }
 0x476   :  { %6010 = vmatpush1.bf16.msra.mxu0 %v7521_v3 }
 0x477   :  { %6011 = vmatprep.subr.bf16.mxu0 %v7526_v28 }
 0x47a   :  { %6012 = vmatpush1.bf16.msra.mxu0 %v7524_v45 }
 0x47b   :  { %6013 = vmatprep.subr.bf16.mxu0 %v7529_v4 }
 0x47e   :  { %6014 = vmatpush1.bf16.msra.mxu0 %v7527_v5 }
 0x47f   :  { %6015 = vmatprep.subr.bf16.mxu0 %v7532_v6 }
 0x482   :  { %6016 = vmatpush1.bf16.msra.mxu0 %v7530_v7 }
 0x485   :  { %6018 = vmatmul.mubr.bf16.vlgmr.msra.gmra.mrb[12].mxu0 %v5544_v56 }
 0x4c0   :  { %v6041_v32 = vpop.permute.xlu0 %6040 }
 0x4c1   :  { %v6046_v42 = vrot.slane %v6041_v32, %v7965_v40 }
 0x558   :  { %v6019_v41 = vpop.f32.mrb[12].mxu0 }
 0x559   :  { %v6952_v24 = vadd.f32 %v6019_v41, %v5615_v12  ;;  %v6021_v15 = vpop.f32.mrb[13].mxu0 }
 0x55a   :  { %v6953_v16 = vadd.f32 %v6021_v15, %v5619_v13  ;;  %v6023_v18 = vpop.f32.mrb[14].mxu0 }
 0x55b   :  { %v6028_v19 = vmul.f32 0.2, %v6952_v24  ;;  %v6954_v20 = vadd.f32 %v6023_v18, %v5615_v12  ;;  %v6025_v31 = vpop.f32.mrb[15].mxu0 }
 0x55c   :  { %v6029_v22 = vmul.f32 0.2, %v6953_v16  ;;  %v6955_v23 = vadd.f32 %v6025_v31, %v5619_v13 }
 0x55d   :  { %v6030_v25 = vmul.f32 0.2, %v6954_v20  ;;  %v6032_v33 = vmax.f32 %v6952_v24, %v6028_v19 }
 0x55e   :  { %v6031_v26 = vmul.f32 0.2, %v6955_v23  ;;  %v6033_v47 = vmax.f32 %v6953_v16, %v6029_v22 }
 0x55f   :  { %v6034_v14 = vmax.f32 %v6954_v20, %v6030_v25 }
 0x560   :  { %v6035_v21 = vmax.f32 %v6955_v23, %v6031_v26 }
 0x561   :  { %v6922_v27 = vpack.c.bf16 %v6034_v14, %v6032_v33 }
 0x562   :  { %v6920_v30 = vpack.c.bf16 %v6035_v21, %v6033_v47 }
 0x564   :  { %6921 = vmatprep.subr.bf16.mxu1 %v6920_v30 }
 0x565   :  { %6923 = vmatpush1.bf16.xpose.msra.mxu1 %v6922_v27 }
 0x56c   :  { %6123 = vmatmul.mubr.f32.vlgmr.msra.gmra.mrb[16].mxu1 %v6051_v46 }
 0x63f   :  { %v6124_v34 = vpop.f32.mrb[16].mxu1 }
 0x640   :  { %v6125_v35 = vadd.f32 %v6124_v34, %v6046_v42  ;;  %v6126_v38 = vpop.f32.mrb[17].mxu1 }
 0x642   :  { %v6919_v37 = vmul.f32 -1.442695, %v6125_v35 }
 0x644   :  { %7533 = vpow2.f32 %v6919_v37 }
 0x64e   :  { %v7534_v43 = vpop.eup %7533 }
 0x64f   :  { %v6131_v44 = vadd.f32 1.0, %v7534_v43 }
 0x651   :  { %7535 = vrcp.f32 %v6131_v44 }
 0x65b   :  { %v7536_v58 = vpop.eup %7535 }
 0x65c   :  { %6135 = vst.msk [vmem:[%s8063_s9] sm:$0x1] %vm6134_vm0, %v7536_v58 }
 0x65d   :  { %6140 = vsyncpa [#allocation4], 1 }
 0x65e   :  { %6141 = vsyncpa [#allocation6], 1 }
 0x65f   :  { %6142 = vsyncpa [#allocation9], 1 }
 0x660   :  { %6143 = vsyncpa [#allocation12], 1 }

</bundles_post_ra>
